<compile_context>
chip_gen: v7x
topology: tpu7x:2x2x1
jax: 0.10.0
libtpu: 0.0.40
codegen_flags: <defaults>
</compile_context>

<pallas_src>
import functools

import jax
import jax.numpy as jnp
from jax.experimental import pallas as pl
from jax.experimental.pallas import tpu as pltpu

_BN_EPS = 1e-5


# ---------------------------------------------------------------------------
# Pallas kernel: fused MMoE forward for one batch tile.
# ---------------------------------------------------------------------------
def mmoe_kernel(uemb_ref, iemb_ref,
                uW1, ub1, uW2, ub2, uWg, ubg, uW3, ub3, uW4, ub4,
                iW1, ib1, iW2, ib2, iWg, ibg, iW3, ib3, iW4, ib4,
                out_ref):
    def tower(emb, W1, b1, W2, b2, Wg, bg, W3, b3, W4, b4):
        num_experts = W1.shape[0]
        h1_dim = W2.shape[2]

        # Gate of the selected task: softmax over experts.
        g_logits = jnp.dot(emb, Wg[...], preferred_element_type=jnp.float32) + bg[...]
        gate = jax.nn.softmax(g_logits, axis=-1)                      # [TB, E]

        # Experts (static, unrolled loop; E is small). BN already folded in.
        mixed = jnp.zeros((emb.shape[0], h1_dim), jnp.float32)
        for e in range(num_experts):
            h0 = jnp.maximum(
                jnp.dot(emb, W1[e], preferred_element_type=jnp.float32) + b1[e], 0.0)
            h1 = jnp.maximum(
                jnp.dot(h0, W2[e], preferred_element_type=jnp.float32) + b2[e], 0.0)
            mixed = mixed + gate[:, e:e + 1] * h1                      # [TB, H1]

        # Task-specific head (BN folded).
        h2 = jnp.maximum(
            jnp.dot(mixed, W3[...], preferred_element_type=jnp.float32) + b3[...], 0.0)
        h3 = jnp.maximum(
            jnp.dot(h2, W4[...], preferred_element_type=jnp.float32) + b4[...], 0.0)
        return h3                                                      # [TB, H3]

    u_out = tower(uemb_ref[...], uW1, ub1, uW2, ub2, uWg, ubg, uW3, ub3, uW4, ub4)
    i_out = tower(iemb_ref[...], iW1, ib1, iW2, ib2, iWg, ibg, iW3, ib3, iW4, ib4)

    # Final dot product over H3 (VPU multiply + XLU lane reduce; trivial vs. matmuls).
    out_ref[...] = jnp.sum(u_out * i_out, axis=-1, keepdims=True)      # [TB, 1]


# ---------------------------------------------------------------------------
# Wrapper: BN folding, weight layout prep, tiling / pallas_call.
# ---------------------------------------------------------------------------
def _fold_bn(W, b, gamma, beta, mean, var, eps=_BN_EPS):
    """Fold eval-mode BatchNorm1d into the preceding Linear (works with leading dims)."""
    scale = gamma / jnp.sqrt(var + eps)                  # [..., out]
    Wf = W * scale[..., :, None]                         # [..., out, in]
    bf = (b - mean) * scale + beta                       # [..., out]
    return Wf, bf


def _const_index_map(ndim):
    def imap(i):
        return (0,) * ndim
    return imap


def _prep_tower(p, domain_idc):
    """Fold BN, slice the selected task, transpose weights for `x @ W` matmuls."""
    W1, b1 = _fold_bn(p['W1'], p['b1'], p['bn1_g'], p['bn1_b'], p['bn1_m'], p['bn1_v'])
    W2, b2 = _fold_bn(p['W2'], p['b2'], p['bn2_g'], p['bn2_b'], p['bn2_m'], p['bn2_v'])
    W3, b3 = _fold_bn(p['W3'][domain_idc], p['b3'][domain_idc],
                      p['bn3_g'][domain_idc], p['bn3_b'][domain_idc],
                      p['bn3_m'][domain_idc], p['bn3_v'][domain_idc])
    W4, b4 = p['W4'][domain_idc], p['b4'][domain_idc]
    Wg, bg = p['Wg'][domain_idc], p['bg'][domain_idc]
    return [
        jnp.transpose(W1, (0, 2, 1)), b1[:, None, :],    # [E, D, H0], [E, 1, H0]
        jnp.transpose(W2, (0, 2, 1)), b2[:, None, :],    # [E, H0, H1], [E, 1, H1]
        Wg.T, bg[None, :],                               # [D, E],     [1, E]
        W3.T, b3[None, :],                               # [H1, H2],   [1, H2]
        W4.T, b4[None, :],                               # [H2, H3],   [1, H3]
    ]


@functools.partial(jax.jit, static_argnames=("domain_idc", "tb"))
def mmoe_forward(user_indices, item_indices, params, *, domain_idc, tb=128):
    """user_indices/item_indices: int32 [B]; returns [B, 1] logits (eval branch)."""
    # Glue: embedding gather (nn.Embedding lookup) stays in plain JAX.
    uemb = jnp.take(params['embedding_user'], user_indices, axis=0)    # [B, D]
    iemb = jnp.take(params['embedding_item'], item_indices, axis=0)    # [B, D]
    B, D = uemb.shape

    # Pad batch up to the tile size (tail tile handled here, not in-kernel).
    pad = (-B) % tb
    if pad:
        uemb = jnp.concatenate([uemb, jnp.zeros((pad, D), uemb.dtype)], axis=0)
        iemb = jnp.concatenate([iemb, jnp.zeros((pad, D), iemb.dtype)], axis=0)
    Bp = B + pad

    weights = _prep_tower(params['user'], domain_idc) + _prep_tower(params['item'], domain_idc)

    emb_spec = pl.BlockSpec((tb, D), lambda i: (i, 0))
    in_specs = [emb_spec, emb_spec] + [
        pl.BlockSpec(w.shape, _const_index_map(w.ndim)) for w in weights
    ]
    out_spec = pl.BlockSpec((tb, 1), lambda i: (i, 0))

    out = pl.pallas_call(
        mmoe_kernel,
        out_shape=jax.ShapeDtypeStruct((Bp, 1), jnp.float32),
        grid=(Bp // tb,),
        in_specs=in_specs,
        out_specs=out_spec,
        compiler_params=pltpu.CompilerParams(
            dimension_semantics=("parallel",)),
    )(uemb, iemb, *weights)
    return out[:B]


# ---------------------------------------------------------------------------
# Pure-JAX reference mirroring the PyTorch MMoE.forward (eval branch).
# ---------------------------------------------------------------------------
def mmoe_reference(user_indices, item_indices, params, domain_idc):
    def bn(x, g, b, m, v):
        return (x - m) / jnp.sqrt(v + _BN_EPS) * g + b

    def tower(emb, p):
        E = p['W1'].shape[0]
        experts = []
        for e in range(E):
            h0 = jax.nn.relu(bn(emb @ p['W1'][e].T + p['b1'][e],
                                p['bn1_g'][e], p['bn1_b'][e], p['bn1_m'][e], p['bn1_v'][e]))
            h1 = jax.nn.relu(bn(h0 @ p['W2'][e].T + p['b2'][e],
                                p['bn2_g'][e], p['bn2_b'][e], p['bn2_m'][e], p['bn2_v'][e]))
            experts.append(h1)
        experts = jnp.stack(experts, axis=-1)                            # [B, H1, E]
        T = p['Wg'].shape[0]
        gates = jnp.stack(
            [jax.nn.softmax(emb @ p['Wg'][t].T + p['bg'][t], axis=1) for t in range(T)],
            axis=-1)                                                     # [B, E, T]
        weighted = jnp.einsum('abc,acd->abd', experts, gates)[:, :, domain_idc]
        h2 = jax.nn.relu(bn(weighted @ p['W3'][domain_idc].T + p['b3'][domain_idc],
                            p['bn3_g'][domain_idc], p['bn3_b'][domain_idc],
                            p['bn3_m'][domain_idc], p['bn3_v'][domain_idc]))
        h3 = jax.nn.relu(h2 @ p['W4'][domain_idc].T + p['b4'][domain_idc])
        return h3

    uemb = params['embedding_user'][user_indices]
    iemb = params['embedding_item'][item_indices]
    u = tower(uemb, params['user'])
    i = tower(iemb, params['item'])
    logits = jnp.sum(u * i, axis=1)
    return logits.reshape(-1, 1)


# ---------------------------------------------------------------------------
# Deterministic synthetic parameters (shapes follow MMoE.__init__ / get_mlp).
# ---------------------------------------------------------------------------
def init_params(key, num_users, num_items, D, E, T, hidden):
    H0, H1, H2, H3 = hidden
    keys = iter(jax.random.split(key, 64))

    def lin(out_f, in_f, batch=()):
        w = 0.1 * jax.random.normal(next(keys), batch + (out_f, in_f), jnp.float32)
        b = 0.1 * jax.random.normal(next(keys), batch + (out_f,), jnp.float32)
        return w, b

    def bnp(n, batch=()):
        g = 1.0 + 0.1 * jax.random.normal(next(keys), batch + (n,), jnp.float32)
        b = 0.1 * jax.random.normal(next(keys), batch + (n,), jnp.float32)
        m = 0.1 * jax.random.normal(next(keys), batch + (n,), jnp.float32)
        v = jax.nn.softplus(jax.random.normal(next(keys), batch + (n,), jnp.float32)) + 0.5
        return g, b, m, v

    def tower():
        W1, b1 = lin(H0, D, (E,)); g1, be1, m1, v1 = bnp(H0, (E,))
        W2, b2 = lin(H1, H0, (E,)); g2, be2, m2, v2 = bnp(H1, (E,))
        Wg, bg = lin(E, D, (T,))
        W3, b3 = lin(H2, H1, (T,)); g3, be3, m3, v3 = bnp(H2, (T,))
        W4, b4 = lin(H3, H2, (T,))
        return dict(W1=W1, b1=b1, bn1_g=g1, bn1_b=be1, bn1_m=m1, bn1_v=v1,
                    W2=W2, b2=b2, bn2_g=g2, bn2_b=be2, bn2_m=m2, bn2_v=v2,
                    Wg=Wg, bg=bg,
                    W3=W3, b3=b3, bn3_g=g3, bn3_b=be3, bn3_m=m3, bn3_v=v3,
                    W4=W4, b4=b4)

    return dict(
        embedding_user=jax.random.normal(next(keys), (num_users, D), jnp.float32),
        embedding_item=jax.random.normal(next(keys), (num_items, D), jnp.float32),
        user=tower(),
        item=tower(),
    )


if __name__ == "__main__":
    # Small config consistent with MMoE: latent_dim, hidden_units[0..3],
    # num_shared_experts + num_tasks experts, T task gates.
    num_users, num_items = 64, 96
    latent_dim = 32
    num_shared_experts, num_tasks = 2, 2
    num_experts = num_shared_experts + num_tasks
    hidden_units = (64, 32, 16, 8)
    batch = 256
    domain_idc = 1            # static task / domain index (Python int, as in PyTorch)

    key = jax.random.PRNGKey(0)
    kp, ku, ki = jax.random.split(key, 3)
    params = init_params(kp, num_users, num_items, latent_dim,
                         num_experts, num_tasks, hidden_units)
    user_indices = jax.random.randint(ku, (batch,), 0, num_users, jnp.int32)
    item_indices = jax.random.randint(ki, (batch,), 0, num_items, jnp.int32)

    out = mmoe_forward(user_indices, item_indices, params,
                       domain_idc=domain_idc, tb=128)
    out = jax.block_until_ready(out)

    ref = mmoe_reference(user_indices, item_indices, params, domain_idc)
    assert out.shape == (batch, 1)
    max_err = float(jnp.max(jnp.abs(out - ref)))
    assert jnp.allclose(out, ref, atol=5e-3, rtol=5e-3), f"max abs err {max_err}"

    print("KERNEL_OK")
</pallas_src>

<mosaic_0001>
module attributes {stable_mosaic.version = 11 : i64} {
  func.func @mmoe_kernel(%arg0: i32, %arg1: memref<128x32xf32, #tpu.memory_space<vmem>>, %arg2: memref<128x32xf32, #tpu.memory_space<vmem>>, %arg3: memref<4x32x64xf32, #tpu.memory_space<vmem>>, %arg4: memref<4x1x64xf32, #tpu.memory_space<vmem>>, %arg5: memref<4x64x32xf32, #tpu.memory_space<vmem>>, %arg6: memref<4x1x32xf32, #tpu.memory_space<vmem>>, %arg7: memref<32x4xf32, #tpu.memory_space<vmem>>, %arg8: memref<1x4xf32, #tpu.memory_space<vmem>>, %arg9: memref<32x16xf32, #tpu.memory_space<vmem>>, %arg10: memref<1x16xf32, #tpu.memory_space<vmem>>, %arg11: memref<16x8xf32, #tpu.memory_space<vmem>>, %arg12: memref<1x8xf32, #tpu.memory_space<vmem>>, %arg13: memref<4x32x64xf32, #tpu.memory_space<vmem>>, %arg14: memref<4x1x64xf32, #tpu.memory_space<vmem>>, %arg15: memref<4x64x32xf32, #tpu.memory_space<vmem>>, %arg16: memref<4x1x32xf32, #tpu.memory_space<vmem>>, %arg17: memref<32x4xf32, #tpu.memory_space<vmem>>, %arg18: memref<1x4xf32, #tpu.memory_space<vmem>>, %arg19: memref<32x16xf32, #tpu.memory_space<vmem>>, %arg20: memref<1x16xf32, #tpu.memory_space<vmem>>, %arg21: memref<16x8xf32, #tpu.memory_space<vmem>>, %arg22: memref<1x8xf32, #tpu.memory_space<vmem>>, %arg23: memref<128x1xf32, #tpu.memory_space<vmem>>) attributes {dimension_semantics = [#tpu.dimension_semantics<parallel>], iteration_bounds = array<i64: 2>, scalar_prefetch = 0 : i64, scratch_operands = 0 : i64, tpu.core_type = #tpu.core_type<tc>, window_params = [{transform_indices = @transform_0, window_bounds = array<i64: 128, 32>}, {transform_indices = @transform_1, window_bounds = array<i64: 128, 32>}, {pipeline_mode = #tpu.pipeline_mode<synchronous>, transform_indices = @transform_2, window_bounds = array<i64: 4, 32, 64>}, {pipeline_mode = #tpu.pipeline_mode<synchronous>, transform_indices = @transform_3, window_bounds = array<i64: 4, 1, 64>}, {pipeline_mode = #tpu.pipeline_mode<synchronous>, transform_indices = @transform_4, window_bounds = array<i64: 4, 64, 32>}, {pipeline_mode = #tpu.pipeline_mode<synchronous>, transform_indices = @transform_5, window_bounds = array<i64: 4, 1, 32>}, {pipeline_mode = #tpu.pipeline_mode<synchronous>, transform_indices = @transform_6, window_bounds = array<i64: 32, 4>}, {pipeline_mode = #tpu.pipeline_mode<synchronous>, transform_indices = @transform_7, window_bounds = array<i64: 1, 4>}, {pipeline_mode = #tpu.pipeline_mode<synchronous>, transform_indices = @transform_8, window_bounds = array<i64: 32, 16>}, {pipeline_mode = #tpu.pipeline_mode<synchronous>, transform_indices = @transform_9, window_bounds = array<i64: 1, 16>}, {pipeline_mode = #tpu.pipeline_mode<synchronous>, transform_indices = @transform_10, window_bounds = array<i64: 16, 8>}, {pipeline_mode = #tpu.pipeline_mode<synchronous>, transform_indices = @transform_11, window_bounds = array<i64: 1, 8>}, {pipeline_mode = #tpu.pipeline_mode<synchronous>, transform_indices = @transform_12, window_bounds = array<i64: 4, 32, 64>}, {pipeline_mode = #tpu.pipeline_mode<synchronous>, transform_indices = @transform_13, window_bounds = array<i64: 4, 1, 64>}, {pipeline_mode = #tpu.pipeline_mode<synchronous>, transform_indices = @transform_14, window_bounds = array<i64: 4, 64, 32>}, {pipeline_mode = #tpu.pipeline_mode<synchronous>, transform_indices = @transform_15, window_bounds = array<i64: 4, 1, 32>}, {pipeline_mode = #tpu.pipeline_mode<synchronous>, transform_indices = @transform_16, window_bounds = array<i64: 32, 4>}, {pipeline_mode = #tpu.pipeline_mode<synchronous>, transform_indices = @transform_17, window_bounds = array<i64: 1, 4>}, {pipeline_mode = #tpu.pipeline_mode<synchronous>, transform_indices = @transform_18, window_bounds = array<i64: 32, 16>}, {pipeline_mode = #tpu.pipeline_mode<synchronous>, transform_indices = @transform_19, window_bounds = array<i64: 1, 16>}, {pipeline_mode = #tpu.pipeline_mode<synchronous>, transform_indices = @transform_20, window_bounds = array<i64: 16, 8>}, {pipeline_mode = #tpu.pipeline_mode<synchronous>, transform_indices = @transform_21, window_bounds = array<i64: 1, 8>}, {transform_indices = @transform_22, window_bounds = array<i64: 128, 1>}]} {
    %c0 = arith.constant 0 : index
    %c0_0 = arith.constant 0 : index
    %0 = vector.load %arg1[%c0, %c0_0] : memref<128x32xf32, #tpu.memory_space<vmem>>, vector<128x32xf32>
    %c0_1 = arith.constant 0 : index
    %c0_2 = arith.constant 0 : index
    %1 = vector.load %arg7[%c0_1, %c0_2] : memref<32x4xf32, #tpu.memory_space<vmem>>, vector<32x4xf32>
    %cst = arith.constant dense<0.000000e+00> : vector<128x4xf32>
    %2 = tpu.matmul %0, %1, %cst {dimension_numbers = #tpu.dot_dimension_numbers<[1], [0], [0], [1], [0, 0, 1, 1], [], []>} : vector<128x32xf32>, vector<32x4xf32>, vector<128x4xf32> -> vector<128x4xf32>
    %c0_3 = arith.constant 0 : index
    %c0_4 = arith.constant 0 : index
    %3 = vector.load %arg8[%c0_3, %c0_4] : memref<1x4xf32, #tpu.memory_space<vmem>>, vector<1x4xf32>
    %4 = vector.broadcast %3 : vector<1x4xf32> to vector<128x4xf32>
    %5 = arith.addf %2, %4 : vector<128x4xf32>
    %cst_5 = arith.constant dense<0xFF800000> : vector<128xf32>
    %6 = vector.multi_reduction <maximumf>, %5, %cst_5 [1] : vector<128x4xf32> to vector<128xf32>
    %cst_6 = arith.constant 0xFF800000 : f32
    %7 = vector.broadcast %cst_6 : f32 to vector<128xf32>
    %8 = arith.maximumf %7, %6 : vector<128xf32>
    %9 = vector.shape_cast %8 : vector<128xf32> to vector<128x1xf32>
    %10 = vector.broadcast %9 : vector<128x1xf32> to vector<128x4xf32>
    %11 = arith.subf %5, %10 : vector<128x4xf32>
    %12 = math.exp %11 : vector<128x4xf32>
    %cst_7 = arith.constant dense<0.000000e+00> : vector<128xf32>
    %13 = vector.multi_reduction <add>, %12, %cst_7 [1] : vector<128x4xf32> to vector<128xf32>
    %14 = vector.shape_cast %13 : vector<128xf32> to vector<128x1xf32>
    %15 = vector.broadcast %14 : vector<128x1xf32> to vector<128x4xf32>
    %16 = arith.divf %12, %15 : vector<128x4xf32>
    %cst_8 = arith.constant 0.000000e+00 : f32
    %17 = vector.broadcast %cst_8 : f32 to vector<128x32xf32>
    %c0_9 = arith.constant 0 : index
    %c0_10 = arith.constant 0 : index
    %c0_11 = arith.constant 0 : index
    %18 = vector.load %arg3[%c0_9, %c0_10, %c0_11] : memref<4x32x64xf32, #tpu.memory_space<vmem>>, vector<1x32x64xf32>
    %19 = vector.shape_cast %18 : vector<1x32x64xf32> to vector<32x64xf32>
    %cst_12 = arith.constant dense<0.000000e+00> : vector<128x64xf32>
    %20 = tpu.matmul %0, %19, %cst_12 {dimension_numbers = #tpu.dot_dimension_numbers<[1], [0], [0], [1], [0, 0, 1, 1], [], []>} : vector<128x32xf32>, vector<32x64xf32>, vector<128x64xf32> -> vector<128x64xf32>
    %c0_13 = arith.constant 0 : index
    %c0_14 = arith.constant 0 : index
    %c0_15 = arith.constant 0 : index
    %21 = vector.load %arg4[%c0_13, %c0_14, %c0_15] : memref<4x1x64xf32, #tpu.memory_space<vmem>>, vector<1x1x64xf32>
    %22 = vector.shape_cast %21 : vector<1x1x64xf32> to vector<1x64xf32>
    %23 = vector.broadcast %22 : vector<1x64xf32> to vector<128x64xf32>
    %24 = arith.addf %20, %23 : vector<128x64xf32>
    %cst_16 = arith.constant 0.000000e+00 : f32
    %25 = vector.broadcast %cst_16 : f32 to vector<128x64xf32>
    %26 = arith.maximumf %24, %25 : vector<128x64xf32>
    %c0_17 = arith.constant 0 : index
    %c0_18 = arith.constant 0 : index
    %c0_19 = arith.constant 0 : index
    %27 = vector.load %arg5[%c0_17, %c0_18, %c0_19] : memref<4x64x32xf32, #tpu.memory_space<vmem>>, vector<1x64x32xf32>
    %28 = vector.shape_cast %27 : vector<1x64x32xf32> to vector<64x32xf32>
    %cst_20 = arith.constant dense<0.000000e+00> : vector<128x32xf32>
    %29 = tpu.matmul %26, %28, %cst_20 {dimension_numbers = #tpu.dot_dimension_numbers<[1], [0], [0], [1], [0, 0, 1, 1], [], []>} : vector<128x64xf32>, vector<64x32xf32>, vector<128x32xf32> -> vector<128x32xf32>
    %c0_21 = arith.constant 0 : index
    %c0_22 = arith.constant 0 : index
    %c0_23 = arith.constant 0 : index
    %30 = vector.load %arg6[%c0_21, %c0_22, %c0_23] : memref<4x1x32xf32, #tpu.memory_space<vmem>>, vector<1x1x32xf32>
    %31 = vector.shape_cast %30 : vector<1x1x32xf32> to vector<1x32xf32>
    %32 = vector.broadcast %31 : vector<1x32xf32> to vector<128x32xf32>
    %33 = arith.addf %29, %32 : vector<128x32xf32>
    %cst_24 = arith.constant 0.000000e+00 : f32
    %34 = vector.broadcast %cst_24 : f32 to vector<128x32xf32>
    %35 = arith.maximumf %33, %34 : vector<128x32xf32>
    %36 = vector.extract_strided_slice %16 {offsets = [0, 0], sizes = [128, 1], strides = [1, 1]} : vector<128x4xf32> to vector<128x1xf32>
    %37 = vector.broadcast %36 : vector<128x1xf32> to vector<128x32xf32>
    %38 = arith.mulf %37, %35 : vector<128x32xf32>
    %39 = arith.addf %17, %38 : vector<128x32xf32>
    %c1 = arith.constant 1 : index
    %c0_25 = arith.constant 0 : index
    %c0_26 = arith.constant 0 : index
    %40 = vector.load %arg3[%c1, %c0_25, %c0_26] : memref<4x32x64xf32, #tpu.memory_space<vmem>>, vector<1x32x64xf32>
    %41 = vector.shape_cast %40 : vector<1x32x64xf32> to vector<32x64xf32>
    %cst_27 = arith.constant dense<0.000000e+00> : vector<128x64xf32>
    %42 = tpu.matmul %0, %41, %cst_27 {dimension_numbers = #tpu.dot_dimension_numbers<[1], [0], [0], [1], [0, 0, 1, 1], [], []>} : vector<128x32xf32>, vector<32x64xf32>, vector<128x64xf32> -> vector<128x64xf32>
    %c1_28 = arith.constant 1 : index
    %c0_29 = arith.constant 0 : index
    %c0_30 = arith.constant 0 : index
    %43 = vector.load %arg4[%c1_28, %c0_29, %c0_30] : memref<4x1x64xf32, #tpu.memory_space<vmem>>, vector<1x1x64xf32>
    %44 = vector.shape_cast %43 : vector<1x1x64xf32> to vector<1x64xf32>
    %45 = vector.broadcast %44 : vector<1x64xf32> to vector<128x64xf32>
    %46 = arith.addf %42, %45 : vector<128x64xf32>
    %cst_31 = arith.constant 0.000000e+00 : f32
    %47 = vector.broadcast %cst_31 : f32 to vector<128x64xf32>
    %48 = arith.maximumf %46, %47 : vector<128x64xf32>
    %c1_32 = arith.constant 1 : index
    %c0_33 = arith.constant 0 : index
    %c0_34 = arith.constant 0 : index
    %49 = vector.load %arg5[%c1_32, %c0_33, %c0_34] : memref<4x64x32xf32, #tpu.memory_space<vmem>>, vector<1x64x32xf32>
    %50 = vector.shape_cast %49 : vector<1x64x32xf32> to vector<64x32xf32>
    %cst_35 = arith.constant dense<0.000000e+00> : vector<128x32xf32>
    %51 = tpu.matmul %48, %50, %cst_35 {dimension_numbers = #tpu.dot_dimension_numbers<[1], [0], [0], [1], [0, 0, 1, 1], [], []>} : vector<128x64xf32>, vector<64x32xf32>, vector<128x32xf32> -> vector<128x32xf32>
    %c1_36 = arith.constant 1 : index
    %c0_37 = arith.constant 0 : index
    %c0_38 = arith.constant 0 : index
    %52 = vector.load %arg6[%c1_36, %c0_37, %c0_38] : memref<4x1x32xf32, #tpu.memory_space<vmem>>, vector<1x1x32xf32>
    %53 = vector.shape_cast %52 : vector<1x1x32xf32> to vector<1x32xf32>
    %54 = vector.broadcast %53 : vector<1x32xf32> to vector<128x32xf32>
    %55 = arith.addf %51, %54 : vector<128x32xf32>
    %cst_39 = arith.constant 0.000000e+00 : f32
    %56 = vector.broadcast %cst_39 : f32 to vector<128x32xf32>
    %57 = arith.maximumf %55, %56 : vector<128x32xf32>
    %58 = vector.extract_strided_slice %16 {offsets = [0, 1], sizes = [128, 1], strides = [1, 1]} : vector<128x4xf32> to vector<128x1xf32>
    %59 = vector.broadcast %58 : vector<128x1xf32> to vector<128x32xf32>
    %60 = arith.mulf %59, %57 : vector<128x32xf32>
    %61 = arith.addf %39, %60 : vector<128x32xf32>
    %c2 = arith.constant 2 : index
    %c0_40 = arith.constant 0 : index
    %c0_41 = arith.constant 0 : index
    %62 = vector.load %arg3[%c2, %c0_40, %c0_41] : memref<4x32x64xf32, #tpu.memory_space<vmem>>, vector<1x32x64xf32>
    %63 = vector.shape_cast %62 : vector<1x32x64xf32> to vector<32x64xf32>
    %cst_42 = arith.constant dense<0.000000e+00> : vector<128x64xf32>
    %64 = tpu.matmul %0, %63, %cst_42 {dimension_numbers = #tpu.dot_dimension_numbers<[1], [0], [0], [1], [0, 0, 1, 1], [], []>} : vector<128x32xf32>, vector<32x64xf32>, vector<128x64xf32> -> vector<128x64xf32>
    %c2_43 = arith.constant 2 : index
    %c0_44 = arith.constant 0 : index
    %c0_45 = arith.constant 0 : index
    %65 = vector.load %arg4[%c2_43, %c0_44, %c0_45] : memref<4x1x64xf32, #tpu.memory_space<vmem>>, vector<1x1x64xf32>
    %66 = vector.shape_cast %65 : vector<1x1x64xf32> to vector<1x64xf32>
    %67 = vector.broadcast %66 : vector<1x64xf32> to vector<128x64xf32>
    %68 = arith.addf %64, %67 : vector<128x64xf32>
    %cst_46 = arith.constant 0.000000e+00 : f32
    %69 = vector.broadcast %cst_46 : f32 to vector<128x64xf32>
    %70 = arith.maximumf %68, %69 : vector<128x64xf32>
    %c2_47 = arith.constant 2 : index
    %c0_48 = arith.constant 0 : index
    %c0_49 = arith.constant 0 : index
    %71 = vector.load %arg5[%c2_47, %c0_48, %c0_49] : memref<4x64x32xf32, #tpu.memory_space<vmem>>, vector<1x64x32xf32>
    %72 = vector.shape_cast %71 : vector<1x64x32xf32> to vector<64x32xf32>
    %cst_50 = arith.constant dense<0.000000e+00> : vector<128x32xf32>
    %73 = tpu.matmul %70, %72, %cst_50 {dimension_numbers = #tpu.dot_dimension_numbers<[1], [0], [0], [1], [0, 0, 1, 1], [], []>} : vector<128x64xf32>, vector<64x32xf32>, vector<128x32xf32> -> vector<128x32xf32>
    %c2_51 = arith.constant 2 : index
    %c0_52 = arith.constant 0 : index
    %c0_53 = arith.constant 0 : index
    %74 = vector.load %arg6[%c2_51, %c0_52, %c0_53] : memref<4x1x32xf32, #tpu.memory_space<vmem>>, vector<1x1x32xf32>
    %75 = vector.shape_cast %74 : vector<1x1x32xf32> to vector<1x32xf32>
    %76 = vector.broadcast %75 : vector<1x32xf32> to vector<128x32xf32>
    %77 = arith.addf %73, %76 : vector<128x32xf32>
    %cst_54 = arith.constant 0.000000e+00 : f32
    %78 = vector.broadcast %cst_54 : f32 to vector<128x32xf32>
    %79 = arith.maximumf %77, %78 : vector<128x32xf32>
    %80 = vector.extract_strided_slice %16 {offsets = [0, 2], sizes = [128, 1], strides = [1, 1]} : vector<128x4xf32> to vector<128x1xf32>
    %81 = vector.broadcast %80 : vector<128x1xf32> to vector<128x32xf32>
    %82 = arith.mulf %81, %79 : vector<128x32xf32>
    %83 = arith.addf %61, %82 : vector<128x32xf32>
    %c3 = arith.constant 3 : index
    %c0_55 = arith.constant 0 : index
    %c0_56 = arith.constant 0 : index
    %84 = vector.load %arg3[%c3, %c0_55, %c0_56] : memref<4x32x64xf32, #tpu.memory_space<vmem>>, vector<1x32x64xf32>
    %85 = vector.shape_cast %84 : vector<1x32x64xf32> to vector<32x64xf32>
    %cst_57 = arith.constant dense<0.000000e+00> : vector<128x64xf32>
    %86 = tpu.matmul %0, %85, %cst_57 {dimension_numbers = #tpu.dot_dimension_numbers<[1], [0], [0], [1], [0, 0, 1, 1], [], []>} : vector<128x32xf32>, vector<32x64xf32>, vector<128x64xf32> -> vector<128x64xf32>
    %c3_58 = arith.constant 3 : index
    %c0_59 = arith.constant 0 : index
    %c0_60 = arith.constant 0 : index
    %87 = vector.load %arg4[%c3_58, %c0_59, %c0_60] : memref<4x1x64xf32, #tpu.memory_space<vmem>>, vector<1x1x64xf32>
    %88 = vector.shape_cast %87 : vector<1x1x64xf32> to vector<1x64xf32>
    %89 = vector.broadcast %88 : vector<1x64xf32> to vector<128x64xf32>
    %90 = arith.addf %86, %89 : vector<128x64xf32>
    %cst_61 = arith.constant 0.000000e+00 : f32
    %91 = vector.broadcast %cst_61 : f32 to vector<128x64xf32>
    %92 = arith.maximumf %90, %91 : vector<128x64xf32>
    %c3_62 = arith.constant 3 : index
    %c0_63 = arith.constant 0 : index
    %c0_64 = arith.constant 0 : index
    %93 = vector.load %arg5[%c3_62, %c0_63, %c0_64] : memref<4x64x32xf32, #tpu.memory_space<vmem>>, vector<1x64x32xf32>
    %94 = vector.shape_cast %93 : vector<1x64x32xf32> to vector<64x32xf32>
    %cst_65 = arith.constant dense<0.000000e+00> : vector<128x32xf32>
    %95 = tpu.matmul %92, %94, %cst_65 {dimension_numbers = #tpu.dot_dimension_numbers<[1], [0], [0], [1], [0, 0, 1, 1], [], []>} : vector<128x64xf32>, vector<64x32xf32>, vector<128x32xf32> -> vector<128x32xf32>
    %c3_66 = arith.constant 3 : index
    %c0_67 = arith.constant 0 : index
    %c0_68 = arith.constant 0 : index
    %96 = vector.load %arg6[%c3_66, %c0_67, %c0_68] : memref<4x1x32xf32, #tpu.memory_space<vmem>>, vector<1x1x32xf32>
    %97 = vector.shape_cast %96 : vector<1x1x32xf32> to vector<1x32xf32>
    %98 = vector.broadcast %97 : vector<1x32xf32> to vector<128x32xf32>
    %99 = arith.addf %95, %98 : vector<128x32xf32>
    %cst_69 = arith.constant 0.000000e+00 : f32
    %100 = vector.broadcast %cst_69 : f32 to vector<128x32xf32>
    %101 = arith.maximumf %99, %100 : vector<128x32xf32>
    %102 = vector.extract_strided_slice %16 {offsets = [0, 3], sizes = [128, 1], strides = [1, 1]} : vector<128x4xf32> to vector<128x1xf32>
    %103 = vector.broadcast %102 : vector<128x1xf32> to vector<128x32xf32>
    %104 = arith.mulf %103, %101 : vector<128x32xf32>
    %105 = arith.addf %83, %104 : vector<128x32xf32>
    %c0_70 = arith.constant 0 : index
    %c0_71 = arith.constant 0 : index
    %106 = vector.load %arg9[%c0_70, %c0_71] : memref<32x16xf32, #tpu.memory_space<vmem>>, vector<32x16xf32>
    %cst_72 = arith.constant dense<0.000000e+00> : vector<128x16xf32>
    %107 = tpu.matmul %105, %106, %cst_72 {dimension_numbers = #tpu.dot_dimension_numbers<[1], [0], [0], [1], [0, 0, 1, 1], [], []>} : vector<128x32xf32>, vector<32x16xf32>, vector<128x16xf32> -> vector<128x16xf32>
    %c0_73 = arith.constant 0 : index
    %c0_74 = arith.constant 0 : index
    %108 = vector.load %arg10[%c0_73, %c0_74] : memref<1x16xf32, #tpu.memory_space<vmem>>, vector<1x16xf32>
    %109 = vector.broadcast %108 : vector<1x16xf32> to vector<128x16xf32>
    %110 = arith.addf %107, %109 : vector<128x16xf32>
    %cst_75 = arith.constant 0.000000e+00 : f32
    %111 = vector.broadcast %cst_75 : f32 to vector<128x16xf32>
    %112 = arith.maximumf %110, %111 : vector<128x16xf32>
    %c0_76 = arith.constant 0 : index
    %c0_77 = arith.constant 0 : index
    %113 = vector.load %arg11[%c0_76, %c0_77] : memref<16x8xf32, #tpu.memory_space<vmem>>, vector<16x8xf32>
    %cst_78 = arith.constant dense<0.000000e+00> : vector<128x8xf32>
    %114 = tpu.matmul %112, %113, %cst_78 {dimension_numbers = #tpu.dot_dimension_numbers<[1], [0], [0], [1], [0, 0, 1, 1], [], []>} : vector<128x16xf32>, vector<16x8xf32>, vector<128x8xf32> -> vector<128x8xf32>
    %c0_79 = arith.constant 0 : index
    %c0_80 = arith.constant 0 : index
    %115 = vector.load %arg12[%c0_79, %c0_80] : memref<1x8xf32, #tpu.memory_space<vmem>>, vector<1x8xf32>
    %116 = vector.broadcast %115 : vector<1x8xf32> to vector<128x8xf32>
    %117 = arith.addf %114, %116 : vector<128x8xf32>
    %cst_81 = arith.constant 0.000000e+00 : f32
    %118 = vector.broadcast %cst_81 : f32 to vector<128x8xf32>
    %119 = arith.maximumf %117, %118 : vector<128x8xf32>
    %c0_82 = arith.constant 0 : index
    %c0_83 = arith.constant 0 : index
    %120 = vector.load %arg2[%c0_82, %c0_83] : memref<128x32xf32, #tpu.memory_space<vmem>>, vector<128x32xf32>
    %c0_84 = arith.constant 0 : index
    %c0_85 = arith.constant 0 : index
    %121 = vector.load %arg17[%c0_84, %c0_85] : memref<32x4xf32, #tpu.memory_space<vmem>>, vector<32x4xf32>
    %cst_86 = arith.constant dense<0.000000e+00> : vector<128x4xf32>
    %122 = tpu.matmul %120, %121, %cst_86 {dimension_numbers = #tpu.dot_dimension_numbers<[1], [0], [0], [1], [0, 0, 1, 1], [], []>} : vector<128x32xf32>, vector<32x4xf32>, vector<128x4xf32> -> vector<128x4xf32>
    %c0_87 = arith.constant 0 : index
    %c0_88 = arith.constant 0 : index
    %123 = vector.load %arg18[%c0_87, %c0_88] : memref<1x4xf32, #tpu.memory_space<vmem>>, vector<1x4xf32>
    %124 = vector.broadcast %123 : vector<1x4xf32> to vector<128x4xf32>
    %125 = arith.addf %122, %124 : vector<128x4xf32>
    %cst_89 = arith.constant dense<0xFF800000> : vector<128xf32>
    %126 = vector.multi_reduction <maximumf>, %125, %cst_89 [1] : vector<128x4xf32> to vector<128xf32>
    %cst_90 = arith.constant 0xFF800000 : f32
    %127 = vector.broadcast %cst_90 : f32 to vector<128xf32>
    %128 = arith.maximumf %127, %126 : vector<128xf32>
    %129 = vector.shape_cast %128 : vector<128xf32> to vector<128x1xf32>
    %130 = vector.broadcast %129 : vector<128x1xf32> to vector<128x4xf32>
    %131 = arith.subf %125, %130 : vector<128x4xf32>
    %132 = math.exp %131 : vector<128x4xf32>
    %cst_91 = arith.constant dense<0.000000e+00> : vector<128xf32>
    %133 = vector.multi_reduction <add>, %132, %cst_91 [1] : vector<128x4xf32> to vector<128xf32>
    %134 = vector.shape_cast %133 : vector<128xf32> to vector<128x1xf32>
    %135 = vector.broadcast %134 : vector<128x1xf32> to vector<128x4xf32>
    %136 = arith.divf %132, %135 : vector<128x4xf32>
    %cst_92 = arith.constant 0.000000e+00 : f32
    %137 = vector.broadcast %cst_92 : f32 to vector<128x32xf32>
    %c0_93 = arith.constant 0 : index
    %c0_94 = arith.constant 0 : index
    %c0_95 = arith.constant 0 : index
    %138 = vector.load %arg13[%c0_93, %c0_94, %c0_95] : memref<4x32x64xf32, #tpu.memory_space<vmem>>, vector<1x32x64xf32>
    %139 = vector.shape_cast %138 : vector<1x32x64xf32> to vector<32x64xf32>
    %cst_96 = arith.constant dense<0.000000e+00> : vector<128x64xf32>
    %140 = tpu.matmul %120, %139, %cst_96 {dimension_numbers = #tpu.dot_dimension_numbers<[1], [0], [0], [1], [0, 0, 1, 1], [], []>} : vector<128x32xf32>, vector<32x64xf32>, vector<128x64xf32> -> vector<128x64xf32>
    %c0_97 = arith.constant 0 : index
    %c0_98 = arith.constant 0 : index
    %c0_99 = arith.constant 0 : index
    %141 = vector.load %arg14[%c0_97, %c0_98, %c0_99] : memref<4x1x64xf32, #tpu.memory_space<vmem>>, vector<1x1x64xf32>
    %142 = vector.shape_cast %141 : vector<1x1x64xf32> to vector<1x64xf32>
    %143 = vector.broadcast %142 : vector<1x64xf32> to vector<128x64xf32>
    %144 = arith.addf %140, %143 : vector<128x64xf32>
    %cst_100 = arith.constant 0.000000e+00 : f32
    %145 = vector.broadcast %cst_100 : f32 to vector<128x64xf32>
    %146 = arith.maximumf %144, %145 : vector<128x64xf32>
    %c0_101 = arith.constant 0 : index
    %c0_102 = arith.constant 0 : index
    %c0_103 = arith.constant 0 : index
    %147 = vector.load %arg15[%c0_101, %c0_102, %c0_103] : memref<4x64x32xf32, #tpu.memory_space<vmem>>, vector<1x64x32xf32>
    %148 = vector.shape_cast %147 : vector<1x64x32xf32> to vector<64x32xf32>
    %cst_104 = arith.constant dense<0.000000e+00> : vector<128x32xf32>
    %149 = tpu.matmul %146, %148, %cst_104 {dimension_numbers = #tpu.dot_dimension_numbers<[1], [0], [0], [1], [0, 0, 1, 1], [], []>} : vector<128x64xf32>, vector<64x32xf32>, vector<128x32xf32> -> vector<128x32xf32>
    %c0_105 = arith.constant 0 : index
    %c0_106 = arith.constant 0 : index
    %c0_107 = arith.constant 0 : index
    %150 = vector.load %arg16[%c0_105, %c0_106, %c0_107] : memref<4x1x32xf32, #tpu.memory_space<vmem>>, vector<1x1x32xf32>
    %151 = vector.shape_cast %150 : vector<1x1x32xf32> to vector<1x32xf32>
    %152 = vector.broadcast %151 : vector<1x32xf32> to vector<128x32xf32>
    %153 = arith.addf %149, %152 : vector<128x32xf32>
    %cst_108 = arith.constant 0.000000e+00 : f32
    %154 = vector.broadcast %cst_108 : f32 to vector<128x32xf32>
    %155 = arith.maximumf %153, %154 : vector<128x32xf32>
    %156 = vector.extract_strided_slice %136 {offsets = [0, 0], sizes = [128, 1], strides = [1, 1]} : vector<128x4xf32> to vector<128x1xf32>
    %157 = vector.broadcast %156 : vector<128x1xf32> to vector<128x32xf32>
    %158 = arith.mulf %157, %155 : vector<128x32xf32>
    %159 = arith.addf %137, %158 : vector<128x32xf32>
    %c1_109 = arith.constant 1 : index
    %c0_110 = arith.constant 0 : index
    %c0_111 = arith.constant 0 : index
    %160 = vector.load %arg13[%c1_109, %c0_110, %c0_111] : memref<4x32x64xf32, #tpu.memory_space<vmem>>, vector<1x32x64xf32>
    %161 = vector.shape_cast %160 : vector<1x32x64xf32> to vector<32x64xf32>
    %cst_112 = arith.constant dense<0.000000e+00> : vector<128x64xf32>
    %162 = tpu.matmul %120, %161, %cst_112 {dimension_numbers = #tpu.dot_dimension_numbers<[1], [0], [0], [1], [0, 0, 1, 1], [], []>} : vector<128x32xf32>, vector<32x64xf32>, vector<128x64xf32> -> vector<128x64xf32>
    %c1_113 = arith.constant 1 : index
    %c0_114 = arith.constant 0 : index
    %c0_115 = arith.constant 0 : index
    %163 = vector.load %arg14[%c1_113, %c0_114, %c0_115] : memref<4x1x64xf32, #tpu.memory_space<vmem>>, vector<1x1x64xf32>
    %164 = vector.shape_cast %163 : vector<1x1x64xf32> to vector<1x64xf32>
    %165 = vector.broadcast %164 : vector<1x64xf32> to vector<128x64xf32>
    %166 = arith.addf %162, %165 : vector<128x64xf32>
    %cst_116 = arith.constant 0.000000e+00 : f32
    %167 = vector.broadcast %cst_116 : f32 to vector<128x64xf32>
    %168 = arith.maximumf %166, %167 : vector<128x64xf32>
    %c1_117 = arith.constant 1 : index
    %c0_118 = arith.constant 0 : index
    %c0_119 = arith.constant 0 : index
    %169 = vector.load %arg15[%c1_117, %c0_118, %c0_119] : memref<4x64x32xf32, #tpu.memory_space<vmem>>, vector<1x64x32xf32>
    %170 = vector.shape_cast %169 : vector<1x64x32xf32> to vector<64x32xf32>
    %cst_120 = arith.constant dense<0.000000e+00> : vector<128x32xf32>
    %171 = tpu.matmul %168, %170, %cst_120 {dimension_numbers = #tpu.dot_dimension_numbers<[1], [0], [0], [1], [0, 0, 1, 1], [], []>} : vector<128x64xf32>, vector<64x32xf32>, vector<128x32xf32> -> vector<128x32xf32>
    %c1_121 = arith.constant 1 : index
    %c0_122 = arith.constant 0 : index
    %c0_123 = arith.constant 0 : index
    %172 = vector.load %arg16[%c1_121, %c0_122, %c0_123] : memref<4x1x32xf32, #tpu.memory_space<vmem>>, vector<1x1x32xf32>
    %173 = vector.shape_cast %172 : vector<1x1x32xf32> to vector<1x32xf32>
    %174 = vector.broadcast %173 : vector<1x32xf32> to vector<128x32xf32>
    %175 = arith.addf %171, %174 : vector<128x32xf32>
    %cst_124 = arith.constant 0.000000e+00 : f32
    %176 = vector.broadcast %cst_124 : f32 to vector<128x32xf32>
    %177 = arith.maximumf %175, %176 : vector<128x32xf32>
    %178 = vector.extract_strided_slice %136 {offsets = [0, 1], sizes = [128, 1], strides = [1, 1]} : vector<128x4xf32> to vector<128x1xf32>
    %179 = vector.broadcast %178 : vector<128x1xf32> to vector<128x32xf32>
    %180 = arith.mulf %179, %177 : vector<128x32xf32>
    %181 = arith.addf %159, %180 : vector<128x32xf32>
    %c2_125 = arith.constant 2 : index
    %c0_126 = arith.constant 0 : index
    %c0_127 = arith.constant 0 : index
    %182 = vector.load %arg13[%c2_125, %c0_126, %c0_127] : memref<4x32x64xf32, #tpu.memory_space<vmem>>, vector<1x32x64xf32>
    %183 = vector.shape_cast %182 : vector<1x32x64xf32> to vector<32x64xf32>
    %cst_128 = arith.constant dense<0.000000e+00> : vector<128x64xf32>
    %184 = tpu.matmul %120, %183, %cst_128 {dimension_numbers = #tpu.dot_dimension_numbers<[1], [0], [0], [1], [0, 0, 1, 1], [], []>} : vector<128x32xf32>, vector<32x64xf32>, vector<128x64xf32> -> vector<128x64xf32>
    %c2_129 = arith.constant 2 : index
    %c0_130 = arith.constant 0 : index
    %c0_131 = arith.constant 0 : index
    %185 = vector.load %arg14[%c2_129, %c0_130, %c0_131] : memref<4x1x64xf32, #tpu.memory_space<vmem>>, vector<1x1x64xf32>
    %186 = vector.shape_cast %185 : vector<1x1x64xf32> to vector<1x64xf32>
    %187 = vector.broadcast %186 : vector<1x64xf32> to vector<128x64xf32>
    %188 = arith.addf %184, %187 : vector<128x64xf32>
    %cst_132 = arith.constant 0.000000e+00 : f32
    %189 = vector.broadcast %cst_132 : f32 to vector<128x64xf32>
    %190 = arith.maximumf %188, %189 : vector<128x64xf32>
    %c2_133 = arith.constant 2 : index
    %c0_134 = arith.constant 0 : index
    %c0_135 = arith.constant 0 : index
    %191 = vector.load %arg15[%c2_133, %c0_134, %c0_135] : memref<4x64x32xf32, #tpu.memory_space<vmem>>, vector<1x64x32xf32>
    %192 = vector.shape_cast %191 : vector<1x64x32xf32> to vector<64x32xf32>
    %cst_136 = arith.constant dense<0.000000e+00> : vector<128x32xf32>
    %193 = tpu.matmul %190, %192, %cst_136 {dimension_numbers = #tpu.dot_dimension_numbers<[1], [0], [0], [1], [0, 0, 1, 1], [], []>} : vector<128x64xf32>, vector<64x32xf32>, vector<128x32xf32> -> vector<128x32xf32>
    %c2_137 = arith.constant 2 : index
    %c0_138 = arith.constant 0 : index
    %c0_139 = arith.constant 0 : index
    %194 = vector.load %arg16[%c2_137, %c0_138, %c0_139] : memref<4x1x32xf32, #tpu.memory_space<vmem>>, vector<1x1x32xf32>
    %195 = vector.shape_cast %194 : vector<1x1x32xf32> to vector<1x32xf32>
    %196 = vector.broadcast %195 : vector<1x32xf32> to vector<128x32xf32>
    %197 = arith.addf %193, %196 : vector<128x32xf32>
    %cst_140 = arith.constant 0.000000e+00 : f32
    %198 = vector.broadcast %cst_140 : f32 to vector<128x32xf32>
    %199 = arith.maximumf %197, %198 : vector<128x32xf32>
    %200 = vector.extract_strided_slice %136 {offsets = [0, 2], sizes = [128, 1], strides = [1, 1]} : vector<128x4xf32> to vector<128x1xf32>
    %201 = vector.broadcast %200 : vector<128x1xf32> to vector<128x32xf32>
    %202 = arith.mulf %201, %199 : vector<128x32xf32>
    %203 = arith.addf %181, %202 : vector<128x32xf32>
    %c3_141 = arith.constant 3 : index
    %c0_142 = arith.constant 0 : index
    %c0_143 = arith.constant 0 : index
    %204 = vector.load %arg13[%c3_141, %c0_142, %c0_143] : memref<4x32x64xf32, #tpu.memory_space<vmem>>, vector<1x32x64xf32>
    %205 = vector.shape_cast %204 : vector<1x32x64xf32> to vector<32x64xf32>
    %cst_144 = arith.constant dense<0.000000e+00> : vector<128x64xf32>
    %206 = tpu.matmul %120, %205, %cst_144 {dimension_numbers = #tpu.dot_dimension_numbers<[1], [0], [0], [1], [0, 0, 1, 1], [], []>} : vector<128x32xf32>, vector<32x64xf32>, vector<128x64xf32> -> vector<128x64xf32>
    %c3_145 = arith.constant 3 : index
    %c0_146 = arith.constant 0 : index
    %c0_147 = arith.constant 0 : index
    %207 = vector.load %arg14[%c3_145, %c0_146, %c0_147] : memref<4x1x64xf32, #tpu.memory_space<vmem>>, vector<1x1x64xf32>
    %208 = vector.shape_cast %207 : vector<1x1x64xf32> to vector<1x64xf32>
    %209 = vector.broadcast %208 : vector<1x64xf32> to vector<128x64xf32>
    %210 = arith.addf %206, %209 : vector<128x64xf32>
    %cst_148 = arith.constant 0.000000e+00 : f32
    %211 = vector.broadcast %cst_148 : f32 to vector<128x64xf32>
    %212 = arith.maximumf %210, %211 : vector<128x64xf32>
    %c3_149 = arith.constant 3 : index
    %c0_150 = arith.constant 0 : index
    %c0_151 = arith.constant 0 : index
    %213 = vector.load %arg15[%c3_149, %c0_150, %c0_151] : memref<4x64x32xf32, #tpu.memory_space<vmem>>, vector<1x64x32xf32>
    %214 = vector.shape_cast %213 : vector<1x64x32xf32> to vector<64x32xf32>
    %cst_152 = arith.constant dense<0.000000e+00> : vector<128x32xf32>
    %215 = tpu.matmul %212, %214, %cst_152 {dimension_numbers = #tpu.dot_dimension_numbers<[1], [0], [0], [1], [0, 0, 1, 1], [], []>} : vector<128x64xf32>, vector<64x32xf32>, vector<128x32xf32> -> vector<128x32xf32>
    %c3_153 = arith.constant 3 : index
    %c0_154 = arith.constant 0 : index
    %c0_155 = arith.constant 0 : index
    %216 = vector.load %arg16[%c3_153, %c0_154, %c0_155] : memref<4x1x32xf32, #tpu.memory_space<vmem>>, vector<1x1x32xf32>
    %217 = vector.shape_cast %216 : vector<1x1x32xf32> to vector<1x32xf32>
    %218 = vector.broadcast %217 : vector<1x32xf32> to vector<128x32xf32>
    %219 = arith.addf %215, %218 : vector<128x32xf32>
    %cst_156 = arith.constant 0.000000e+00 : f32
    %220 = vector.broadcast %cst_156 : f32 to vector<128x32xf32>
    %221 = arith.maximumf %219, %220 : vector<128x32xf32>
    %222 = vector.extract_strided_slice %136 {offsets = [0, 3], sizes = [128, 1], strides = [1, 1]} : vector<128x4xf32> to vector<128x1xf32>
    %223 = vector.broadcast %222 : vector<128x1xf32> to vector<128x32xf32>
    %224 = arith.mulf %223, %221 : vector<128x32xf32>
    %225 = arith.addf %203, %224 : vector<128x32xf32>
    %c0_157 = arith.constant 0 : index
    %c0_158 = arith.constant 0 : index
    %226 = vector.load %arg19[%c0_157, %c0_158] : memref<32x16xf32, #tpu.memory_space<vmem>>, vector<32x16xf32>
    %cst_159 = arith.constant dense<0.000000e+00> : vector<128x16xf32>
    %227 = tpu.matmul %225, %226, %cst_159 {dimension_numbers = #tpu.dot_dimension_numbers<[1], [0], [0], [1], [0, 0, 1, 1], [], []>} : vector<128x32xf32>, vector<32x16xf32>, vector<128x16xf32> -> vector<128x16xf32>
    %c0_160 = arith.constant 0 : index
    %c0_161 = arith.constant 0 : index
    %228 = vector.load %arg20[%c0_160, %c0_161] : memref<1x16xf32, #tpu.memory_space<vmem>>, vector<1x16xf32>
    %229 = vector.broadcast %228 : vector<1x16xf32> to vector<128x16xf32>
    %230 = arith.addf %227, %229 : vector<128x16xf32>
    %cst_162 = arith.constant 0.000000e+00 : f32
    %231 = vector.broadcast %cst_162 : f32 to vector<128x16xf32>
    %232 = arith.maximumf %230, %231 : vector<128x16xf32>
    %c0_163 = arith.constant 0 : index
    %c0_164 = arith.constant 0 : index
    %233 = vector.load %arg21[%c0_163, %c0_164] : memref<16x8xf32, #tpu.memory_space<vmem>>, vector<16x8xf32>
    %cst_165 = arith.constant dense<0.000000e+00> : vector<128x8xf32>
    %234 = tpu.matmul %232, %233, %cst_165 {dimension_numbers = #tpu.dot_dimension_numbers<[1], [0], [0], [1], [0, 0, 1, 1], [], []>} : vector<128x16xf32>, vector<16x8xf32>, vector<128x8xf32> -> vector<128x8xf32>
    %c0_166 = arith.constant 0 : index
    %c0_167 = arith.constant 0 : index
    %235 = vector.load %arg22[%c0_166, %c0_167] : memref<1x8xf32, #tpu.memory_space<vmem>>, vector<1x8xf32>
    %236 = vector.broadcast %235 : vector<1x8xf32> to vector<128x8xf32>
    %237 = arith.addf %234, %236 : vector<128x8xf32>
    %cst_168 = arith.constant 0.000000e+00 : f32
    %238 = vector.broadcast %cst_168 : f32 to vector<128x8xf32>
    %239 = arith.maximumf %237, %238 : vector<128x8xf32>
    %240 = arith.mulf %119, %239 : vector<128x8xf32>
    %cst_169 = arith.constant dense<0.000000e+00> : vector<128xf32>
    %241 = vector.multi_reduction <add>, %240, %cst_169 [1] : vector<128x8xf32> to vector<128xf32>
    %242 = vector.shape_cast %241 : vector<128xf32> to vector<128x1xf32>
    %c0_170 = arith.constant 0 : index
    %c0_171 = arith.constant 0 : index
    %243 = vector.load %arg23[%c0_170, %c0_171] : memref<128x1xf32, #tpu.memory_space<vmem>>, vector<128x1xf32>
    tpu.vector_store %arg23[%c0_170, %c0_171], %242 {strides = array<i32>} : memref<128x1xf32, #tpu.memory_space<vmem>>, vector<128x1xf32>,
    return
  }
  func.func @transform_0(%arg0: i32) -> (i32, i32) {
    %c0_i32 = arith.constant 0 : i32
    %c0_i32_0 = arith.constant 0 : i32
    return %arg0, %c0_i32 : i32, i32
  }
  func.func @transform_1(%arg0: i32) -> (i32, i32) {
    %c0_i32 = arith.constant 0 : i32
    %c0_i32_0 = arith.constant 0 : i32
    return %arg0, %c0_i32 : i32, i32
  }
  func.func @transform_2(%arg0: i32) -> (i32, i32, i32) {
    %c0_i32 = arith.constant 0 : i32
    %c0_i32_0 = arith.constant 0 : i32
    %c0_i32_1 = arith.constant 0 : i32
    %c0_i32_2 = arith.constant 0 : i32
    return %c0_i32, %c0_i32_0, %c0_i32_1 : i32, i32, i32
  }
  func.func @transform_3(%arg0: i32) -> (i32, i32, i32) {
    %c0_i32 = arith.constant 0 : i32
    %c0_i32_0 = arith.constant 0 : i32
    %c0_i32_1 = arith.constant 0 : i32
    %c0_i32_2 = arith.constant 0 : i32
    return %c0_i32, %c0_i32_0, %c0_i32_1 : i32, i32, i32
  }
  func.func @transform_4(%arg0: i32) -> (i32, i32, i32) {
    %c0_i32 = arith.constant 0 : i32
    %c0_i32_0 = arith.constant 0 : i32
    %c0_i32_1 = arith.constant 0 : i32
    %c0_i32_2 = arith.constant 0 : i32
    return %c0_i32, %c0_i32_0, %c0_i32_1 : i32, i32, i32
  }
  func.func @transform_5(%arg0: i32) -> (i32, i32, i32) {
    %c0_i32 = arith.constant 0 : i32
    %c0_i32_0 = arith.constant 0 : i32
    %c0_i32_1 = arith.constant 0 : i32
    %c0_i32_2 = arith.constant 0 : i32
    return %c0_i32, %c0_i32_0, %c0_i32_1 : i32, i32, i32
  }
  func.func @transform_6(%arg0: i32) -> (i32, i32) {
    %c0_i32 = arith.constant 0 : i32
    %c0_i32_0 = arith.constant 0 : i32
    %c0_i32_1 = arith.constant 0 : i32
    return %c0_i32, %c0_i32_0 : i32, i32
  }
  func.func @transform_7(%arg0: i32) -> (i32, i32) {
    %c0_i32 = arith.constant 0 : i32
    %c0_i32_0 = arith.constant 0 : i32
    %c0_i32_1 = arith.constant 0 : i32
    return %c0_i32, %c0_i32_0 : i32, i32
  }
  func.func @transform_8(%arg0: i32) -> (i32, i32) {
    %c0_i32 = arith.constant 0 : i32
    %c0_i32_0 = arith.constant 0 : i32
    %c0_i32_1 = arith.constant 0 : i32
    return %c0_i32, %c0_i32_0 : i32, i32
  }
  func.func @transform_9(%arg0: i32) -> (i32, i32) {
    %c0_i32 = arith.constant 0 : i32
    %c0_i32_0 = arith.constant 0 : i32
    %c0_i32_1 = arith.constant 0 : i32
    return %c0_i32, %c0_i32_0 : i32, i32
  }
  func.func @transform_10(%arg0: i32) -> (i32, i32) {
    %c0_i32 = arith.constant 0 : i32
    %c0_i32_0 = arith.constant 0 : i32
    %c0_i32_1 = arith.constant 0 : i32
    return %c0_i32, %c0_i32_0 : i32, i32
  }
  func.func @transform_11(%arg0: i32) -> (i32, i32) {
    %c0_i32 = arith.constant 0 : i32
    %c0_i32_0 = arith.constant 0 : i32
    %c0_i32_1 = arith.constant 0 : i32
    return %c0_i32, %c0_i32_0 : i32, i32
  }
  func.func @transform_12(%arg0: i32) -> (i32, i32, i32) {
    %c0_i32 = arith.constant 0 : i32
    %c0_i32_0 = arith.constant 0 : i32
    %c0_i32_1 = arith.constant 0 : i32
    %c0_i32_2 = arith.constant 0 : i32
    return %c0_i32, %c0_i32_0, %c0_i32_1 : i32, i32, i32
  }
  func.func @transform_13(%arg0: i32) -> (i32, i32, i32) {
    %c0_i32 = arith.constant 0 : i32
    %c0_i32_0 = arith.constant 0 : i32
    %c0_i32_1 = arith.constant 0 : i32
    %c0_i32_2 = arith.constant 0 : i32
    return %c0_i32, %c0_i32_0, %c0_i32_1 : i32, i32, i32
  }
  func.func @transform_14(%arg0: i32) -> (i32, i32, i32) {
    %c0_i32 = arith.constant 0 : i32
    %c0_i32_0 = arith.constant 0 : i32
    %c0_i32_1 = arith.constant 0 : i32
    %c0_i32_2 = arith.constant 0 : i32
    return %c0_i32, %c0_i32_0, %c0_i32_1 : i32, i32, i32
  }
  func.func @transform_15(%arg0: i32) -> (i32, i32, i32) {
    %c0_i32 = arith.constant 0 : i32
    %c0_i32_0 = arith.constant 0 : i32
    %c0_i32_1 = arith.constant 0 : i32
    %c0_i32_2 = arith.constant 0 : i32
    return %c0_i32, %c0_i32_0, %c0_i32_1 : i32, i32, i32
  }
  func.func @transform_16(%arg0: i32) -> (i32, i32) {
    %c0_i32 = arith.constant 0 : i32
    %c0_i32_0 = arith.constant 0 : i32
    %c0_i32_1 = arith.constant 0 : i32
    return %c0_i32, %c0_i32_0 : i32, i32
  }
  func.func @transform_17(%arg0: i32) -> (i32, i32) {
    %c0_i32 = arith.constant 0 : i32
    %c0_i32_0 = arith.constant 0 : i32
    %c0_i32_1 = arith.constant 0 : i32
    return %c0_i32, %c0_i32_0 : i32, i32
  }
  func.func @transform_18(%arg0: i32) -> (i32, i32) {
    %c0_i32 = arith.constant 0 : i32
    %c0_i32_0 = arith.constant 0 : i32
    %c0_i32_1 = arith.constant 0 : i32
    return %c0_i32, %c0_i32_0 : i32, i32
  }
  func.func @transform_19(%arg0: i32) -> (i32, i32) {
    %c0_i32 = arith.constant 0 : i32
    %c0_i32_0 = arith.constant 0 : i32
    %c0_i32_1 = arith.constant 0 : i32
    return %c0_i32, %c0_i32_0 : i32, i32
  }
  func.func @transform_20(%arg0: i32) -> (i32, i32) {
    %c0_i32 = arith.constant 0 : i32
    %c0_i32_0 = arith.constant 0 : i32
    %c0_i32_1 = arith.constant 0 : i32
    return %c0_i32, %c0_i32_0 : i32, i32
  }
  func.func @transform_21(%arg0: i32) -> (i32, i32) {
    %c0_i32 = arith.constant 0 : i32
    %c0_i32_0 = arith.constant 0 : i32
    %c0_i32_1 = arith.constant 0 : i32
    return %c0_i32, %c0_i32_0 : i32, i32
  }
  func.func @transform_22(%arg0: i32) -> (i32, i32) {
    %c0_i32 = arith.constant 0 : i32
    %c0_i32_0 = arith.constant 0 : i32
    return %arg0, %c0_i32 : i32, i32
  }
}

</mosaic_0001>

<bundles_post_ra>
// kernel: mmoe_forward.1
= control target key start
LH: loop header
LB: loop body
LE: loop exit
PB: predicated region body
PF: predicated region fallthrough
CT: control target
= control target key end

     0   :  { %s11323_s0 = inlined_call_operand.vmem [shape: f32[256,32], index: 0, kind: input, shape index: {}]   ;;  %s11324_s1 = inlined_call_operand.vmem [shape: f32[256,32], index: 1, kind: input, shape index: {}]   ;;  %s11325_s2 = inlined_call_operand.vmem [shape: f32[4,32,64], index: 2, kind: input, shape index: {}]   ;;  %s11326_s3 = inlined_call_operand.vmem [shape: f32[4,1,64], index: 3, kind: input, shape index: {}]   ;;  %s11327_s4 = inlined_call_operand.vmem [shape: f32[4,64,32], index: 4, kind: input, shape index: {}]   ;;  %s11328_s5 = inlined_call_operand.vmem [shape: f32[4,1,32], index: 5, kind: input, shape index: {}]   ;;  %s11329_s6 = inlined_call_operand.vmem [shape: f32[32,4], index: 6, kind: input, shape index: {}]   ;;  %s11330_s7 = inlined_call_operand.vmem [shape: f32[1,4], index: 7, kind: input, shape index: {}]   ;;  %s11331_s8 = inlined_call_operand.vmem [shape: f32[32,16], index: 8, kind: input, shape index: {}]   ;;  %s11332_s9 = inlined_call_operand.vmem [shape: f32[1,16], index: 9, kind: input, shape index: {}]   ;;  %s11333_s10 = inlined_call_operand.vmem [shape: f32[16,8], index: 10, kind: input, shape index: {}]   ;;  %s11334_s11 = inlined_call_operand.vmem [shape: f32[1,8], index: 11, kind: input, shape index: {}]   ;;  %s11335_s12 = inlined_call_operand.vmem [shape: f32[4,32,64], index: 12, kind: input, shape index: {}]   ;;  %s11336_s13 = inlined_call_operand.vmem [shape: f32[4,1,64], index: 13, kind: input, shape index: {}]   ;;  %s11337_s14 = inlined_call_operand.vmem [shape: f32[4,64,32], index: 14, kind: input, shape index: {}]   ;;  %s11338_s15 = inlined_call_operand.vmem [shape: f32[4,1,32], index: 15, kind: input, shape index: {}]   ;;  %s11339_s16 = inlined_call_operand.vmem [shape: f32[32,4], index: 16, kind: input, shape index: {}]   ;;  %s11340_s17 = inlined_call_operand.vmem [shape: f32[1,4], index: 17, kind: input, shape index: {}]   ;;  %s11341_s18 = inlined_call_operand.vmem [shape: f32[32,16], index: 18, kind: input, shape index: {}]   ;;  %s11342_s19 = inlined_call_operand.vmem [shape: f32[1,16], index: 19, kind: input, shape index: {}]   ;;  %s11343_s20 = inlined_call_operand.vmem [shape: f32[16,8], index: 20, kind: input, shape index: {}]   ;;  %s11344_s21 = inlined_call_operand.vmem [shape: f32[1,8], index: 21, kind: input, shape index: {}]   ;;  %s11345_s22 = inlined_call_operand.vmem [shape: f32[256,1], index: 22, kind: output, shape index: {}]  }
   0x1   :  { %11359 = sst [smem:[#allocation30_spill]] %s11323_s0 }
   0x2   :  { %11360 = sst [smem:[#allocation31_spill]] %s11324_s1 }
   0x3   :  { %11361 = sst [smem:[#allocation32_spill]] %s11325_s2 }
   0x4   :  { %11362 = sst [smem:[#allocation33_spill]] %s11326_s3  ;;  %s8835_s3 = smov 0  }
   0x5   :  { %11363 = sst [smem:[#allocation34_spill]] %s11327_s4 }
   0x6   :  { %11364 = sst [smem:[#allocation35_spill]] %s11328_s5 }
   0x7   :  { %11365 = sst [smem:[#allocation36_spill]] %s11329_s6 }
   0x8 LB: > { %s6523_s28 = sadd.s32 4294967295, %s8714_s3   ;;  %p6527_p0 = scmp.ge.s32.totalorder %s8714_s3, 1  ;;  %s8714_s3 = sphi %s8835_s3, %s32_s3  }
   0x9   : > { %p624_p1 = scmp.lt.s32.totalorder %s8714_s3, 3 }
   0xb   : > { %p625_p2 = pnand %p6527_p0, %p624_p1 }
   0xd   : > { %628 = sbr.rel (%p625_p2) target bundleno = 2353 (0x931), region = 108 }
  0x14   : > { %s11366_s4 = sld [smem:[#allocation36_spill]]  ;;  %s6528_s24 = sshll.u32 %s6523_s28, 4  ;;  %vm736_vm0 = vcmask 261120   ;;  %v9146_v58 = vld [vmem:[%s11330_s7] ss:$0 sm:$0xff]  ;;  %vm930_vm1 = vcmask 31744  }
  0x15   : > { %p692_p3 = scmp.lt.s32.totalorder %s6528_s24, 31  ;;  %s11367_s27 = sld [smem:[#allocation32_spill]]  ;;  %vm1294_vm2 = vcmask 523264   ;;  %vm3333_vm3 = vcmask 130048   ;;  %vm6389_vm4 = vcmask 64512   ;;  %vm6438_vm5 = vcmask 7168  }
  0x16   : > { %s11368_s0 = sld [smem:[#allocation30_spill]]  ;;  %s11369_s1 = sld [smem:[#allocation34_spill]] }
  0x17   : > { %s11468_s24 = smov (!%p692_p3, %s6528_s24), 31  ;;  %s11432_s29 = sld [smem:[#allocation31_spill]] }
  0x18   : > { %s8873_s2 = sshll.u32 %s11468_s24, 3  ;;  %s11371_s24 = sld [smem:[#allocation35_spill]] }
  0x19   : > { %s11286_s28 = scalar_lea.vmem %s11345_s22, %s8873_s2 }
  0x1a   : > { %v725_v0 = vld [vmem:[%s11366_s4] sm:$0xff]  ;;  %v726_v1 = vld [vmem:[%s11366_s4 + $0x8] sm:$0xff]  ;;  %v727_v2 = vld [vmem:[%s11366_s4 + $0x10] sm:$0xff] }
  0x1b   : > { %v8222_v3 = vpack.c.bf16 %v726_v1, %v725_v0  ;;  %v728_v4 = vld [vmem:[%s11366_s4 + $0x18] sm:$0xff]  ;;  %v1107_v5 = vld [vmem:[%s11367_s27] sm:$0xff]  ;;  %v1108_v6 = vld [vmem:[%s11367_s27 + $0x8] sm:$0xff] }
  0x1c   : > { %v8226_v7 = vpack.c.bf16 %v728_v4, %v727_v2  ;;  %v8230_v8 = vpack.c.bf16 %v1108_v6, %v1107_v5  ;;  %v1109_v9 = vld [vmem:[%s11367_s27 + $0x10] sm:$0xff]  ;;  %v1110_v10 = vld [vmem:[%s11367_s27 + $0x18] sm:$0xff]  ;;  %v6585_v12 = vld [vmem:[%s11367_s27 + $0x20] sm:$0xff]  ;;  %s8879_s23 = scalar_lea.vmem %s11368_s0, %s8873_s2  ;;  %s11370_s0 = sld [smem:[#allocation33_spill]] }
  0x1d   : > { %8223 = vmatprep.subr.bf16.mxu0 %v8222_v3  ;;  %v8234_v11 = vpack.c.bf16 %v1110_v10, %v1109_v9  ;;  %v6586_v13 = vld [vmem:[%s11367_s27 + $0x28] sm:$0xff]  ;;  %v8882_v15 = vld [vmem:[%s8879_s23] sm:$0xff]  ;;  %v6587_v16 = vld [vmem:[%s11367_s27 + $0x30] sm:$0xff]  ;;  %s9999_s30 = scalar_lea.vmem %s11432_s29, %s8873_s2 }
  0x1e   : > { %8225 = vmatpush3.bf16.msra.mxu0 %v8222_v3  ;;  %8231 = vmatprep.subr.bf16.mxu1 %v8230_v8  ;;  %v8254_v14 = vpack.c.bf16 %v6586_v13, %v6585_v12  ;;  %v6588_v17 = vld [vmem:[%s11367_s27 + $0x38] sm:$0xff]  ;;  %v8893_v18 = vld [vmem:[%s8879_s23 + $0x8] sm:$0xff]  ;;  %v8896_v19 = vld [vmem:[%s8879_s23 + $0x10] sm:$0xff] }
  0x1f   : > { %8227 = vmatprep.subr.bf16.mxu0 %v8226_v7  ;;  %8233 = vmatpush3.bf16.msra.mxu1 %v8230_v8  ;;  %v8258_v20 = vpack.c.bf16 %v6588_v17, %v6587_v16  ;;  %v6633_v21 = vld [vmem:[%s11367_s27 + $0x40] sm:$0xff]  ;;  %v6634_v22 = vld [vmem:[%s11367_s27 + $0x48] sm:$0xff]  ;;  %v8911_v23 = vld [vmem:[%s8879_s23 + $0x18] sm:$0xff] }
  0x20   : > { %8235 = vmatprep.subr.bf16.mxu1 %v8234_v11  ;;  %7470 = vmatprep.mubr.msk.f32.mxu0 %vm736_vm0, %v8882_v15  ;;  %v8916_v24 = vld [vmem:[%s8879_s23 + $0x20] sm:$0xff]  ;;  %v8278_v25 = vpack.c.bf16 %v6634_v22, %v6633_v21  ;;  %v8925_v26 = vld [vmem:[%s8879_s23 + $0x28] sm:$0xff]  ;;  %v8930_v27 = vld [vmem:[%s8879_s23 + $0x30] sm:$0xff] }
  0x21   : > { %7502 = vmatprep.mubr.msk.f32.mxu1 %vm736_vm0, %v8882_v15  ;;  %v8939_v28 = vld [vmem:[%s8879_s23 + $0x38] sm:$0xff]  ;;  %v8944_v29 = vld [vmem:[%s8879_s23 + $0x40] sm:$0xff]  ;;  %v8953_v30 = vld [vmem:[%s8879_s23 + $0x48] sm:$0xff] }
  0x22   : > { %8229 = vmatpush3.bf16.msra.mxu0 %v8226_v7  ;;  %v8958_v31 = vld [vmem:[%s8879_s23 + $0x50] sm:$0xff]  ;;  %v8967_v32 = vld [vmem:[%s8879_s23 + $0x58] sm:$0xff]  ;;  %v8972_v33 = vld [vmem:[%s8879_s23 + $0x60] sm:$0xff] }
  0x23   : > { %8237 = vmatpush3.bf16.msra.mxu1 %v8234_v11  ;;  %v8981_v34 = vld [vmem:[%s8879_s23 + $0x68] sm:$0xff]  ;;  %v8986_v35 = vld [vmem:[%s8879_s23 + $0x70] sm:$0xff]  ;;  %v8995_v36 = vld [vmem:[%s8879_s23 + $0x78] sm:$0xff] }
  0x24   : > { %8255 = vmatprep.subr.bf16.mxu1 %v8254_v14  ;;  %v6635_v37 = vld [vmem:[%s11367_s27 + $0x50] sm:$0xff]  ;;  %v6636_v38 = vld [vmem:[%s11367_s27 + $0x58] sm:$0xff]  ;;  %v6681_v40 = vld [vmem:[%s11367_s27 + $0x60] sm:$0xff] }
  0x25   : > { %7471 = vmatmul.mubr.msk.f32.vlgmr.msra.gmra.mrb[0].mxu0 %vm736_vm0, %v8893_v18  ;;  %v8282_v39 = vpack.c.bf16 %v6636_v38, %v6635_v37  ;;  %v6682_v41 = vld [vmem:[%s11367_s27 + $0x68] sm:$0xff]  ;;  %v6683_v43 = vld [vmem:[%s11367_s27 + $0x70] sm:$0xff]  ;;  %v6684_v44 = vld [vmem:[%s11367_s27 + $0x78] sm:$0xff] }
  0x26   : > { %7473 = vmatprep.mubr.msk.f32.mxu0 %vm736_vm0, %v8896_v19  ;;  %7503 = vmatmul.mubr.msk.f32.vlgmr.msra.gmra.mrb[0].mxu1 %vm736_vm0, %v8893_v18  ;;  %v8302_v42 = vpack.c.bf16 %v6682_v41, %v6681_v40  ;;  %v8306_v45 = vpack.c.bf16 %v6684_v44, %v6683_v43  ;;  %v1279_v46 = vld [vmem:[%s11369_s1] sm:$0xff]  ;;  %v1280_v47 = vld [vmem:[%s11369_s1 + $0x8] sm:$0xff]  ;;  %v1281_v48 = vld [vmem:[%s11369_s1 + $0x10] sm:$0xff] }
  0x27   : > { %7505 = vmatprep.mubr.msk.f32.mxu1 %vm736_vm0, %v8896_v19  ;;  %8257 = vmatpush3.bf16.msra.mxu1 %v8254_v14  ;;  %v8238_v49 = vpack.c.bf16 %v1280_v47, %v1279_v46  ;;  %v1282_v50 = vld [vmem:[%s11369_s1 + $0x18] sm:$0xff]  ;;  %v1283_v52 = vld [vmem:[%s11369_s1 + $0x20] sm:$0xff]  ;;  %v1284_v53 = vld [vmem:[%s11369_s1 + $0x28] sm:$0xff] }
  0x28   : > { %8259 = vmatprep.subr.bf16.mxu1 %v8258_v20  ;;  %v8242_v51 = vpack.c.bf16 %v1282_v50, %v1281_v48  ;;  %v8246_v54 = vpack.c.bf16 %v1284_v53, %v1283_v52  ;;  %v1285_v55 = vld [vmem:[%s11369_s1 + $0x30] sm:$0xff]  ;;  %v1286_v56 = vld [vmem:[%s11369_s1 + $0x38] sm:$0xff]  ;;  %v9151_v59 = vld [vmem:[%s11370_s0] ss:$0 sm:$0xff] }
  0x29   : > { %7474 = vmatmul.mubr.msk.f32.gmra.mrb[2].mxu0 %vm736_vm0, %v8911_v23  ;;  %8239 = vmatprep.subr.bf16.mxu0 %v8238_v49  ;;  %v8250_v57 = vpack.c.bf16 %v1286_v56, %v1285_v55  ;;  %v6608_v52 = vld [vmem:[%s11369_s1 + $0x48] sm:$0xff] }
  0x2a   : > { %7476 = vmatprep.mubr.msk.f32.mxu0 %vm736_vm0, %v8916_v24  ;;  %7506 = vmatmul.mubr.msk.f32.gmra.mrb[2].mxu1 %vm736_vm0, %v8911_v23 }
  0x2b   : > { %7508 = vmatprep.mubr.msk.f32.mxu1 %vm736_vm0, %v8916_v24  ;;  %8261 = vmatpush3.bf16.msra.mxu1 %v8258_v20 }
  0x2c   : > { %8279 = vmatprep.subr.bf16.mxu1 %v8278_v25  ;;  %8241 = vmatpush3.bf16.msra.mxu0 %v8238_v49 }
  0x2d   : > { %7477 = vmatmul.mubr.msk.f32.gmra.mrb[4].mxu0 %vm736_vm0, %v8925_v26  ;;  %8243 = vmatprep.subr.bf16.mxu0 %v8242_v51 }
  0x2e   : > { %7479 = vmatprep.mubr.msk.f32.mxu0 %vm736_vm0, %v8930_v27  ;;  %7509 = vmatmul.mubr.msk.f32.gmra.mrb[4].mxu1 %vm736_vm0, %v8925_v26 }
  0x2f   : > { %7511 = vmatprep.mubr.msk.f32.mxu1 %vm736_vm0, %v8930_v27 }
  0x30   : > { %8245 = vmatpush3.bf16.msra.mxu0 %v8242_v51  ;;  %v6607_v51 = vld [vmem:[%s11369_s1 + $0x40] sm:$0xff] }
  0x31   : > { %7480 = vmatmul.mubr.msk.f32.gmra.mrb[6].mxu0 %vm736_vm0, %v8939_v28  ;;  %8247 = vmatprep.subr.bf16.mxu0 %v8246_v54 }
  0x32   : > { %7482 = vmatprep.mubr.msk.f32.mxu0 %vm736_vm0, %v8944_v29  ;;  %7512 = vmatmul.mubr.msk.f32.gmra.mrb[6].mxu1 %vm736_vm0, %v8939_v28 }
  0x33   : > { %7514 = vmatprep.mubr.msk.f32.mxu1 %vm736_vm0, %v8944_v29 }
  0x34   : > { %8249 = vmatpush3.bf16.msra.mxu0 %v8246_v54  ;;  %v8262_v54 = vpack.c.bf16 %v6608_v52, %v6607_v51 }
  0x35   : > { %7483 = vmatmul.mubr.msk.f32.gmra.mrb[8].mxu0 %vm736_vm0, %v8953_v30  ;;  %8251 = vmatprep.subr.bf16.mxu0 %v8250_v57 }
  0x36   : > { %7485 = vmatprep.mubr.msk.f32.mxu0 %vm736_vm0, %v8958_v31  ;;  %7515 = vmatmul.mubr.msk.f32.gmra.mrb[8].mxu1 %vm736_vm0, %v8953_v30 }
  0x37   : > { %7517 = vmatprep.mubr.msk.f32.mxu1 %vm736_vm0, %v8958_v31 }
  0x38   : > { %8253 = vmatpush3.bf16.msra.mxu0 %v8250_v57 }
  0x39   : > { %7486 = vmatmul.mubr.msk.f32.gmra.mrb[10].mxu0 %vm736_vm0, %v8967_v32  ;;  %8263 = vmatprep.subr.bf16.mxu0 %v8262_v54 }
  0x3a   : > { %7488 = vmatprep.mubr.msk.f32.mxu0 %vm736_vm0, %v8972_v33  ;;  %7518 = vmatmul.mubr.msk.f32.gmra.mrb[10].mxu1 %vm736_vm0, %v8967_v32 }
  0x3b   : > { %7520 = vmatprep.mubr.msk.f32.mxu1 %vm736_vm0, %v8972_v33 }
  0x3d   : > { %7489 = vmatmul.mubr.msk.f32.gmra.mrb[12].mxu0 %vm736_vm0, %v8981_v34 }
  0x3e   : > { %7491 = vmatprep.mubr.msk.f32.mxu0 %vm736_vm0, %v8986_v35  ;;  %7521 = vmatmul.mubr.msk.f32.gmra.mrb[12].mxu1 %vm736_vm0, %v8981_v34 }
  0x3f   : > { %7523 = vmatprep.mubr.msk.f32.mxu1 %vm736_vm0, %v8986_v35 }
  0x41   : > { %7492 = vmatmul.mubr.msk.f32.gmra.mrb[14].mxu0 %vm736_vm0, %v8995_v36 }
  0x42   : > { %7524 = vmatmul.mubr.msk.f32.gmra.mrb[14].mxu1 %vm736_vm0, %v8995_v36 }
  0x43   : > { %7574 = vmatprep.mubr.msk.f32.mxu1 %vm736_vm0, %v8882_v15 }
  0x46   : > { %7575 = vmatmul.mubr.msk.f32.vlgmr.msra.gmra.mrb[16].mxu1 %vm736_vm0, %v8893_v18 }
  0x47   : > { %7577 = vmatprep.mubr.msk.f32.mxu1 %vm736_vm0, %v8896_v19  ;;  %8281 = vmatpush3.bf16.msra.mxu1 %v8278_v25 }
  0x48   : > { %8283 = vmatprep.subr.bf16.mxu1 %v8282_v39 }
  0x4a   : > { %7578 = vmatmul.mubr.msk.f32.gmra.mrb[18].mxu1 %vm736_vm0, %v8911_v23 }
  0x4b   : > { %7580 = vmatprep.mubr.msk.f32.mxu1 %vm736_vm0, %v8916_v24  ;;  %8285 = vmatpush3.bf16.msra.mxu1 %v8282_v39 }
  0x4c   : > { %8303 = vmatprep.subr.bf16.mxu1 %v8302_v42 }
  0x4e   : > { %7581 = vmatmul.mubr.msk.f32.gmra.mrb[20].mxu1 %vm736_vm0, %v8925_v26 }
  0x4f   : > { %7583 = vmatprep.mubr.msk.f32.mxu1 %vm736_vm0, %v8930_v27 }
  0x52   : > { %7584 = vmatmul.mubr.msk.f32.gmra.mrb[22].mxu1 %vm736_vm0, %v8939_v28 }
  0x53   : > { %7586 = vmatprep.mubr.msk.f32.mxu1 %vm736_vm0, %v8944_v29 }
  0x56   : > { %7587 = vmatmul.mubr.msk.f32.gmra.mrb[24].mxu1 %vm736_vm0, %v8953_v30 }
  0x57   : > { %7589 = vmatprep.mubr.msk.f32.mxu1 %vm736_vm0, %v8958_v31 }
  0x5a   : > { %7590 = vmatmul.mubr.msk.f32.gmra.mrb[26].mxu1 %vm736_vm0, %v8967_v32 }
  0x5b   : > { %7592 = vmatprep.mubr.msk.f32.mxu1 %vm736_vm0, %v8972_v33 }
  0x5e   : > { %7593 = vmatmul.mubr.msk.f32.gmra.mrb[28].mxu1 %vm736_vm0, %v8981_v34 }
  0x5f   : > { %7595 = vmatprep.mubr.msk.f32.mxu1 %vm736_vm0, %v8986_v35 }
  0x62   : > { %7596 = vmatmul.mubr.msk.f32.gmra.mrb[30].mxu1 %vm736_vm0, %v8995_v36 }
  0x63   : > { %7646 = vmatprep.mubr.msk.f32.mxu1 %vm736_vm0, %v8882_v15 }
  0x66   : > { %7647 = vmatmul.mubr.msk.f32.vlgmr.msra.gmra.mrb[32].mxu1 %vm736_vm0, %v8893_v18 }
  0x67   : > { %7649 = vmatprep.mubr.msk.f32.mxu1 %vm736_vm0, %v8896_v19  ;;  %8305 = vmatpush3.bf16.msra.mxu1 %v8302_v42 }
  0x68   : > { %8307 = vmatprep.subr.bf16.mxu1 %v8306_v45 }
  0x6a   : > { %7650 = vmatmul.mubr.msk.f32.gmra.mrb[34].mxu1 %vm736_vm0, %v8911_v23 }
  0x6b   : > { %7652 = vmatprep.mubr.msk.f32.mxu1 %vm736_vm0, %v8916_v24  ;;  %8309 = vmatpush3.bf16.msra.mxu1 %v8306_v45 }
  0x6e   : > { %7653 = vmatmul.mubr.msk.f32.gmra.mrb[36].mxu1 %vm736_vm0, %v8925_v26 }
  0x6f   : > { %7655 = vmatprep.mubr.msk.f32.mxu1 %vm736_vm0, %v8930_v27 }
  0x72   : > { %7656 = vmatmul.mubr.msk.f32.gmra.mrb[38].mxu1 %vm736_vm0, %v8939_v28 }
  0x73   : > { %7658 = vmatprep.mubr.msk.f32.mxu1 %vm736_vm0, %v8944_v29 }
  0x76   : > { %7659 = vmatmul.mubr.msk.f32.gmra.mrb[40].mxu1 %vm736_vm0, %v8953_v30 }
  0x77   : > { %7661 = vmatprep.mubr.msk.f32.mxu1 %vm736_vm0, %v8958_v31 }
  0x7a   : > { %7662 = vmatmul.mubr.msk.f32.gmra.mrb[42].mxu1 %vm736_vm0, %v8967_v32 }
  0x7b   : > { %7664 = vmatprep.mubr.msk.f32.mxu1 %vm736_vm0, %v8972_v33 }
  0x7e   : > { %7665 = vmatmul.mubr.msk.f32.gmra.mrb[44].mxu1 %vm736_vm0, %v8981_v34 }
  0x7f   : > { %7667 = vmatprep.mubr.msk.f32.mxu1 %vm736_vm0, %v8986_v35 }
  0x82   : > { %7668 = vmatmul.mubr.msk.f32.gmra.mrb[46].mxu1 %vm736_vm0, %v8995_v36 }
  0x83   : > { %7718 = vmatprep.mubr.msk.f32.mxu1 %vm736_vm0, %v8882_v15 }
  0x86   : > { %7719 = vmatmul.mubr.msk.f32.vlgmr.msra.gmra.mrb[48].mxu1 %vm736_vm0, %v8893_v18 }
  0x87   : > { %7721 = vmatprep.mubr.msk.f32.mxu1 %vm736_vm0, %v8896_v19 }
  0x8a   : > { %7722 = vmatmul.mubr.msk.f32.gmra.mrb[50].mxu1 %vm736_vm0, %v8911_v23 }
  0x8b   : > { %7724 = vmatprep.mubr.msk.f32.mxu1 %vm736_vm0, %v8916_v24 }
  0x8e   : > { %7725 = vmatmul.mubr.msk.f32.gmra.mrb[52].mxu1 %vm736_vm0, %v8925_v26 }
  0x8f   : > { %7727 = vmatprep.mubr.msk.f32.mxu1 %vm736_vm0, %v8930_v27 }
  0x92   : > { %7728 = vmatmul.mubr.msk.f32.gmra.mrb[54].mxu1 %vm736_vm0, %v8939_v28 }
  0x93   : > { %7730 = vmatprep.mubr.msk.f32.mxu1 %vm736_vm0, %v8944_v29 }
  0x96   : > { %7731 = vmatmul.mubr.msk.f32.gmra.mrb[56].mxu1 %vm736_vm0, %v8953_v30 }
  0x97   : > { %7733 = vmatprep.mubr.msk.f32.mxu1 %vm736_vm0, %v8958_v31 }
  0x9a   : > { %7734 = vmatmul.mubr.msk.f32.gmra.mrb[58].mxu1 %vm736_vm0, %v8967_v32 }
  0x9b   : > { %7736 = vmatprep.mubr.msk.f32.mxu1 %vm736_vm0, %v8972_v33 }
  0x9e   : > { %7737 = vmatmul.mubr.msk.f32.gmra.mrb[60].mxu1 %vm736_vm0, %v8981_v34 }
  0x9f   : > { %7739 = vmatprep.mubr.msk.f32.mxu1 %vm736_vm0, %v8986_v35 }
  0xa2   : > { %7740 = vmatmul.mubr.msk.f32.gmra.mrb[62].mxu1 %vm736_vm0, %v8995_v36 }
  0xf8   : > { %v7472_v60 = vpop.f32.mrb[0].mxu0 }
  0xf9   : > { %v9154_v61 = vadd.f32 %v7472_v60, %v9146_v58  ;;  %v851_v62 = vpop.f32.mrb[1].mxu0  ;;  %v7504_v63 = vpop.f32.mrb[0].mxu1 }
  0xfa   : > { %v1190_v0 = vadd.f32 %v7504_v63, %v9151_v59  ;;  %v1184_v1 = vpop.f32.mrb[1].mxu1  ;;  %v9158_v2 = vadd.f32 %v9146_v58, %v851_v62 }
  0xfb   : > { %v934_v3 = vsel %vm930_vm1, %v9154_v61, -inf  ;;  %v1185_v4 = vadd.f32 %v9151_v59, %v1184_v1 }
  0xfc   : > { %935 = vmax.xlane.f32.xlu0 %v934_v3  ;;  %v7475_v5 = vpop.f32.mrb[2].mxu0  ;;  %v1264_v8 = vmax.f32 %v1190_v0, 0.0  ;;  %v931_v15 = vsel %vm930_vm1, %v9158_v2, -inf }
  0xfd   : > { %v9164_v6 = vadd.f32 %v7475_v5, %v9146_v58  ;;  %v861_v7 = vpop.f32.mrb[3].mxu0  ;;  %v1263_v9 = vmax.f32 %v1185_v4, 0.0  ;;  %v7507_v10 = vpop.f32.mrb[2].mxu1 }
  0xfe   : > { %v9167_v11 = vadd.f32 %v9146_v58, %v861_v7  ;;  %v1200_v12 = vadd.f32 %v7507_v10, %v9151_v59  ;;  %v1194_v13 = vpop.f32.mrb[3].mxu1 }
  0xff   : > { %v940_v14 = vsel %vm930_vm1, %v9164_v6, -inf  ;;  %v1195_v16 = vadd.f32 %v9151_v59, %v1194_v13  ;;  %7542 = vmatprep.mubr.msk.f32.mxu0 %vm1294_vm2, %v1263_v9  ;;  %v6610_v9 = vld [vmem:[%s11369_s1 + $0x58] sm:$0xff] }
 0x100   : > { %941 = vmax.xlane.f32.xlu1 %v940_v14  ;;  %v7478_v17 = vpop.f32.mrb[4].mxu0  ;;  %932 = vmax.xlane.f32.xlu0 %v931_v15  ;;  %v937_v20 = vsel %vm930_vm1, %v9167_v11, -inf  ;;  %v1266_v21 = vmax.f32 %v1200_v12, 0.0 }
 0x101   : > { %v9177_v18 = vadd.f32 %v7478_v17, %v9146_v58  ;;  %v871_v19 = vpop.f32.mrb[5].mxu0  ;;  %v1265_v22 = vmax.f32 %v1195_v16, 0.0  ;;  %7543 = vmatmul.mubr.msk.f32.vlgmr.msra.gmra.mrb[16].mxu0 %vm1294_vm2, %v1264_v8  ;;  %v7510_v23 = vpop.f32.mrb[4].mxu1  ;;  %v6609_v8 = vld [vmem:[%s11369_s1 + $0x50] sm:$0xff] }
 0x102   : > { %v9183_v24 = vadd.f32 %v9146_v58, %v871_v19  ;;  %v1210_v25 = vadd.f32 %v7510_v23, %v9151_v59  ;;  %v1204_v26 = vpop.f32.mrb[5].mxu1  ;;  %8265 = vmatpush3.bf16.msra.mxu0 %v8262_v54  ;;  %v8266_v13 = vpack.c.bf16 %v6610_v9, %v6609_v8 }
 0x103   : > { %v1205_v27 = vadd.f32 %v9151_v59, %v1204_v26  ;;  %7545 = vmatprep.mubr.msk.f32.mxu0 %vm1294_vm2, %v1265_v22  ;;  %v946_v32 = vsel %vm930_vm1, %v9177_v18, -inf  ;;  %v6611_v26 = vld [vmem:[%s11369_s1 + $0x60] sm:$0xff] }
 0x104   : > { %v7481_v28 = vpop.f32.mrb[6].mxu0  ;;  %938 = vmax.xlane.f32.xlu1 %v937_v20  ;;  %v943_v29 = vsel %vm930_vm1, %v9183_v24, -inf  ;;  %v1268_v33 = vmax.f32 %v1210_v25, 0.0  ;;  %8267 = vmatprep.subr.bf16.mxu0 %v8266_v13 }
 0x105   : > { %v9191_v30 = vadd.f32 %v7481_v28, %v9146_v58  ;;  %v881_v31 = vpop.f32.mrb[7].mxu0  ;;  %944 = vmax.xlane.f32.xlu0 %v943_v29  ;;  %v1267_v34 = vmax.f32 %v1205_v27, 0.0  ;;  %7546 = vmatmul.mubr.msk.f32.gmra.mrb[18].mxu0 %vm1294_vm2, %v1266_v21  ;;  %v7513_v35 = vpop.f32.mrb[6].mxu1  ;;  %v6612_v27 = vld [vmem:[%s11369_s1 + $0x68] sm:$0xff] }
 0x106   : > { %v9197_v36 = vadd.f32 %v9146_v58, %v881_v31  ;;  %v1220_v37 = vadd.f32 %v7513_v35, %v9151_v59  ;;  %v1214_v38 = vpop.f32.mrb[7].mxu1  ;;  %8269 = vmatpush3.bf16.msra.mxu0 %v8266_v13  ;;  %v8270_v31 = vpack.c.bf16 %v6612_v27, %v6611_v26  ;;  %v6655_v27 = vld [vmem:[%s11369_s1 + $0x80] sm:$0xff] }
 0x107   : > { %v1215_v39 = vadd.f32 %v9151_v59, %v1214_v38  ;;  %7548 = vmatprep.mubr.msk.f32.mxu0 %vm1294_vm2, %v1267_v34  ;;  %v952_v44 = vsel %vm930_vm1, %v9191_v30, -inf }
 0x108   : > { %v7484_v40 = vpop.f32.mrb[8].mxu0  ;;  %947 = vmax.xlane.f32.xlu1 %v946_v32  ;;  %v949_v41 = vsel %vm930_vm1, %v9197_v36, -inf  ;;  %v1270_v45 = vmax.f32 %v1220_v37, 0.0  ;;  %8271 = vmatprep.subr.bf16.mxu0 %v8270_v31 }
 0x109   : > { %v9205_v42 = vadd.f32 %v7484_v40, %v9146_v58  ;;  %v891_v43 = vpop.f32.mrb[9].mxu0  ;;  %950 = vmax.xlane.f32.xlu0 %v949_v41  ;;  %v1269_v46 = vmax.f32 %v1215_v39, 0.0  ;;  %7549 = vmatmul.mubr.msk.f32.gmra.mrb[20].mxu0 %vm1294_vm2, %v1268_v33  ;;  %v7516_v47 = vpop.f32.mrb[8].mxu1 }
 0x10a   : > { %v9211_v48 = vadd.f32 %v9146_v58, %v891_v43  ;;  %v1230_v49 = vadd.f32 %v7516_v47, %v9151_v59  ;;  %v1224_v50 = vpop.f32.mrb[9].mxu1  ;;  %8273 = vmatpush3.bf16.msra.mxu0 %v8270_v31 }
 0x10b   : > { %v1225_v53 = vadd.f32 %v9151_v59, %v1224_v50  ;;  %7551 = vmatprep.mubr.msk.f32.mxu0 %vm1294_vm2, %v1269_v46  ;;  %v958_v62 = vsel %vm930_vm1, %v9205_v42, -inf  ;;  %v9287_v46 = vld [vmem:[%s11370_s0 + $0x1] ss:$0 sm:$0xff] }
 0x10c   : > { %v7487_v55 = vpop.f32.mrb[10].mxu0  ;;  %953 = vmax.xlane.f32.xlu1 %v952_v44  ;;  %v955_v56 = vsel %vm930_vm1, %v9211_v48, -inf  ;;  %v1272_v63 = vmax.f32 %v1230_v49, 0.0  ;;  %v6613_v44 = vld [vmem:[%s11369_s1 + $0x70] sm:$0xff] }
 0x10d   : > { %v9225_v57 = vadd.f32 %v7487_v55, %v9146_v58  ;;  %v901_v60 = vpop.f32.mrb[11].mxu0  ;;  %956 = vmax.xlane.f32.xlu0 %v955_v56  ;;  %v1271_v0 = vmax.f32 %v1225_v53, 0.0  ;;  %7552 = vmatmul.mubr.msk.f32.gmra.mrb[22].mxu0 %vm1294_vm2, %v1270_v45  ;;  %v7519_v1 = vpop.f32.mrb[10].mxu1  ;;  %v6614_v45 = vld [vmem:[%s11369_s1 + $0x78] sm:$0xff] }
 0x10e   : > { %v9231_v3 = vadd.f32 %v9146_v58, %v901_v60  ;;  %v1240_v4 = vadd.f32 %v7519_v1, %v9151_v59  ;;  %v1234_v5 = vpop.f32.mrb[11].mxu1 }
 0x10f   : > { %v1235_v7 = vadd.f32 %v9151_v59, %v1234_v5  ;;  %7554 = vmatprep.mubr.msk.f32.mxu0 %vm1294_vm2, %v1271_v0  ;;  %v964_v16 = vsel %vm930_vm1, %v9225_v57, -inf }
 0x110   : > { %v7490_v10 = vpop.f32.mrb[12].mxu0  ;;  %959 = vmax.xlane.f32.xlu1 %v958_v62  ;;  %v961_v12 = vsel %vm930_vm1, %v9231_v3, -inf  ;;  %v1274_v17 = vmax.f32 %v1240_v4, 0.0 }
 0x111   : > { %v9245_v14 = vadd.f32 %v7490_v10, %v9146_v58  ;;  %v911_v15 = vpop.f32.mrb[13].mxu0  ;;  %962 = vmax.xlane.f32.xlu0 %v961_v12  ;;  %v1273_v19 = vmax.f32 %v1235_v7, 0.0  ;;  %7555 = vmatmul.mubr.msk.f32.gmra.mrb[24].mxu0 %vm1294_vm2, %v1272_v63  ;;  %v7522_v20 = vpop.f32.mrb[12].mxu1 }
 0x112   : > { %v9251_v21 = vadd.f32 %v9146_v58, %v911_v15  ;;  %v1250_v22 = vadd.f32 %v7522_v20, %v9151_v59  ;;  %v1244_v23 = vpop.f32.mrb[13].mxu1 }
 0x113   : > { %v1245_v25 = vadd.f32 %v9151_v59, %v1244_v23  ;;  %7557 = vmatprep.mubr.msk.f32.mxu0 %vm1294_vm2, %v1273_v19  ;;  %v970_v34 = vsel %vm930_vm1, %v9245_v14, -inf }
 0x114   : > { %v7493_v28 = vpop.f32.mrb[14].mxu0  ;;  %965 = vmax.xlane.f32.xlu1 %v964_v16  ;;  %v967_v29 = vsel %vm930_vm1, %v9251_v21, -inf  ;;  %v1276_v35 = vmax.f32 %v1250_v22, 0.0 }
 0x115   : > { %v9265_v32 = vadd.f32 %v7493_v28, %v9146_v58  ;;  %v921_v33 = vpop.f32.mrb[15].mxu0  ;;  %968 = vmax.xlane.f32.xlu0 %v967_v29  ;;  %v1275_v37 = vmax.f32 %v1245_v25, 0.0  ;;  %7558 = vmatmul.mubr.msk.f32.gmra.mrb[26].mxu0 %vm1294_vm2, %v1274_v17  ;;  %v7525_v38 = vpop.f32.mrb[14].mxu1  ;;  %v6656_v28 = vld [vmem:[%s11369_s1 + $0x88] sm:$0xff] }
 0x116   : > { %v9271_v39 = vadd.f32 %v9146_v58, %v921_v33  ;;  %v1260_v40 = vadd.f32 %v7525_v38, %v9151_v59  ;;  %v1254_v41 = vpop.f32.mrb[15].mxu1  ;;  %v8286_v29 = vpack.c.bf16 %v6656_v28, %v6655_v27  ;;  %v6707_v28 = vld [vmem:[%s11369_s1 + $0xe0] sm:$0xff] }
 0x117   : > { %v1255_v43 = vadd.f32 %v9151_v59, %v1254_v41  ;;  %7560 = vmatprep.mubr.msk.f32.mxu0 %vm1294_vm2, %v1275_v37  ;;  %v8274_v59 = vpack.c.bf16 %v6614_v45, %v6613_v44  ;;  %v976_v47 = vsel %vm930_vm1, %v9265_v32, -inf  ;;  %v6658_v41 = vld [vmem:[%s11369_s1 + $0x98] sm:$0xff] }
 0x118   : > { %971 = vmax.xlane.f32.xlu1 %v970_v34  ;;  %v973_v58 = vsel %vm930_vm1, %v9271_v39, -inf  ;;  %v1278_v49 = vmax.f32 %v1260_v40, 0.0  ;;  %v6657_v40 = vld [vmem:[%s11369_s1 + $0x90] sm:$0xff] }
 0x119   : > { %974 = vmax.xlane.f32.xlu0 %v973_v58  ;;  %v1277_v50 = vmax.f32 %v1255_v43, 0.0  ;;  %7561 = vmatmul.mubr.msk.f32.gmra.mrb[28].mxu0 %vm1294_vm2, %v1276_v35  ;;  %v7576_v51 = vpop.f32.mrb[16].mxu1  ;;  %v8290_v43 = vpack.c.bf16 %v6658_v41, %v6657_v40  ;;  %v6709_v41 = vld [vmem:[%s11369_s1 + $0xf0] sm:$0xff] }
 0x11a   : > { %v1701_v52 = vadd.f32 %v7576_v51, %v9287_v46  ;;  %v1695_v53 = vpop.f32.mrb[17].mxu1  ;;  %8275 = vmatprep.subr.bf16.mxu0 %v8274_v59  ;;  %v6660_v51 = vld [vmem:[%s11369_s1 + $0xa8] sm:$0xff] }
 0x11b   : > { %v1696_v54 = vadd.f32 %v9287_v46, %v1695_v53  ;;  %7563 = vmatprep.mubr.msk.f32.mxu0 %vm1294_vm2, %v1277_v50  ;;  %8277 = vmatpush3.bf16.msra.mxu0 %v8274_v59  ;;  %v6659_v50 = vld [vmem:[%s11369_s1 + $0xa0] sm:$0xff] }
 0x11c   : > { %977 = vmax.xlane.f32.xlu1 %v976_v47  ;;  %v1775_v55 = vmax.f32 %v1701_v52, 0.0  ;;  %8287 = vmatprep.subr.bf16.mxu0 %v8286_v29  ;;  %v8294_v52 = vpack.c.bf16 %v6660_v51, %v6659_v50 }
 0x11d   : > { %v1774_v56 = vmax.f32 %v1696_v54, 0.0  ;;  %7564 = vmatmul.mubr.msk.f32.gmra.mrb[30].mxu0 %vm1294_vm2, %v1278_v49  ;;  %v7579_v60 = vpop.f32.mrb[18].mxu1 }
 0x11e   : > { %v1711_v62 = vadd.f32 %v7579_v60, %v9287_v46  ;;  %v1705_v63 = vpop.f32.mrb[19].mxu1 }
 0x11f   : > { %v1706_v0 = vadd.f32 %v9287_v46, %v1705_v63  ;;  %7614 = vmatprep.mubr.msk.f32.mxu0 %vm1294_vm2, %v1774_v56  ;;  %v9344_v63 = vld [vmem:[%s11370_s0 + $0x2] ss:$0 sm:$0xff] }
 0x120   : > { %v1777_v1 = vmax.f32 %v1711_v62, 0.0 }
 0x121   : > { %v1776_v4 = vmax.f32 %v1706_v0, 0.0  ;;  %7615 = vmatmul.mubr.msk.f32.vlgmr.msra.gmra.mrb[32].mxu0 %vm1294_vm2, %v1775_v55  ;;  %v7582_v5 = vpop.f32.mrb[20].mxu1  ;;  %v6661_v0 = vld [vmem:[%s11369_s1 + $0xb0] sm:$0xff] }
 0x122   : > { %v1721_v7 = vadd.f32 %v7582_v5, %v9287_v46  ;;  %v1715_v8 = vpop.f32.mrb[21].mxu1  ;;  %8289 = vmatpush3.bf16.msra.mxu0 %v8286_v29  ;;  %v6708_v29 = vld [vmem:[%s11369_s1 + $0xe8] sm:$0xff] }
 0x123   : > { %v1716_v9 = vadd.f32 %v9287_v46, %v1715_v8  ;;  %7617 = vmatprep.mubr.msk.f32.mxu0 %vm1294_vm2, %v1776_v4  ;;  %8291 = vmatprep.subr.bf16.mxu0 %v8290_v43  ;;  %v8318_v40 = vpack.c.bf16 %v6708_v29, %v6707_v28 }
 0x124   : > { %v1779_v10 = vmax.f32 %v1721_v7, 0.0 }
 0x125   : > { %v1778_v12 = vmax.f32 %v1716_v9, 0.0  ;;  %7618 = vmatmul.mubr.msk.f32.gmra.mrb[34].mxu0 %vm1294_vm2, %v1777_v1  ;;  %v7585_v13 = vpop.f32.mrb[22].mxu1  ;;  %v6662_v1 = vld [vmem:[%s11369_s1 + $0xb8] sm:$0xff] }
 0x126   : > { %v1731_v15 = vadd.f32 %v7585_v13, %v9287_v46  ;;  %v1725_v16 = vpop.f32.mrb[23].mxu1  ;;  %8293 = vmatpush3.bf16.msra.mxu0 %v8290_v43  ;;  %v8298_v4 = vpack.c.bf16 %v6662_v1, %v6661_v0  ;;  %v6704_v13 = vld [vmem:[%s11369_s1 + $0xc8] sm:$0xff]  ;;  %v6710_v43 = vld [vmem:[%s11369_s1 + $0xf8] sm:$0xff] }
 0x127   : > { %v1726_v17 = vadd.f32 %v9287_v46, %v1725_v16  ;;  %7620 = vmatprep.mubr.msk.f32.mxu0 %vm1294_vm2, %v1778_v12  ;;  %8295 = vmatprep.subr.bf16.mxu0 %v8294_v52  ;;  %v6703_v12 = vld [vmem:[%s11369_s1 + $0xc0] sm:$0xff]  ;;  %v6705_v16 = vld [vmem:[%s11369_s1 + $0xd0] sm:$0xff]  ;;  %v8322_v50 = vpack.c.bf16 %v6710_v43, %v6709_v41 }
 0x128   : > { %v1781_v19 = vmax.f32 %v1731_v15, 0.0  ;;  %v8310_v15 = vpack.c.bf16 %v6704_v13, %v6703_v12 }
 0x129   : > { %v1780_v20 = vmax.f32 %v1726_v17, 0.0  ;;  %7621 = vmatmul.mubr.msk.f32.gmra.mrb[36].mxu0 %vm1294_vm2, %v1779_v10  ;;  %v7588_v22 = vpop.f32.mrb[24].mxu1  ;;  %v6706_v17 = vld [vmem:[%s11369_s1 + $0xd8] sm:$0xff] }
 0x12a   : > { %v1741_v23 = vadd.f32 %v7588_v22, %v9287_v46  ;;  %v1735_v25 = vpop.f32.mrb[25].mxu1  ;;  %8297 = vmatpush3.bf16.msra.mxu0 %v8294_v52  ;;  %v8314_v27 = vpack.c.bf16 %v6706_v17, %v6705_v16 }
 0x12b   : > { %v1736_v26 = vadd.f32 %v9287_v46, %v1735_v25  ;;  %7623 = vmatprep.mubr.msk.f32.mxu0 %vm1294_vm2, %v1780_v20  ;;  %8299 = vmatprep.subr.bf16.mxu0 %v8298_v4 }
 0x12c   : > { %v1783_v31 = vmax.f32 %v1741_v23, 0.0 }
 0x12d   : > { %v1782_v33 = vmax.f32 %v1736_v26, 0.0  ;;  %7624 = vmatmul.mubr.msk.f32.gmra.mrb[38].mxu0 %vm1294_vm2, %v1781_v19  ;;  %v7591_v34 = vpop.f32.mrb[26].mxu1 }
 0x12e   : > { %v1751_v35 = vadd.f32 %v7591_v34, %v9287_v46  ;;  %v1745_v37 = vpop.f32.mrb[27].mxu1  ;;  %8301 = vmatpush3.bf16.msra.mxu0 %v8298_v4 }
 0x12f   : > { %v1746_v38 = vadd.f32 %v9287_v46, %v1745_v37  ;;  %7626 = vmatprep.mubr.msk.f32.mxu0 %vm1294_vm2, %v1782_v33  ;;  %8311 = vmatprep.subr.bf16.mxu0 %v8310_v15 }
 0x130   : > { %v1785_v44 = vmax.f32 %v1751_v35, 0.0 }
 0x131   : > { %v1784_v45 = vmax.f32 %v1746_v38, 0.0  ;;  %7627 = vmatmul.mubr.msk.f32.gmra.mrb[40].mxu0 %vm1294_vm2, %v1783_v31  ;;  %v7594_v58 = vpop.f32.mrb[28].mxu1 }
 0x132   : > { %v1761_v59 = vadd.f32 %v7594_v58, %v9287_v46  ;;  %v1755_v47 = vpop.f32.mrb[29].mxu1 }
 0x133   : > { %v1756_v49 = vadd.f32 %v9287_v46, %v1755_v47  ;;  %7629 = vmatprep.mubr.msk.f32.mxu0 %vm1294_vm2, %v1784_v45 }
 0x134   : > { %v1787_v53 = vmax.f32 %v1761_v59, 0.0 }
 0x135   : > { %v1786_v54 = vmax.f32 %v1756_v49, 0.0  ;;  %7630 = vmatmul.mubr.msk.f32.gmra.mrb[42].mxu0 %vm1294_vm2, %v1785_v44  ;;  %v7597_v55 = vpop.f32.mrb[30].mxu1 }
 0x136   : > { %v1771_v56 = vadd.f32 %v7597_v55, %v9287_v46  ;;  %v1765_v60 = vpop.f32.mrb[31].mxu1 }
 0x137   : > { %v1766_v62 = vadd.f32 %v9287_v46, %v1765_v60  ;;  %7632 = vmatprep.mubr.msk.f32.mxu0 %vm1294_vm2, %v1786_v54 }
 0x138   : > { %v1789_v5 = vmax.f32 %v1771_v56, 0.0 }
 0x139   : > { %v1788_v7 = vmax.f32 %v1766_v62, 0.0  ;;  %7633 = vmatmul.mubr.msk.f32.gmra.mrb[44].mxu0 %vm1294_vm2, %v1787_v53  ;;  %v7648_v46 = vpop.f32.mrb[32].mxu1 }
 0x13a   : > { %v2197_v8 = vadd.f32 %v7648_v46, %v9344_v63  ;;  %v2191_v9 = vpop.f32.mrb[33].mxu1 }
 0x13b   : > { %v2192_v10 = vadd.f32 %v9344_v63, %v2191_v9  ;;  %7635 = vmatprep.mubr.msk.f32.mxu0 %vm1294_vm2, %v1788_v7 }
 0x13c   : > { %v2271_v19 = vmax.f32 %v2197_v8, 0.0 }
 0x13d   : > { %v2270_v20 = vmax.f32 %v2192_v10, 0.0  ;;  %7636 = vmatmul.mubr.msk.f32.gmra.mrb[46].mxu0 %vm1294_vm2, %v1789_v5  ;;  %v7651_v22 = vpop.f32.mrb[34].mxu1 }
 0x13e   : > { %v2207_v23 = vadd.f32 %v7651_v22, %v9344_v63  ;;  %v2201_v25 = vpop.f32.mrb[35].mxu1  ;;  %v9411_v22 = vld [vmem:[%s11370_s0 + $0x3] ss:$0 sm:$0xff] }
 0x13f   : > { %v2202_v26 = vadd.f32 %v9344_v63, %v2201_v25  ;;  %7686 = vmatprep.mubr.msk.f32.mxu0 %vm1294_vm2, %v2270_v20 }
 0x140   : > { %v2273_v31 = vmax.f32 %v2207_v23, 0.0 }
 0x141   : > { %v2272_v33 = vmax.f32 %v2202_v26, 0.0  ;;  %7687 = vmatmul.mubr.msk.f32.vlgmr.msra.gmra.mrb[48].mxu0 %vm1294_vm2, %v2271_v19  ;;  %v7654_v34 = vpop.f32.mrb[36].mxu1 }
 0x142   : > { %v2217_v35 = vadd.f32 %v7654_v34, %v9344_v63  ;;  %v2211_v37 = vpop.f32.mrb[37].mxu1  ;;  %8313 = vmatpush3.bf16.msra.mxu0 %v8310_v15 }
 0x143   : > { %v2212_v38 = vadd.f32 %v9344_v63, %v2211_v37  ;;  %7689 = vmatprep.mubr.msk.f32.mxu0 %vm1294_vm2, %v2272_v33  ;;  %8315 = vmatprep.subr.bf16.mxu0 %v8314_v27 }
 0x144   : > { %v2275_v44 = vmax.f32 %v2217_v35, 0.0 }
 0x145   : > { %v2274_v45 = vmax.f32 %v2212_v38, 0.0  ;;  %7690 = vmatmul.mubr.msk.f32.gmra.mrb[50].mxu0 %vm1294_vm2, %v2273_v31  ;;  %v7657_v58 = vpop.f32.mrb[38].mxu1 }
 0x146   : > { %v2227_v59 = vadd.f32 %v7657_v58, %v9344_v63  ;;  %v2221_v47 = vpop.f32.mrb[39].mxu1  ;;  %8317 = vmatpush3.bf16.msra.mxu0 %v8314_v27 }
 0x147   : > { %v2222_v49 = vadd.f32 %v9344_v63, %v2221_v47  ;;  %7692 = vmatprep.mubr.msk.f32.mxu0 %vm1294_vm2, %v2274_v45  ;;  %8319 = vmatprep.subr.bf16.mxu0 %v8318_v40 }
 0x148   : > { %v2277_v51 = vmax.f32 %v2227_v59, 0.0 }
 0x149   : > { %v2276_v52 = vmax.f32 %v2222_v49, 0.0  ;;  %7693 = vmatmul.mubr.msk.f32.gmra.mrb[52].mxu0 %vm1294_vm2, %v2275_v44  ;;  %v7660_v53 = vpop.f32.mrb[40].mxu1 }
 0x14a   : > { %v2237_v54 = vadd.f32 %v7660_v53, %v9344_v63  ;;  %v2231_v55 = vpop.f32.mrb[41].mxu1  ;;  %8321 = vmatpush3.bf16.msra.mxu0 %v8318_v40 }
 0x14b   : > { %v2232_v56 = vadd.f32 %v9344_v63, %v2231_v55  ;;  %7695 = vmatprep.mubr.msk.f32.mxu0 %vm1294_vm2, %v2276_v52  ;;  %8323 = vmatprep.subr.bf16.mxu0 %v8322_v50 }
 0x14c   : > { %v2279_v60 = vmax.f32 %v2237_v54, 0.0 }
 0x14d   : > { %v2278_v62 = vmax.f32 %v2232_v56, 0.0  ;;  %7696 = vmatmul.mubr.msk.f32.gmra.mrb[54].mxu0 %vm1294_vm2, %v2277_v51  ;;  %v7663_v0 = vpop.f32.mrb[42].mxu1 }
 0x14e   : > { %v2247_v1 = vadd.f32 %v7663_v0, %v9344_v63  ;;  %v2241_v4 = vpop.f32.mrb[43].mxu1  ;;  %8325 = vmatpush3.bf16.msra.mxu0 %v8322_v50 }
 0x14f   : > { %v2242_v5 = vadd.f32 %v9344_v63, %v2241_v4  ;;  %7698 = vmatprep.mubr.msk.f32.mxu0 %vm1294_vm2, %v2278_v62 }
 0x150   : > { %v2281_v7 = vmax.f32 %v2247_v1, 0.0 }
 0x151   : > { %v2280_v46 = vmax.f32 %v2242_v5, 0.0  ;;  %7699 = vmatmul.mubr.msk.f32.gmra.mrb[56].mxu0 %vm1294_vm2, %v2279_v60  ;;  %v7666_v8 = vpop.f32.mrb[44].mxu1 }
 0x152   : > { %v2257_v9 = vadd.f32 %v7666_v8, %v9344_v63  ;;  %v2251_v10 = vpop.f32.mrb[45].mxu1 }
 0x153   : > { %v2252_v12 = vadd.f32 %v9344_v63, %v2251_v10  ;;  %7701 = vmatprep.mubr.msk.f32.mxu0 %vm1294_vm2, %v2280_v46 }
 0x154   : > { %v2283_v13 = vmax.f32 %v2257_v9, 0.0 }
 0x155   : > { %v2282_v15 = vmax.f32 %v2252_v12, 0.0  ;;  %7702 = vmatmul.mubr.msk.f32.gmra.mrb[58].mxu0 %vm1294_vm2, %v2281_v7  ;;  %v7669_v16 = vpop.f32.mrb[46].mxu1 }
 0x156   : > { %v2267_v17 = vadd.f32 %v7669_v16, %v9344_v63  ;;  %v2261_v19 = vpop.f32.mrb[47].mxu1 }
 0x157   : > { %v2262_v20 = vadd.f32 %v9344_v63, %v2261_v19  ;;  %7704 = vmatprep.mubr.msk.f32.mxu0 %vm1294_vm2, %v2282_v15 }
 0x158   : > { %v2285_v23 = vmax.f32 %v2267_v17, 0.0 }
 0x159   : > { %v2284_v25 = vmax.f32 %v2262_v20, 0.0  ;;  %7705 = vmatmul.mubr.msk.f32.gmra.mrb[60].mxu0 %vm1294_vm2, %v2283_v13  ;;  %v7720_v26 = vpop.f32.mrb[48].mxu1 }
 0x15a   : > { %v2693_v27 = vadd.f32 %v7720_v26, %v9411_v22  ;;  %v2687_v28 = vpop.f32.mrb[49].mxu1 }
 0x15b   : > { %v2688_v29 = vadd.f32 %v9411_v22, %v2687_v28  ;;  %7707 = vmatprep.mubr.msk.f32.mxu0 %vm1294_vm2, %v2284_v25 }
 0x15c   : > { %v2767_v63 = vmax.f32 %v2693_v27, 0.0 }
 0x15d   : > { %v2766_v31 = vmax.f32 %v2688_v29, 0.0  ;;  %7708 = vmatmul.mubr.msk.f32.gmra.mrb[62].mxu0 %vm1294_vm2, %v2285_v23  ;;  %v7723_v33 = vpop.f32.mrb[50].mxu1 }
 0x15e   : > { %v2703_v34 = vadd.f32 %v7723_v33, %v9411_v22  ;;  %v2697_v35 = vpop.f32.mrb[51].mxu1 }
 0x15f   : > { %7758 = vmatprep.mubr.msk.f32.mxu0 %vm1294_vm2, %v2766_v31  ;;  %v2698_v37 = vadd.f32 %v9411_v22, %v2697_v35 }
 0x160   : > { %v2769_v38 = vmax.f32 %v2703_v34, 0.0 }
 0x161   : > { %7759 = vmatmul.mubr.msk.f32.vlgmr.msra.gmra.mrb[64].mxu0 %vm1294_vm2, %v2767_v63  ;;  %v2768_v40 = vmax.f32 %v2698_v37, 0.0  ;;  %v7726_v41 = vpop.f32.mrb[52].mxu1 }
 0x162   : > { %v2713_v43 = vadd.f32 %v7726_v41, %v9411_v22  ;;  %v2707_v44 = vpop.f32.mrb[53].mxu1 }
 0x163   : > { %7761 = vmatprep.mubr.msk.f32.mxu0 %vm1294_vm2, %v2768_v40  ;;  %v2708_v45 = vadd.f32 %v9411_v22, %v2707_v44 }
 0x164   : > { %v2771_v58 = vmax.f32 %v2713_v43, 0.0 }
 0x165   : > { %7762 = vmatmul.mubr.msk.f32.gmra.mrb[66].mxu0 %vm1294_vm2, %v2769_v38  ;;  %v2770_v59 = vmax.f32 %v2708_v45, 0.0  ;;  %v7729_v47 = vpop.f32.mrb[54].mxu1 }
 0x166   : > { %v2723_v49 = vadd.f32 %v7729_v47, %v9411_v22  ;;  %v2717_v50 = vpop.f32.mrb[55].mxu1 }
 0x167   : > { %7764 = vmatprep.mubr.msk.f32.mxu0 %vm1294_vm2, %v2770_v59  ;;  %v2718_v51 = vadd.f32 %v9411_v22, %v2717_v50 }
 0x168   : > { %v2773_v52 = vmax.f32 %v2723_v49, 0.0 }
 0x169   : > { %7765 = vmatmul.mubr.msk.f32.gmra.mrb[68].mxu0 %vm1294_vm2, %v2771_v58  ;;  %v2772_v53 = vmax.f32 %v2718_v51, 0.0  ;;  %v7732_v54 = vpop.f32.mrb[56].mxu1 }
 0x16a   : > { %v2733_v55 = vadd.f32 %v7732_v54, %v9411_v22  ;;  %v2727_v56 = vpop.f32.mrb[57].mxu1 }
 0x16b   : > { %7767 = vmatprep.mubr.msk.f32.mxu0 %vm1294_vm2, %v2772_v53  ;;  %v2728_v60 = vadd.f32 %v9411_v22, %v2727_v56 }
 0x16c   : > { %v2775_v62 = vmax.f32 %v2733_v55, 0.0 }
 0x16d   : > { %7768 = vmatmul.mubr.msk.f32.gmra.mrb[70].mxu0 %vm1294_vm2, %v2773_v52  ;;  %v2774_v0 = vmax.f32 %v2728_v60, 0.0  ;;  %v7735_v1 = vpop.f32.mrb[58].mxu1 }
 0x16e   : > { %v2743_v4 = vadd.f32 %v7735_v1, %v9411_v22  ;;  %v2737_v5 = vpop.f32.mrb[59].mxu1 }
 0x16f   : > { %7770 = vmatprep.mubr.msk.f32.mxu0 %vm1294_vm2, %v2774_v0  ;;  %v2738_v7 = vadd.f32 %v9411_v22, %v2737_v5 }
 0x170   : > { %v2777_v46 = vmax.f32 %v2743_v4, 0.0 }
 0x171   : > { %7771 = vmatmul.mubr.msk.f32.gmra.mrb[72].mxu0 %vm1294_vm2, %v2775_v62  ;;  %v2776_v8 = vmax.f32 %v2738_v7, 0.0  ;;  %v7738_v9 = vpop.f32.mrb[60].mxu1 }
 0x172   : > { %v2753_v10 = vadd.f32 %v7738_v9, %v9411_v22  ;;  %v2747_v12 = vpop.f32.mrb[61].mxu1 }
 0x173   : > { %7773 = vmatprep.mubr.msk.f32.mxu0 %vm1294_vm2, %v2776_v8  ;;  %v2748_v13 = vadd.f32 %v9411_v22, %v2747_v12 }
 0x174   : > { %v2779_v15 = vmax.f32 %v2753_v10, 0.0 }
 0x175   : > { %7774 = vmatmul.mubr.msk.f32.gmra.mrb[74].mxu0 %vm1294_vm2, %v2777_v46  ;;  %v2778_v16 = vmax.f32 %v2748_v13, 0.0 }
 0x177   : > { %7776 = vmatprep.mubr.msk.f32.mxu0 %vm1294_vm2, %v2778_v16 }
 0x179   : > { %7777 = vmatmul.mubr.msk.f32.gmra.mrb[76].mxu0 %vm1294_vm2, %v2779_v15 }
 0x189   : > { %v936_v17 = vpop.xlane.xlu0 %935 }
 0x18a   : > { %v980_v19 = vsub.f32 %v9154_v61, %v936_v17 }
 0x18c   : > { %v997_v20 = vmul.f32 1.442695, %v980_v19 }
 0x18d   : > { %v942_v23 = vpop.xlane.xlu1 %941  ;;  %v933_v25 = vpop.xlane.xlu0 %932 }
 0x18e   : > { %8580 = vpow2.f32 %v997_v20  ;;  %v982_v26 = vsub.f32 %v9164_v6, %v942_v23  ;;  %v979_v27 = vsub.f32 %v9158_v2, %v933_v25 }
 0x190   : > { %v1001_v28 = vmul.f32 1.442695, %v982_v26  ;;  %v995_v29 = vmul.f32 1.442695, %v979_v27 }
 0x191   : > { %v939_v63 = vpop.xlane.xlu1 %938 }
 0x192   : > { %8582 = vpow2.f32 %v1001_v28  ;;  %v981_v31 = vsub.f32 %v9167_v11, %v939_v63  ;;  %v945_v33 = vpop.xlane.xlu0 %944 }
 0x193   : > { %8584 = vpow2.f32 %v995_v29  ;;  %v983_v34 = vsub.f32 %v9183_v24, %v945_v33 }
 0x194   : > { %v999_v35 = vmul.f32 1.442695, %v981_v31 }
 0x195   : > { %v1003_v61 = vmul.f32 1.442695, %v983_v34  ;;  %v948_v37 = vpop.xlane.xlu1 %947  ;;  %v11351_v34 = vmov 3  }
 0x196   : > { %8586 = vpow2.f32 %v999_v35  ;;  %v984_v38 = vsub.f32 %v9177_v18, %v948_v37  ;;  %v951_v40 = vpop.xlane.xlu0 %950  ;;  %8469 = vset.pattern.permute.xlu0 %v11351_v34  ;;  %v11353_v35 = vmov 0  }
 0x197   : > { %v985_v6 = vsub.f32 %v9197_v36, %v951_v40  ;;  %8588 = vpow2.f32 %v1003_v61  ;;  %8466 = vset.pattern.permute.xlu1 %v11353_v35  ;;  %v7741_v61 = vpop.f32.mrb[62].mxu1 }
 0x198   : > { %v9451_v2 = vpop.eup %8580  ;;  %v1005_v41 = vmul.f32 1.442695, %v984_v38  ;;  %v2763_v40 = vadd.f32 %v7741_v61, %v9411_v22 }
 0x199   : > { %v1007_v43 = vmul.f32 1.442695, %v985_v6  ;;  %v954_v44 = vpop.xlane.xlu1 %953  ;;  %v1030_v11 = vsel %vm930_vm1, %v9451_v2, 0.0 }
 0x19a   : > { %8590 = vpow2.f32 %v1005_v41  ;;  %v986_v24 = vsub.f32 %v9191_v30, %v954_v44  ;;  %1031 = vadd.xlane.f32.xlu1 %v1030_v11  ;;  %v957_v45 = vpop.xlane.xlu0 %956 }
 0x19b   : > { %v987_v58 = vsub.f32 %v9211_v48, %v957_v45  ;;  %8592 = vpow2.f32 %v1007_v43  ;;  %v2757_v43 = vpop.f32.mrb[63].mxu1 }
 0x19c   : > { %v9457_v18 = vpop.eup %8582  ;;  %v1009_v59 = vmul.f32 1.442695, %v986_v24  ;;  %v2758_v11 = vadd.f32 %v9411_v22, %v2757_v43  ;;  %v2781_v24 = vmax.f32 %v2763_v40, 0.0  ;;  %v9545_v22 = vld [vmem:[%s11371_s24] ss:$0 sm:$0xff] }
 0x19d   : > { %v9459_v36 = vpop.eup %8584  ;;  %v1011_v47 = vmul.f32 1.442695, %v987_v58  ;;  %v960_v49 = vpop.xlane.xlu1 %959  ;;  %v1036_v50 = vsel %vm930_vm1, %v9457_v18, 0.0 }
 0x19e   : > { %8594 = vpow2.f32 %v1009_v59  ;;  %v988_v51 = vsub.f32 %v9205_v42, %v960_v49  ;;  %1037 = vadd.xlane.f32.xlu1 %v1036_v50  ;;  %v1027_v30 = vsel %vm930_vm1, %v9459_v36, 0.0  ;;  %v963_v52 = vpop.xlane.xlu0 %962  ;;  %v2780_v45 = vmax.f32 %v2758_v11, 0.0 }
 0x19f   : > { %1028 = vadd.xlane.f32.xlu0 %v1027_v30  ;;  %v989_v48 = vsub.f32 %v9231_v3, %v963_v52  ;;  %8596 = vpow2.f32 %v1011_v47 }
 0x1a0   : > { %v9467_v53 = vpop.eup %8586  ;;  %v1013_v54 = vmul.f32 1.442695, %v988_v51  ;;  %7779 = vmatprep.mubr.msk.f32.mxu0 %vm1294_vm2, %v2780_v45 }
 0x1a1   : > { %v1015_v55 = vmul.f32 1.442695, %v989_v48  ;;  %v966_v56 = vpop.xlane.xlu1 %965  ;;  %v1033_v60 = vsel %vm930_vm1, %v9467_v53, 0.0  ;;  %v9472_v0 = vpop.eup %8588  ;;  %7780 = vmatmul.mubr.msk.f32.gmra.mrb[78].mxu0 %vm1294_vm2, %v2781_v24 }
 0x1a2   : > { %8598 = vpow2.f32 %v1013_v54  ;;  %v990_v42 = vsub.f32 %v9225_v57, %v966_v56  ;;  %v969_v62 = vpop.xlane.xlu0 %968  ;;  %v1039_v57 = vsel %vm930_vm1, %v9472_v0, 0.0 }
 0x1a3   : > { %1034 = vadd.xlane.f32.xlu0 %v1033_v60  ;;  %v991_v1 = vsub.f32 %v9251_v21, %v969_v62  ;;  %8600 = vpow2.f32 %v1015_v55 }
 0x1a4   : > { %v9475_v4 = vpop.eup %8590  ;;  %v1017_v3 = vmul.f32 1.442695, %v990_v42 }
 0x1a5   : > { %v1019_v5 = vmul.f32 1.442695, %v991_v1  ;;  %v972_v7 = vpop.xlane.xlu1 %971  ;;  %v1042_v46 = vsel %vm930_vm1, %v9475_v4, 0.0  ;;  %v9482_v10 = vpop.eup %8592 }
 0x1a6   : > { %8602 = vpow2.f32 %v1017_v3  ;;  %v992_v8 = vsub.f32 %v9245_v14, %v972_v7  ;;  %1043 = vadd.xlane.f32.xlu1 %v1042_v46  ;;  %v975_v9 = vpop.xlane.xlu0 %974  ;;  %v1045_v19 = vsel %vm930_vm1, %v9482_v10, 0.0 }
 0x1a7   : > { %1040 = vadd.xlane.f32.xlu0 %v1039_v57  ;;  %v993_v21 = vsub.f32 %v9271_v39, %v975_v9  ;;  %8604 = vpow2.f32 %v1019_v5 }
 0x1a8   : > { %v9485_v12 = vpop.eup %8594  ;;  %v1021_v13 = vmul.f32 1.442695, %v992_v8 }
 0x1a9   : > { %v1023_v15 = vmul.f32 1.442695, %v993_v21  ;;  %v978_v16 = vpop.xlane.xlu1 %977  ;;  %v1048_v17 = vsel %vm930_vm1, %v9485_v12, 0.0  ;;  %v9492_v20 = vpop.eup %8596 }
 0x1aa   : > { %8606 = vpow2.f32 %v1021_v13  ;;  %v994_v14 = vsub.f32 %v9265_v32, %v978_v16  ;;  %1049 = vadd.xlane.f32.xlu1 %v1048_v17  ;;  %v1051_v26 = vsel %vm930_vm1, %v9492_v20, 0.0 }
 0x1ab   : > { %1046 = vadd.xlane.f32.xlu0 %v1045_v19  ;;  %8608 = vpow2.f32 %v1023_v15 }
 0x1ac   : > { %v9494_v39 = vpop.eup %8598  ;;  %v1025_v23 = vmul.f32 1.442695, %v994_v14 }
 0x1ad   : > { %v1054_v25 = vsel %vm930_vm1, %v9494_v39, 0.0  ;;  %v9500_v32 = vpop.eup %8600 }
 0x1ae   : > { %8610 = vpow2.f32 %v1025_v23  ;;  %1055 = vadd.xlane.f32.xlu1 %v1054_v25  ;;  %v1057_v29 = vsel %vm930_vm1, %v9500_v32, 0.0 }
 0x1af   : > { %1052 = vadd.xlane.f32.xlu0 %v1051_v26  ;;  %v9592_v26 = vld [vmem:[%s11371_s24 + $0x1] ss:$0 sm:$0xff] }
 0x1b0   : > { %v9502_v27 = vpop.eup %8602 }
 0x1b1   : > { %v1060_v28 = vsel %vm930_vm1, %v9502_v27, 0.0  ;;  %v9508_v63 = vpop.eup %8604 }
 0x1b2   : > { %1061 = vadd.xlane.f32.xlu1 %v1060_v28  ;;  %v1063_v37 = vsel %vm930_vm1, %v9508_v63, 0.0 }
 0x1b3   : > { %1058 = vadd.xlane.f32.xlu0 %v1057_v29 }
 0x1b4   : > { %v9510_v31 = vpop.eup %8606 }
 0x1b5   : > { %v1066_v33 = vsel %vm930_vm1, %v9510_v31, 0.0  ;;  %v9518_v38 = vpop.eup %8608 }
 0x1b6   : > { %1067 = vadd.xlane.f32.xlu1 %v1066_v33  ;;  %v1069_v44 = vsel %vm930_vm1, %v9518_v38, 0.0 }
 0x1b7   : > { %1064 = vadd.xlane.f32.xlu0 %v1063_v37 }
 0x1b8   : > { %v9521_v6 = vpop.eup %8610 }
 0x1b9   : > { %v1072_v41 = vsel %vm930_vm1, %v9521_v6, 0.0 }
 0x1ba   : > { %1073 = vadd.xlane.f32.xlu1 %v1072_v41 }
 0x1bb   : > { %1070 = vadd.xlane.f32.xlu0 %v1069_v44 }
 0x1d4   : > { %v9530_v58 = vpop.f32.mrb[16].mxu0 }
 0x1d5   : > { %v9532_v59 = vpop.f32.mrb[17].mxu0 }
 0x1d8   : > { %v9534_v47 = vpop.f32.mrb[18].mxu0 }
 0x1d9   : > { %v9536_v49 = vpop.f32.mrb[19].mxu0 }
 0x1dc   : > { %v9538_v50 = vpop.f32.mrb[20].mxu0 }
 0x1dd   : > { %v9540_v51 = vpop.f32.mrb[21].mxu0 }
 0x1e0   : > { %v7553_v30 = vpop.f32.mrb[22].mxu0 }
 0x1e1   : > { %v9548_v52 = vadd.f32 %v7553_v30, %v9545_v22  ;;  %v1439_v48 = vpop.f32.mrb[23].mxu0 }
 0x1e2   : > { %v9551_v54 = vadd.f32 %v9545_v22, %v1439_v48 }
 0x1e4   : > { %v7556_v55 = vpop.f32.mrb[24].mxu0 }
 0x1e5   : > { %v9554_v56 = vadd.f32 %v7556_v55, %v9545_v22  ;;  %v1449_v60 = vpop.f32.mrb[25].mxu0 }
 0x1e6   : > { %v9557_v42 = vadd.f32 %v9545_v22, %v1449_v60 }
 0x1e8   : > { %11372 = vst [vmem:[#allocation2_spill] sm:$0xff] %v9557_v42  ;;  %v7559_v62 = vpop.f32.mrb[26].mxu0 }
 0x1e9   : > { %v9560_v1 = vadd.f32 %v7559_v62, %v9545_v22  ;;  %v1459_v3 = vpop.f32.mrb[27].mxu0 }
 0x1ea   : > { %v9563_v5 = vadd.f32 %v9545_v22, %v1459_v3 }
 0x1eb   : > { %11373 = vst [vmem:[#allocation3_spill] sm:$0xff] %v9560_v1 }
 0x1ec   : > { %11374 = vst [vmem:[#allocation4_spill] sm:$0xff] %v9563_v5  ;;  %v7562_v7 = vpop.f32.mrb[28].mxu0 }
 0x1ed   : > { %v9566_v46 = vadd.f32 %v7562_v7, %v9545_v22  ;;  %v1469_v8 = vpop.f32.mrb[29].mxu0 }
 0x1ee   : > { %v9569_v57 = vadd.f32 %v9545_v22, %v1469_v8 }
 0x1ef   : > { %11375 = vst [vmem:[#allocation5_spill] sm:$0xff] %v9566_v46 }
 0x1f0   : > { %11376 = vst [vmem:[#allocation6_spill] sm:$0xff] %v9569_v57  ;;  %v7565_v9 = vpop.f32.mrb[30].mxu0 }
 0x1f1   : > { %v9572_v21 = vadd.f32 %v7565_v9, %v9545_v22  ;;  %v1479_v13 = vpop.f32.mrb[31].mxu0 }
 0x1f2   : > { %v9575_v15 = vadd.f32 %v9545_v22, %v1479_v13 }
 0x1f3   : > { %11377 = vst [vmem:[#allocation7_spill] sm:$0xff] %v9572_v21 }
 0x1f4   : > { %11378 = vst [vmem:[#allocation8_spill] sm:$0xff] %v9575_v15  ;;  %v9577_v16 = vpop.f32.mrb[32].mxu0 }
 0x1f5   : > { %v9579_v17 = vpop.f32.mrb[33].mxu0 }
 0x1f8   : > { %v9581_v14 = vpop.f32.mrb[34].mxu0 }
 0x1f9   : > { %v9583_v19 = vpop.f32.mrb[35].mxu0 }
 0x1fc   : > { %v9585_v23 = vpop.f32.mrb[36].mxu0 }
 0x1fd   : > { %v9587_v25 = vpop.f32.mrb[37].mxu0 }
 0x200   : > { %v7625_v28 = vpop.f32.mrb[38].mxu0 }
 0x201   : > { %v9595_v29 = vadd.f32 %v7625_v28, %v9592_v26  ;;  %v1951_v33 = vpop.f32.mrb[39].mxu0 }
 0x202   : > { %v9598_v61 = vadd.f32 %v9592_v26, %v1951_v33 }
 0x204   : > { %v7628_v37 = vpop.f32.mrb[40].mxu0 }
 0x205   : > { %v9601_v40 = vadd.f32 %v7628_v37, %v9592_v26  ;;  %v1961_v41 = vpop.f32.mrb[41].mxu0 }
 0x206   : > { %v9604_v43 = vadd.f32 %v9592_v26, %v1961_v41 }
 0x208   : > { %11379 = vst [vmem:[#allocation9_spill] sm:$0xff] %v9604_v43  ;;  %v7631_v44 = vpop.f32.mrb[42].mxu0  ;;  %v11395_v43 = vmov 1  }
 0x209   : > { %v9607_v11 = vadd.f32 %v7631_v44, %v9592_v26  ;;  %v1971_v24 = vpop.f32.mrb[43].mxu0  ;;  %v9639_v44 = vld [vmem:[%s11371_s24 + $0x2] ss:$0 sm:$0xff] }
 0x20a   : > { %v9610_v45 = vadd.f32 %v9592_v26, %v1971_v24 }
 0x20b   : > { %11380 = vst [vmem:[#allocation10_spill] sm:$0xff] %v9607_v11 }
 0x20c   : > { %11381 = vst [vmem:[#allocation11_spill] sm:$0xff] %v9610_v45  ;;  %v7634_v30 = vpop.f32.mrb[44].mxu0 }
 0x20d   : > { %v9613_v48 = vadd.f32 %v7634_v30, %v9592_v26  ;;  %v1981_v55 = vpop.f32.mrb[45].mxu0 }
 0x20e   : > { %v9616_v60 = vadd.f32 %v9592_v26, %v1981_v55 }
 0x20f   : > { %11382 = vst [vmem:[#allocation12_spill] sm:$0xff] %v9613_v48 }
 0x210   : > { %11383 = vst [vmem:[#allocation13_spill] sm:$0xff] %v9616_v60  ;;  %v7637_v62 = vpop.f32.mrb[46].mxu0 }
 0x211   : > { %v9619_v3 = vadd.f32 %v7637_v62, %v9592_v26  ;;  %v1991_v7 = vpop.f32.mrb[47].mxu0 }
 0x212   : > { %v9622_v8 = vadd.f32 %v9592_v26, %v1991_v7 }
 0x213   : > { %11384 = vst [vmem:[#allocation14_spill] sm:$0xff] %v9619_v3 }
 0x214   : > { %11385 = vst [vmem:[#allocation15_spill] sm:$0xff] %v9622_v8  ;;  %v9624_v9 = vpop.f32.mrb[48].mxu0 }
 0x215   : > { %v9626_v13 = vpop.f32.mrb[49].mxu0 }
 0x218   : > { %v9628_v28 = vpop.f32.mrb[50].mxu0 }
 0x219   : > { %v9630_v33 = vpop.f32.mrb[51].mxu0 }
 0x21c   : > { %v9632_v37 = vpop.f32.mrb[52].mxu0 }
 0x21d   : > { %v9634_v41 = vpop.f32.mrb[53].mxu0 }
 0x220   : > { %v7697_v24 = vpop.f32.mrb[54].mxu0 }
 0x221   : > { %v9642_v30 = vadd.f32 %v7697_v24, %v9639_v44  ;;  %v2447_v55 = vpop.f32.mrb[55].mxu0 }
 0x222   : > { %v9645_v7 = vadd.f32 %v9639_v44, %v2447_v55 }
 0x224   : > { %v7700_v34 = vpop.f32.mrb[56].mxu0 }
 0x225   : > { %v9648_v35 = vadd.f32 %v7700_v34, %v9639_v44  ;;  %v2457_v8 = vpop.f32.mrb[57].mxu0 }
 0x226   : > { %v9651_v15 = vadd.f32 %v9639_v44, %v2457_v8 }
 0x227   : > { %v1032_v62 = vpop.xlane.xlu1 %1031 }
 0x228   : > { %8612 = vrcp.f32 %v1032_v62  ;;  %11386 = vst [vmem:[#allocation16_spill] sm:$0xff] %v9651_v15  ;;  %v7703_v3 = vpop.f32.mrb[58].mxu0 }
 0x229   : > { %v9654_v21 = vadd.f32 %v7703_v3, %v9639_v44  ;;  %v2467_v24 = vpop.f32.mrb[59].mxu0 }
 0x22a   : > { %v9657_v57 = vadd.f32 %v9639_v44, %v2467_v24 }
 0x22b   : > { %11387 = vst [vmem:[#allocation17_spill] sm:$0xff] %v9654_v21  ;;  %v1038_v60 = vpop.xlane.xlu1 %1037 }
 0x22c   : > { %11388 = vst [vmem:[#allocation18_spill] sm:$0xff] %v9657_v57  ;;  %v1029_v55 = vpop.xlane.xlu0 %1028  ;;  %v7706_v48 = vpop.f32.mrb[60].mxu0 }
 0x22d   : > { %8614 = vrcp.f32 %v1029_v55  ;;  %v9660_v62 = vadd.f32 %v7706_v48, %v9639_v44  ;;  %v2477_v34 = vpop.f32.mrb[61].mxu0 }
 0x22e   : > { %v9663_v46 = vadd.f32 %v9639_v44, %v2477_v34  ;;  %8616 = vrcp.f32 %v1038_v60 }
 0x22f   : > { %11389 = vst [vmem:[#allocation19_spill] sm:$0xff] %v9660_v62 }
 0x230   : > { %11390 = vst [vmem:[#allocation20_spill] sm:$0xff] %v9663_v46  ;;  %v7709_v8 = vpop.f32.mrb[62].mxu0  ;;  %v11357_v46 = vmov 1  }
 0x231   : > { %v9666_v3 = vadd.f32 %v7709_v8, %v9639_v44  ;;  %v2487_v45 = vpop.f32.mrb[63].mxu0  ;;  %v11393_v8 = vmov 0  }
 0x232   : > { %v8613_v5 = vpop.eup %8612  ;;  %v9669_v24 = vadd.f32 %v9639_v44, %v2487_v45  ;;  %v11355_v45 = vmov 2  }
 0x233   : > { %11391 = vst [vmem:[#allocation21_spill] sm:$0xff] %v9666_v3  ;;  %v1078_v57 = vmul.f32 %v8613_v5, %v9451_v2  ;;  %v1044_v48 = vpop.xlane.xlu1 %1043  ;;  %v1035_v3 = vpop.xlane.xlu0 %1034 }
 0x234   : > { %11392 = vst [vmem:[#allocation22_spill] sm:$0xff] %v9669_v24  ;;  %v9672_v55 = vpop.f32.mrb[64].mxu0  ;;  %8618 = vrcp.f32 %v1044_v48 }
 0x235   : > { %1511 = vperm.xlu1 %8466, %v1078_v57   ;;  %3013 = vperm.xlu0 %8469, %v1078_v57   ;;  %v9678_v5 = vpop.f32.mrb[65].mxu0 }
 0x237   : > { %v8615_v62 = vpop.eup %8614  ;;  %v1050_v21 = vpop.xlane.xlu1 %1049 }
 0x238   : > { %v1076_v34 = vmul.f32 %v8615_v62, %v9459_v36  ;;  %v8617_v60 = vpop.eup %8616  ;;  %v9681_v24 = vpop.f32.mrb[66].mxu0  ;;  %v11394_v62 = vmov 3  }
 0x239   : > { %8467 = vset.pattern.permute.xlu1 %v11357_v46  ;;  %8470 = vset.pattern.permute.xlu0 %v11393_v8  ;;  %v1082_v2 = vmul.f32 %v8617_v60, %v9457_v18  ;;  %v1041_v36 = vpop.xlane.xlu0 %1040  ;;  %v9688_v60 = vpop.f32.mrb[67].mxu0 }
 0x23a   : > { %2021 = vperm.xlu1 %8467, %v1078_v57   ;;  %1506 = vperm.xlu0 %8470, %v1076_v34   ;;  %8620 = vrcp.f32 %v1041_v36  ;;  %v3104_v36 = vld [vmem:[%s11331_s8] sm:$0xff] }
 0x23b   : > { %8622 = vrcp.f32 %v1050_v21  ;;  %v1056_v15 = vpop.xlane.xlu1 %1055 }
 0x23c   : > { %8624 = vrcp.f32 %v1035_v3 }
 0x23d   : > { %v1047_v11 = vpop.xlane.xlu0 %1046 }
 0x23e   : > { %8468 = vset.pattern.permute.xlu1 %v11355_v45  ;;  %1521 = vperm.xlu0 %8470, %v1082_v2   ;;  %v8619_v48 = vpop.eup %8618  ;;  %8626 = vrcp.f32 %v1047_v11  ;;  %v11396_v11 = vmov 2  }
 0x23f   : > { %2517 = vperm.xlu1 %8468, %v1078_v57   ;;  %v9686_v18 = vmul.f32 %v8619_v48, %v9475_v4  ;;  %v9693_v57 = vpop.f32.mrb[68].mxu0  ;;  %v3105_v4 = vld [vmem:[%s11331_s8 + $0x8] sm:$0xff]  ;;  %8628 = vrcp.f32 %v1056_v15 }
 0x240   : > { %v8326_v48 = vpack.c.bf16 %v3105_v4, %v3104_v36 }
 0x242   : > { %8476 = vset.pattern.permute.xlu0 %v11394_v62  ;;  %8327 = vmatprep.subr.bf16.mxu1 %v8326_v48 }
 0x243   : > { %8471 = vset.pattern.permute.xlu1 %v11357_v46  ;;  %3021 = vperm.xlu0 %8476, %v1082_v2   ;;  %v3107_v46 = vld [vmem:[%s11331_s8 + $0x18] sm:$0xff] }
 0x244   : > { %2017 = vperm.xlu1 %8471, %v1076_v34   ;;  %v8621_v21 = vpop.eup %8620  ;;  %8329 = vmatpush3.bf16.msra.mxu1 %v8326_v48 }
 0x245   : > { %v9711_v4 = vmul.f32 %v8621_v21, %v9472_v0  ;;  %v8623_v1 = vpop.eup %8622  ;;  %v1062_v21 = vpop.xlane.xlu1 %1061 }
 0x246   : > { %v9717_v3 = vmul.f32 %v8623_v1, %v9485_v12  ;;  %v1053_v12 = vpop.xlane.xlu0 %1052 }
 0x247   : > { %8481 = vset.pattern.permute.xlu0 %v11393_v8  ;;  %8630 = vrcp.f32 %v1053_v12 }
 0x248   : > { %8472 = vset.pattern.permute.xlu1 %v11355_v45  ;;  %1531 = vperm.xlu0 %8481, %v9686_v18   ;;  %v3106_v45 = vld [vmem:[%s11331_s8 + $0x10] sm:$0xff]  ;;  %8632 = vrcp.f32 %v1062_v21 }
 0x249   : > { %2513 = vperm.xlu1 %8472, %v1076_v34   ;;  %v8330_v36 = vpack.c.bf16 %v3107_v46, %v3106_v45  ;;  %v9719_v46 = vpop.f32.mrb[69].mxu0  ;;  %v1068_v12 = vpop.xlane.xlu1 %1067 }
 0x24a   : > { %v9722_v0 = vpop.f32.mrb[70].mxu0 }
 0x24b   : > { %8331 = vmatprep.subr.bf16.mxu1 %v8330_v36 }
 0x24c   : > { %8484 = vset.pattern.permute.xlu0 %v11394_v62  ;;  %8333 = vmatpush3.bf16.msra.mxu1 %v8330_v36 }
 0x24d   : > { %8473 = vset.pattern.permute.xlu1 %v11394_v62  ;;  %3029 = vperm.xlu0 %8484, %v9686_v18  }
 0x24e   : > { %3009 = vperm.xlu1 %8473, %v1076_v34   ;;  %v8625_v34 = vpop.eup %8624 }
 0x24f   : > { %v8627_v45 = vpop.eup %8626  ;;  %v1080_v48 = vmul.f32 %v8625_v34, %v9467_v53  ;;  %v9739_v53 = vpop.f32.mrb[71].mxu0 }
 0x250   : > { %v9730_v1 = vmul.f32 %v8627_v45, %v9482_v10  ;;  %v8629_v15 = vpop.eup %8628  ;;  %v9741_v10 = vpop.f32.mrb[72].mxu0 }
 0x251   : > { %8485 = vset.pattern.permute.xlu0 %v11393_v8  ;;  %v8631_v36 = vpop.eup %8630  ;;  %v1059_v34 = vpop.xlane.xlu0 %1058 }
 0x252   : > { %8474 = vset.pattern.permute.xlu1 %v11395_v43  ;;  %1526 = vperm.xlu0 %8485, %v9711_v4   ;;  %v8633_v45 = vpop.eup %8632  ;;  %8634 = vrcp.f32 %v1059_v34 }
 0x253   : > { %2029 = vperm.xlu1 %8474, %v1082_v2   ;;  %8636 = vrcp.f32 %v1068_v12 }
 0x256   : > { %1541 = vperm.xlu0 %8485, %v9717_v3  }
 0x257   : > { %8475 = vset.pattern.permute.xlu1 %v11396_v11 }
 0x258   : > { %2525 = vperm.xlu1 %8475, %v1082_v2   ;;  %v9736_v2 = vmul.f32 %v8629_v15, %v9494_v39  ;;  %v9748_v39 = vmul.f32 %v8631_v36, %v9492_v20  ;;  %v9754_v15 = vmul.f32 %v8633_v45, %v9502_v27  ;;  %v1065_v27 = vpop.xlane.xlu0 %1064  ;;  %v1074_v45 = vpop.xlane.xlu1 %1073 }
 0x259   : > { %8638 = vrcp.f32 %v1065_v27 }
 0x25a   : > { %8491 = vset.pattern.permute.xlu0 %v11394_v62  ;;  %8640 = vrcp.f32 %v1074_v45 }
 0x25b   : > { %3037 = vperm.xlu0 %8491, %v9717_v3  }
 0x25c   : > { %8477 = vset.pattern.permute.xlu1 %v11393_v8  ;;  %v8635_v21 = vpop.eup %8634 }
 0x25d   : > { %1516 = vperm.xlu1 %8477, %v1080_v48   ;;  %v9768_v36 = vmul.f32 %v8635_v21, %v9500_v32  ;;  %v8637_v34 = vpop.eup %8636 }
 0x25e   : > { %v9776_v12 = vmul.f32 %v8637_v34, %v9510_v31 }
 0x25f   : > { %8492 = vset.pattern.permute.xlu0 %v11393_v8 }
 0x260   : > { %1536 = vperm.xlu0 %8492, %v9730_v1  }
 0x261   : > { %8478 = vset.pattern.permute.xlu1 %v11395_v43 }
 0x262   : > { %2025 = vperm.xlu1 %8478, %v1080_v48  }
 0x263   : > { %v8639_v21 = vpop.eup %8638 }
 0x264   : > { %1551 = vperm.xlu0 %8492, %v9736_v2   ;;  %v9788_v31 = vmul.f32 %v8639_v21, %v9508_v63  ;;  %v8641_v27 = vpop.eup %8640 }
 0x266   : > { %8479 = vset.pattern.permute.xlu1 %v11396_v11 }
 0x267   : > { %2521 = vperm.xlu1 %8479, %v1080_v48  }
 0x268   : > { %8498 = vset.pattern.permute.xlu0 %v11394_v62 }
 0x269   : > { %3045 = vperm.xlu0 %8498, %v9736_v2  }
 0x26b   : > { %8480 = vset.pattern.permute.xlu1 %v11394_v62 }
 0x26c   : > { %3017 = vperm.xlu1 %8480, %v1080_v48   ;;  %v9758_v48 = vpop.f32.mrb[73].mxu0 }
 0x26d   : > { %8499 = vset.pattern.permute.xlu0 %v11393_v8  ;;  %11397 = vst [vmem:[#allocation23_spill] sm:$0xff] %v9758_v48  ;;  %v9760_v20 = vpop.f32.mrb[74].mxu0 }
 0x26e   : > { %1546 = vperm.xlu0 %8499, %v9748_v39   ;;  %11398 = vst [vmem:[#allocation24_spill] sm:$0xff] %v9760_v20  ;;  %v1071_v20 = vpop.xlane.xlu0 %1070 }
 0x26f   : > { %8642 = vrcp.f32 %v1071_v20  ;;  %v9795_v20 = vmul.f32 %v8641_v27, %v9521_v6 }
 0x270   : > { %8482 = vset.pattern.permute.xlu1 %v11395_v43 }
 0x271   : > { %2037 = vperm.xlu1 %8482, %v9686_v18  }
 0x272   : > { %1561 = vperm.xlu0 %8499, %v9754_v15  }
 0x275   : > { %8483 = vset.pattern.permute.xlu1 %v11396_v11 }
 0x276   : > { %2533 = vperm.xlu1 %8483, %v9686_v18   ;;  %8505 = vset.pattern.permute.xlu0 %v11394_v62  ;;  %v9773_v18 = vpop.f32.mrb[75].mxu0 }
 0x277   : > { %3053 = vperm.xlu0 %8505, %v9754_v15   ;;  %11399 = vst [vmem:[#allocation25_spill] sm:$0xff] %v9773_v18  ;;  %v9781_v32 = vpop.f32.mrb[76].mxu0 }
 0x278   : > { %11400 = vst [vmem:[#allocation26_spill] sm:$0xff] %v9781_v32  ;;  %v1922_v32 = vadd.f32 %v9592_v26, %v9579_v17 }
 0x279   : > { %v8643_v34 = vpop.eup %8642 }
 0x27a   : > { %8486 = vset.pattern.permute.xlu1 %v11395_v43  ;;  %v9801_v63 = vmul.f32 %v8643_v34, %v9518_v38  ;;  %v1415_v38 = vadd.f32 %v9530_v58, %v9545_v22  ;;  %v2423_v34 = vadd.f32 %v9624_v9, %v9639_v44  ;;  %v2000_v42 = vmax.f32 %v1922_v32, 0.0 }
 0x27b   : > { %2033 = vperm.xlu1 %8486, %v9711_v4   ;;  %8506 = vset.pattern.permute.xlu0 %v11393_v8 }
 0x27c   : > { %1556 = vperm.xlu0 %8506, %v9768_v36   ;;  %v1489_v21 = vmax.f32 %v1415_v38, 0.0  ;;  %v2497_v38 = vmax.f32 %v2423_v34, 0.0 }
 0x27f   : > { %8487 = vset.pattern.permute.xlu1 %v11396_v11 }
 0x280   : > { %2529 = vperm.xlu1 %8487, %v9711_v4   ;;  %1571 = vperm.xlu0 %8506, %v9776_v12  }
 0x284   : > { %8488 = vset.pattern.permute.xlu1 %v11394_v62  ;;  %8512 = vset.pattern.permute.xlu0 %v11394_v62 }
 0x285   : > { %3025 = vperm.xlu1 %8488, %v9711_v4   ;;  %3061 = vperm.xlu0 %8512, %v9776_v12   ;;  %v9803_v4 = vpop.f32.mrb[77].mxu0 }
 0x286   : > { %11401 = vst [vmem:[#allocation27_spill] sm:$0xff] %v9803_v4  ;;  %v9806_v45 = vpop.f32.mrb[78].mxu0  ;;  %v1410_v4 = vadd.f32 %v9545_v22, %v9532_v59 }
 0x287   : > { %11402 = vst [vmem:[#allocation28_spill] sm:$0xff] %v9806_v45  ;;  %v9809_v6 = vpop.f32.mrb[79].mxu0 }
 0x288   : > { %11403 = vst [vmem:[#allocation29_spill] sm:$0xff] %v9809_v6 }
 0x289   : > { %8489 = vset.pattern.permute.xlu1 %v11395_v43  ;;  %8513 = vset.pattern.permute.xlu0 %v11393_v8 }
 0x28a   : > { %2045 = vperm.xlu1 %8489, %v9717_v3   ;;  %1566 = vperm.xlu0 %8513, %v9788_v31  }
 0x28e   : > { %8490 = vset.pattern.permute.xlu1 %v11396_v11  ;;  %1581 = vperm.xlu0 %8513, %v9795_v20  }
 0x28f   : > { %2541 = vperm.xlu1 %8490, %v9717_v3   ;;  %v1927_v3 = vadd.f32 %v9577_v16, %v9592_v26 }
 0x291   : > { %v2001_v27 = vmax.f32 %v1927_v3, 0.0 }
 0x292   : > { %1576 = vperm.xlu0 %8513, %v9801_v63  }
 0x293   : > { %8493 = vset.pattern.permute.xlu1 %v11395_v43 }
 0x294   : > { %2041 = vperm.xlu1 %8493, %v9730_v1  }
 0x296   : > { %8521 = vset.pattern.permute.xlu0 %v11394_v62 }
 0x297   : > { %3065 = vperm.xlu0 %8521, %v9801_v63  }
 0x298   : > { %8494 = vset.pattern.permute.xlu1 %v11396_v11 }
 0x299   : > { %2537 = vperm.xlu1 %8494, %v9730_v1  }
 0x29b   : > { %8528 = vset.pattern.permute.xlu0 %v11395_v43 }
 0x29d   : > { %8495 = vset.pattern.permute.xlu1 %v11394_v62 }
 0x29e   : > { %3033 = vperm.xlu1 %8495, %v9730_v1  }
 0x2a2   : > { %8496 = vset.pattern.permute.xlu1 %v11395_v43 }
 0x2a3   : > { %2053 = vperm.xlu1 %8496, %v9736_v2  }
 0x2a7   : > { %8497 = vset.pattern.permute.xlu1 %v11396_v11 }
 0x2a8   : > { %2549 = vperm.xlu1 %8497, %v9736_v2   ;;  %v9834_v2 = vld [vmem:[%s11371_s24 + $0x3] ss:$0 sm:$0xff] }
 0x2a9   : > { %v2919_v58 = vadd.f32 %v9672_v55, %v9834_v2  ;;  %v1488_v55 = vmax.f32 %v1410_v4, 0.0  ;;  %v2914_v32 = vadd.f32 %v9834_v2, %v9678_v5 }
 0x2ab   : > { %v2993_v9 = vmax.f32 %v2919_v58, 0.0 }
 0x2ac   : > { %8500 = vset.pattern.permute.xlu1 %v11395_v43 }
 0x2ad   : > { %2049 = vperm.xlu1 %8500, %v9748_v39  }
 0x2b1   : > { %8501 = vset.pattern.permute.xlu1 %v11396_v11 }
 0x2b2   : > { %2545 = vperm.xlu1 %8501, %v9748_v39  }
 0x2b4   : > { %v1512_v1 = vpop.permute.xlu1 %1511  ;;  %v3014_v3 = vpop.permute.xlu0 %3013 }
 0x2b5   : > { %v1585_v45 = vmul.f32 %v1512_v1, %v1489_v21  ;;  %v2418_v1 = vadd.f32 %v9639_v44, %v9626_v13  ;;  %v3073_v21 = vmul.f32 %v3014_v3, %v2993_v9 }
 0x2b6   : > { %8502 = vset.pattern.permute.xlu1 %v11394_v62 }
 0x2b7   : > { %3041 = vperm.xlu1 %8502, %v9748_v39  }
 0x2b9   : > { %v2022_v16 = vpop.permute.xlu1 %2021 }
 0x2ba   : > { %v2081_v6 = vmul.f32 %v2022_v16, %v2001_v27  ;;  %v1507_v27 = vpop.permute.xlu0 %1506  ;;  %v2496_v16 = vmax.f32 %v2418_v1, 0.0 }
 0x2bb   : > { %8503 = vset.pattern.permute.xlu1 %v11395_v43 }
 0x2bc   : > { %v2097_v18 = vadd.f32 %v2081_v6, %v1585_v45  ;;  %2061 = vperm.xlu1 %8503, %v9754_v15   ;;  %v1584_v45 = vmul.f32 %v1507_v27, %v1488_v55 }
 0x2be   : > { %v2518_v39 = vpop.permute.xlu1 %2517  ;;  %v1522_v55 = vpop.permute.xlu0 %1521 }
 0x2bf   : > { %v2577_v48 = vmul.f32 %v2518_v39, %v2497_v38  ;;  %v2992_v38 = vmax.f32 %v2914_v32, 0.0  ;;  %v2433_v39 = vadd.f32 %v9628_v28, %v9639_v44 }
 0x2c0   : > { %8504 = vset.pattern.permute.xlu1 %v11396_v11 }
 0x2c1   : > { %v2593_v34 = vadd.f32 %v2577_v48, %v2097_v18  ;;  %2557 = vperm.xlu1 %8504, %v9754_v15   ;;  %v1425_v15 = vadd.f32 %v9534_v47, %v9545_v22  ;;  %v2929_v47 = vadd.f32 %v9681_v24, %v9834_v2  ;;  %v1420_v24 = vadd.f32 %v9545_v22, %v9536_v49 }
 0x2c3   : > { %v3089_v59 = vadd.f32 %v3073_v21, %v2593_v34  ;;  %v2018_v17 = vpop.permute.xlu1 %2017  ;;  %v1491_v5 = vmax.f32 %v1425_v15, 0.0  ;;  %v2499_v34 = vmax.f32 %v2433_v39, 0.0  ;;  %v2995_v28 = vmax.f32 %v2929_v47, 0.0  ;;  %v3560_v47 = vld [vmem:[%s11339_s16 + $0x8] sm:$0xff] }
 0x2c4   : > { %v2080_v6 = vmul.f32 %v2018_v17, %v2000_v42  ;;  %v1937_v42 = vadd.f32 %v9581_v14, %v9592_v26  ;;  %v2428_v15 = vadd.f32 %v9639_v44, %v9630_v33  ;;  %v1435_v33 = vadd.f32 %v9538_v50, %v9545_v22 }
 0x2c5   : > { %8507 = vset.pattern.permute.xlu1 %v11395_v43  ;;  %v1587_v21 = vmul.f32 %v1522_v55, %v1491_v5  ;;  %v1947_v39 = vadd.f32 %v9585_v23, %v9592_v26  ;;  %v2443_v23 = vadd.f32 %v9632_v37, %v9639_v44  ;;  %v1430_v37 = vadd.f32 %v9545_v22, %v9540_v51 }
 0x2c6   : > { %v2096_v4 = vadd.f32 %v2080_v6, %v1584_v45  ;;  %2057 = vperm.xlu1 %8507, %v9768_v36   ;;  %v2003_v9 = vmax.f32 %v1937_v42, 0.0  ;;  %v3022_v45 = vpop.permute.xlu0 %3021 }
 0x2c7   : > { %v3075_v32 = vmul.f32 %v3022_v45, %v2995_v28  ;;  %v2005_v50 = vmax.f32 %v1947_v39, 0.0 }
 0x2c8   : > { %v2514_v58 = vpop.permute.xlu1 %2513 }
 0x2c9   : > { %v2576_v13 = vmul.f32 %v2514_v58, %v2496_v16  ;;  %v1932_v16 = vadd.f32 %v9592_v26, %v9583_v19  ;;  %v2924_v19 = vadd.f32 %v9834_v2, %v9688_v60  ;;  %v3559_v60 = vld [vmem:[%s11339_s16] sm:$0xff] }
 0x2ca   : > { %8508 = vset.pattern.permute.xlu1 %v11396_v11 }
 0x2cb   : > { %v2592_v48 = vadd.f32 %v2576_v13, %v2096_v4  ;;  %2553 = vperm.xlu1 %8508, %v9768_v36   ;;  %v1490_v13 = vmax.f32 %v1420_v24, 0.0 }
 0x2cd   : > { %v3010_v18 = vpop.permute.xlu1 %3009 }
 0x2ce   : > { %v3072_v3 = vmul.f32 %v3010_v18, %v2992_v38  ;;  %v2002_v38 = vmax.f32 %v1932_v16, 0.0  ;;  %v2498_v18 = vmax.f32 %v2428_v15, 0.0  ;;  %v1942_v16 = vadd.f32 %v9592_v26, %v9587_v25  ;;  %v3561_v25 = vld [vmem:[%s11339_s16 + $0x10] sm:$0xff]  ;;  %v3562_v26 = vld [vmem:[%s11339_s16 + $0x18] sm:$0xff] }
 0x2cf   : > { %8509 = vset.pattern.permute.xlu1 %v11394_v62 }
 0x2d0   : > { %v3088_v1 = vadd.f32 %v3072_v3, %v2592_v48  ;;  %3049 = vperm.xlu1 %8509, %v9768_v36  }
 0x2d2   : > { %v2030_v14 = vpop.permute.xlu1 %2029  ;;  %7790 = vmatprep.mubr.msk.f32.mxu1 %vm736_vm0, %v3088_v1 }
 0x2d3   : > { %v2083_v27 = vmul.f32 %v2030_v14, %v2003_v9  ;;  %7791 = vmatmul.mubr.msk.f32.vlgmr.msra.gmra.mrb[64].mxu1 %vm736_vm0, %v3089_v59  ;;  %v2994_v9 = vmax.f32 %v2924_v19, 0.0  ;;  %v1532_v14 = vpop.permute.xlu0 %1531  ;;  %v8342_v19 = vpack.c.bf16 %v3562_v26, %v3561_v25 }
 0x2d4   : > { %8510 = vset.pattern.permute.xlu1 %v11395_v43 }
 0x2d5   : > { %v2099_v17 = vadd.f32 %v2083_v27, %v1587_v21  ;;  %2069 = vperm.xlu1 %8510, %v9776_v12   ;;  %v8338_v27 = vpack.c.bf16 %v3560_v47, %v3559_v60  ;;  %v1495_v60 = vmax.f32 %v9548_v52, 0.0  ;;  %v2949_v47 = vadd.f32 %v9722_v0, %v9834_v2 }
 0x2d7   : > { %v2526_v6 = vpop.permute.xlu1 %2525  ;;  %8339 = vmatprep.subr.bf16.mxu1 %v8338_v27  ;;  %v3030_v24 = vpop.permute.xlu0 %3029  ;;  %v2999_v52 = vmax.f32 %v2949_v47, 0.0 }
 0x2d8   : > { %v2579_v36 = vmul.f32 %v2526_v6, %v2499_v34  ;;  %v1493_v34 = vmax.f32 %v1435_v33, 0.0  ;;  %8341 = vmatpush3.bf16.msra.mxu1 %v8338_v27 }
 0x2d9   : > { %8511 = vset.pattern.permute.xlu1 %v11396_v11  ;;  %8343 = vmatprep.subr.bf16.mxu1 %v8342_v19 }
 0x2da   : > { %v2595_v59 = vadd.f32 %v2579_v36, %v2099_v17  ;;  %2565 = vperm.xlu1 %8511, %v9776_v12   ;;  %v2939_v17 = vadd.f32 %v9693_v57, %v9834_v2  ;;  %v1589_v45 = vmul.f32 %v1532_v14, %v1493_v34  ;;  %v2501_v36 = vmax.f32 %v2443_v23, 0.0 }
 0x2dc   : > { %v3091_v4 = vadd.f32 %v3075_v32, %v2595_v59  ;;  %v1517_v58 = vpop.permute.xlu1 %1516  ;;  %v2997_v57 = vmax.f32 %v2939_v17, 0.0  ;;  %8345 = vmatpush3.bf16.msra.mxu1 %v8342_v19  ;;  %v2006_v17 = vmax.f32 %v9598_v61, 0.0 }
 0x2dd   : > { %v1586_v49 = vmul.f32 %v1517_v58, %v1490_v13  ;;  %v1492_v13 = vmax.f32 %v1430_v37, 0.0 }
 0x2de   : > { %8514 = vset.pattern.permute.xlu1 %v11395_v43  ;;  %v3077_v15 = vmul.f32 %v3030_v24, %v2997_v57 }
 0x2df   : > { %2065 = vperm.xlu1 %8514, %v9788_v31  }
 0x2e1   : > { %v2026_v42 = vpop.permute.xlu1 %2025 }
 0x2e2   : > { %v2082_v48 = vmul.f32 %v2026_v42, %v2002_v38  ;;  %v2004_v38 = vmax.f32 %v1942_v16, 0.0  ;;  %v1527_v42 = vpop.permute.xlu0 %1526  ;;  %v2502_v16 = vmax.f32 %v9645_v7, 0.0 }
 0x2e3   : > { %8515 = vset.pattern.permute.xlu1 %v11396_v11 }
 0x2e4   : > { %v2098_v12 = vadd.f32 %v2082_v48, %v1586_v49  ;;  %2561 = vperm.xlu1 %8515, %v9788_v31   ;;  %v1588_v48 = vmul.f32 %v1527_v42, %v1492_v13 }
 0x2e6   : > { %v2522_v3 = vpop.permute.xlu1 %2521 }
 0x2e7   : > { %v2578_v5 = vmul.f32 %v2522_v3, %v2498_v18 }
 0x2e8   : > { %8516 = vset.pattern.permute.xlu1 %v11394_v62 }
 0x2e9   : > { %v2594_v55 = vadd.f32 %v2578_v5, %v2098_v12  ;;  %3057 = vperm.xlu1 %8516, %v9788_v31  }
 0x2eb   : > { %v3018_v1 = vpop.permute.xlu1 %3017 }
 0x2ec   : > { %v3074_v21 = vmul.f32 %v3018_v1, %v2994_v9 }
 0x2ed   : > { %8517 = vset.pattern.permute.xlu1 %v11395_v43 }
 0x2ee   : > { %v3090_v31 = vadd.f32 %v3074_v21, %v2594_v55  ;;  %2077 = vperm.xlu1 %8517, %v9795_v20   ;;  %v1542_v55 = vpop.permute.xlu0 %1541 }
 0x2ef   : > { %v1591_v21 = vmul.f32 %v1542_v55, %v1495_v60  ;;  %v11406_v60 = vld [vmem:[#allocation16_spill] sm:$0xff] }
 0x2f0   : > { %v2038_v28 = vpop.permute.xlu1 %2037  ;;  %7793 = vmatprep.mubr.msk.f32.mxu1 %vm736_vm0, %v3090_v31  ;;  %v1494_v31 = vmax.f32 %v9551_v54, 0.0 }
 0x2f1   : > { %v2085_v6 = vmul.f32 %v2038_v28, %v2005_v50  ;;  %7794 = vmatmul.mubr.msk.f32.gmra.mrb[66].mxu1 %vm736_vm0, %v3091_v4  ;;  %v2438_v4 = vadd.f32 %v9639_v44, %v9634_v41  ;;  %v2934_v41 = vadd.f32 %v9834_v2, %v9719_v46  ;;  %v2007_v46 = vmax.f32 %v9595_v29, 0.0 }
 0x2f2   : > { %8518 = vset.pattern.permute.xlu1 %v11396_v11  ;;  %v3038_v34 = vpop.permute.xlu0 %3037 }
 0x2f3   : > { %v2101_v32 = vadd.f32 %v2085_v6, %v1589_v45  ;;  %2573 = vperm.xlu1 %8518, %v9795_v20   ;;  %v2500_v12 = vmax.f32 %v2438_v4, 0.0  ;;  %v2996_v9 = vmax.f32 %v2934_v41, 0.0  ;;  %v3079_v28 = vmul.f32 %v3038_v34, %v2999_v52 }
 0x2f4   : > { %v1497_v4 = vmax.f32 %v9554_v56, 0.0  ;;  %v3324_v56 = vld [vmem:[%s11333_s10] sm:$0xff] }
 0x2f5   : > { %v2534_v59 = vpop.permute.xlu1 %2533 }
 0x2f6   : > { %v2581_v58 = vmul.f32 %v2534_v59, %v2501_v36  ;;  %v1537_v0 = vpop.permute.xlu0 %1536 }
 0x2f7   : > { %8519 = vset.pattern.permute.xlu1 %v11395_v43  ;;  %v1590_v24 = vmul.f32 %v1537_v0, %v1494_v31 }
 0x2f8   : > { %v2597_v49 = vadd.f32 %v2581_v58, %v2101_v32  ;;  %2073 = vperm.xlu1 %8519, %v9801_v63  }
 0x2fa   : > { %v3093_v51 = vadd.f32 %v3077_v15, %v2597_v49  ;;  %v2034_v22 = vpop.permute.xlu1 %2033  ;;  %v2009_v15 = vmax.f32 %v9601_v40, 0.0  ;;  %v2959_v49 = vadd.f32 %v9741_v10, %v9834_v2  ;;  %v3325_v40 = vld [vmem:[%s11333_s10 + $0x8] sm:$0xff] }
 0x2fb   : > { %v2084_v18 = vmul.f32 %v2034_v22, %v2004_v38  ;;  %v1552_v38 = vpop.permute.xlu0 %1551  ;;  %v2505_v22 = vmax.f32 %v9648_v35, 0.0  ;;  %v8334_v19 = vpack.c.bf16 %v3325_v40, %v3324_v56 }
 0x2fc   : > { %8520 = vset.pattern.permute.xlu1 %v11396_v11 }
 0x2fd   : > { %v2100_v44 = vadd.f32 %v2084_v18, %v1588_v48  ;;  %2569 = vperm.xlu1 %8520, %v9801_v63   ;;  %v3001_v48 = vmax.f32 %v2959_v49, 0.0  ;;  %8335 = vmatprep.subr.bf16.mxu0 %v8334_v19 }
 0x2fe   : > { %8337 = vmatpush3.bf16.msra.mxu0 %v8334_v19 }
 0x2ff   : > { %v2530_v3 = vpop.permute.xlu1 %2529  ;;  %v3046_v25 = vpop.permute.xlu0 %3045 }
 0x300   : > { %v2580_v5 = vmul.f32 %v2530_v3, %v2500_v12  ;;  %v11404_v12 = vld [vmem:[#allocation2_spill] sm:$0xff] }
 0x301   : > { %8522 = vset.pattern.permute.xlu1 %v11394_v62  ;;  %v1496_v41 = vmax.f32 %v11404_v12, 0.0 }
 0x302   : > { %v2596_v33 = vadd.f32 %v2580_v5, %v2100_v44  ;;  %3069 = vperm.xlu1 %8522, %v9795_v20   ;;  %v2503_v20 = vmax.f32 %v9642_v30, 0.0  ;;  %v2944_v30 = vadd.f32 %v9834_v2, %v9739_v53  ;;  %v1593_v53 = vmul.f32 %v1552_v38, %v1497_v4  ;;  %v11405_v44 = vld [vmem:[#allocation9_spill] sm:$0xff] }
 0x303   : > { %v2008_v3 = vmax.f32 %v11405_v44, 0.0  ;;  %v3081_v5 = vmul.f32 %v3046_v25, %v3001_v48  ;;  %v1547_v35 = vpop.permute.xlu0 %1546  ;;  %v11414_v25 = vld [vmem:[#allocation18_spill] sm:$0xff]  ;;  %v11415_v48 = vld [vmem:[#allocation25_spill] sm:$0xff] }
 0x304   : > { %v3026_v39 = vpop.permute.xlu1 %3025  ;;  %v2998_v58 = vmax.f32 %v2944_v30, 0.0  ;;  %v1592_v55 = vmul.f32 %v1547_v35, %v1496_v41 }
 0x305   : > { %v3076_v1 = vmul.f32 %v3026_v39, %v2996_v9 }
 0x306   : > { %8523 = vset.pattern.permute.xlu1 %v11393_v8 }
 0x307   : > { %v3092_v63 = vadd.f32 %v3076_v1, %v2596_v33  ;;  %v1562_v52 = vpop.permute.xlu0 %1561 }
 0x309   : > { %v2046_v14 = vpop.permute.xlu1 %2045  ;;  %7796 = vmatprep.mubr.msk.f32.mxu1 %vm736_vm0, %v3092_v63  ;;  %v11407_v63 = vld [vmem:[#allocation23_spill] sm:$0xff] }
 0x30a   : > { %v2087_v27 = vmul.f32 %v2046_v14, %v2007_v46  ;;  %7797 = vmatmul.mubr.msk.f32.gmra.mrb[68].mxu1 %vm736_vm0, %v3093_v51  ;;  %v2504_v46 = vmax.f32 %v11406_v60, 0.0  ;;  %v2954_v47 = vadd.f32 %v9834_v2, %v11407_v63 }
 0x30c   : > { %v2103_v50 = vadd.f32 %v2087_v27, %v1591_v21 }
 0x30e   : > { %v2542_v23 = vpop.permute.xlu1 %2541 }
 0x30f   : > { %v2583_v29 = vmul.f32 %v2542_v23, %v2503_v20  ;;  %v3000_v20 = vmax.f32 %v2954_v47, 0.0  ;;  %v11419_v47 = vld [vmem:[#allocation19_spill] sm:$0xff] }
 0x311   : > { %v2599_v45 = vadd.f32 %v2583_v29, %v2103_v50  ;;  %v11408_v29 = vld [vmem:[#allocation3_spill] sm:$0xff] }
 0x312   : > { %v1499_v31 = vmax.f32 %v11408_v29, 0.0 }
 0x313   : > { %v3095_v6 = vadd.f32 %v3079_v28, %v2599_v45  ;;  %v2042_v36 = vpop.permute.xlu1 %2041  ;;  %v11409_v28 = vld [vmem:[#allocation10_spill] sm:$0xff]  ;;  %v11410_v45 = vld [vmem:[#allocation24_spill] sm:$0xff] }
 0x314   : > { %v2086_v37 = vmul.f32 %v2042_v36, %v2006_v17  ;;  %v2011_v0 = vmax.f32 %v11409_v28, 0.0  ;;  %v11421_v28 = vld [vmem:[#allocation13_spill] sm:$0xff] }
 0x316   : > { %v2102_v32 = vadd.f32 %v2086_v37, %v1590_v24  ;;  %v1595_v24 = vmul.f32 %v1562_v52, %v1499_v31  ;;  %v11420_v52 = vld [vmem:[#allocation6_spill] sm:$0xff] }
 0x318   : > { %v2538_v57 = vpop.permute.xlu1 %2537 }
 0x319   : > { %v2582_v59 = vmul.f32 %v2538_v57, %v2502_v16  ;;  %v11411_v16 = vld [vmem:[#allocation17_spill] sm:$0xff] }
 0x31a   : > { %v2507_v30 = vmax.f32 %v11411_v16, 0.0 }
 0x31b   : > { %v2598_v13 = vadd.f32 %v2582_v59, %v2102_v32  ;;  %v3054_v32 = vpop.permute.xlu0 %3053 }
 0x31d   : > { %v3034_v54 = vpop.permute.xlu1 %3033 }
 0x31e   : > { %v3078_v61 = vmul.f32 %v3034_v54, %v2998_v58  ;;  %v11412_v54 = vld [vmem:[#allocation4_spill] sm:$0xff] }
 0x31f   : > { %v1498_v38 = vmax.f32 %v11412_v54, 0.0  ;;  %v1557_v4 = vpop.permute.xlu0 %1556 }
 0x320   : > { %v3094_v42 = vadd.f32 %v3078_v61, %v2598_v13 }
 0x322   : > { %v2054_v7 = vpop.permute.xlu1 %2053  ;;  %7799 = vmatprep.mubr.msk.f32.mxu1 %vm736_vm0, %v3094_v42  ;;  %v11413_v42 = vld [vmem:[#allocation11_spill] sm:$0xff] }
 0x323   : > { %v2089_v51 = vmul.f32 %v2054_v7, %v2009_v15  ;;  %7800 = vmatmul.mubr.msk.f32.gmra.mrb[70].mxu1 %vm736_vm0, %v3095_v6  ;;  %v2969_v6 = vadd.f32 %v11410_v45, %v9834_v2  ;;  %v2010_v49 = vmax.f32 %v11413_v42, 0.0  ;;  %v1572_v44 = vpop.permute.xlu0 %1571 }
 0x325   : > { %v2105_v26 = vadd.f32 %v2089_v51, %v1593_v53  ;;  %v3003_v59 = vmax.f32 %v2969_v6, 0.0  ;;  %v1594_v51 = vmul.f32 %v1557_v4, %v1498_v38  ;;  %v11424_v4 = vld [vmem:[#allocation7_spill] sm:$0xff] }
 0x327   : > { %v2550_v18 = vpop.permute.xlu1 %2549  ;;  %v3083_v61 = vmul.f32 %v3054_v32, %v3003_v59  ;;  %v11423_v32 = vld [vmem:[#allocation20_spill] sm:$0xff] }
 0x328   : > { %v2585_v10 = vmul.f32 %v2550_v18, %v2505_v22  ;;  %v2964_v18 = vadd.f32 %v9834_v2, %v11415_v48  ;;  %v11426_v48 = vld [vmem:[#allocation21_spill] sm:$0xff] }
 0x32a   : > { %v2601_v9 = vadd.f32 %v2585_v10, %v2105_v26  ;;  %v2506_v26 = vmax.f32 %v11414_v25, 0.0  ;;  %v3002_v19 = vmax.f32 %v2964_v18, 0.0  ;;  %v2511_v18 = vmax.f32 %v11426_v48, 0.0  ;;  %v3939_v48 = vld [vmem:[%s11335_s12] sm:$0xff] }
 0x32c   : > { %v3097_v33 = vadd.f32 %v3081_v5, %v2601_v9  ;;  %v2050_v39 = vpop.permute.xlu1 %2049  ;;  %v11416_v5 = vld [vmem:[#allocation5_spill] sm:$0xff] }
 0x32d   : > { %v2088_v1 = vmul.f32 %v2050_v39, %v2008_v3  ;;  %v1501_v35 = vmax.f32 %v11416_v5, 0.0  ;;  %v11429_v5 = vld [vmem:[#allocation29_spill] sm:$0xff] }
 0x32f   : > { %v2104_v14 = vadd.f32 %v2088_v1, %v1592_v55  ;;  %v11418_v55 = vld [vmem:[#allocation26_spill] sm:$0xff] }
 0x330   : > { %v2979_v1 = vadd.f32 %v11418_v55, %v9834_v2 }
 0x331   : > { %v2546_v21 = vpop.permute.xlu1 %2545 }
 0x332   : > { %v2584_v27 = vmul.f32 %v2546_v21, %v2504_v46  ;;  %v1597_v46 = vmul.f32 %v1572_v44, %v1501_v35  ;;  %v3062_v21 = vpop.permute.xlu0 %3061  ;;  %v11428_v44 = vld [vmem:[#allocation15_spill] sm:$0xff]  ;;  %v2984_v35 = vadd.f32 %v9834_v2, %v11429_v5 }
 0x334   : > { %v2600_v34 = vadd.f32 %v2584_v27, %v2104_v14  ;;  %v2509_v14 = vmax.f32 %v11419_v47, 0.0 }
 0x336   : > { %v3042_v50 = vpop.permute.xlu1 %3041  ;;  %v1567_v31 = vpop.permute.xlu0 %1566 }
 0x337   : > { %v3080_v23 = vmul.f32 %v3042_v50, %v3000_v20  ;;  %v3005_v20 = vmax.f32 %v2979_v1, 0.0  ;;  %v11430_v1 = vld [vmem:[#allocation22_spill] sm:$0xff] }
 0x339   : > { %v3096_v17 = vadd.f32 %v3080_v23, %v2600_v34  ;;  %v1500_v23 = vmax.f32 %v11420_v52, 0.0  ;;  %v3085_v29 = vmul.f32 %v3062_v21, %v3005_v20 }
 0x33a   : > { %v1582_v42 = vpop.permute.xlu0 %1581 }
 0x33b   : > { %v2062_v36 = vpop.permute.xlu1 %2061  ;;  %7802 = vmatprep.mubr.msk.f32.mxu1 %vm736_vm0, %v3096_v17 }
 0x33c   : > { %v2091_v37 = vmul.f32 %v2062_v36, %v2011_v0  ;;  %7803 = vmatmul.mubr.msk.f32.gmra.mrb[72].mxu1 %vm736_vm0, %v3097_v33  ;;  %v11417_v33 = vld [vmem:[#allocation12_spill] sm:$0xff]  ;;  %v2012_v0 = vmax.f32 %v11421_v28, 0.0  ;;  %v1596_v36 = vmul.f32 %v1567_v31, %v1500_v23  ;;  %v10003_v31 = vld [vmem:[%s9999_s30] sm:$0xff] }
 0x33d   : > { %v2013_v39 = vmax.f32 %v11417_v33, 0.0  ;;  %v10012_v28 = vld [vmem:[%s9999_s30 + $0x10] sm:$0xff] }
 0x33e   : > { %v2107_v57 = vadd.f32 %v2091_v37, %v1595_v24  ;;  %v11422_v37 = vld [vmem:[#allocation27_spill] sm:$0xff] }
 0x33f   : > { %v2974_v16 = vadd.f32 %v9834_v2, %v11422_v37  ;;  %v10042_v37 = vld [vmem:[%s9999_s30 + $0x40] sm:$0xff] }
 0x340   : > { %v2558_v58 = vpop.permute.xlu1 %2557 }
 0x341   : > { %v2587_v13 = vmul.f32 %v2558_v58, %v2507_v30 }
 0x343   : > { %v2603_v15 = vadd.f32 %v2587_v13, %v2107_v57  ;;  %v2508_v57 = vmax.f32 %v11423_v32, 0.0  ;;  %v3004_v13 = vmax.f32 %v2974_v16, 0.0  ;;  %v10049_v16 = vld [vmem:[%s9999_s30 + $0x48] sm:$0xff]  ;;  %v10059_v32 = vld [vmem:[%s9999_s30 + $0x58] sm:$0xff] }
 0x345   : > { %v3099_v7 = vadd.f32 %v3083_v61, %v2603_v15  ;;  %v2058_v53 = vpop.permute.xlu1 %2057  ;;  %v1503_v15 = vmax.f32 %v11424_v4, 0.0 }
 0x346   : > { %v2090_v22 = vmul.f32 %v2058_v53, %v2010_v49 }
 0x348   : > { %v2106_v56 = vadd.f32 %v2090_v22, %v1594_v51  ;;  %v1599_v22 = vmul.f32 %v1582_v42, %v1503_v15 }
 0x34a   : > { %v2554_v40 = vpop.permute.xlu1 %2553 }
 0x34b   : > { %v2586_v10 = vmul.f32 %v2554_v40, %v2506_v26 }
 0x34d   : > { %v2602_v12 = vadd.f32 %v2586_v10, %v2106_v56  ;;  %v11427_v10 = vld [vmem:[#allocation8_spill] sm:$0xff] }
 0x34f   : > { %v3050_v41 = vpop.permute.xlu1 %3049 }
 0x350   : > { %v3082_v3 = vmul.f32 %v3050_v41, %v3002_v19  ;;  %v1502_v19 = vmax.f32 %v11427_v10, 0.0 }
 0x352   : > { %v3098_v9 = vadd.f32 %v3082_v3, %v2602_v12  ;;  %v1577_v12 = vpop.permute.xlu0 %1576  ;;  %v2014_v3 = vmax.f32 %v11428_v44, 0.0 }
 0x353   : > { %v1598_v33 = vmul.f32 %v1577_v12, %v1502_v19  ;;  %v3941_v12 = vld [vmem:[%s11335_s12 + $0x10] sm:$0xff] }
 0x354   : > { %v2070_v60 = vpop.permute.xlu1 %2069  ;;  %7805 = vmatprep.mubr.msk.f32.mxu1 %vm736_vm0, %v3098_v9 }
 0x355   : > { %v2093_v63 = vmul.f32 %v2070_v60, %v2013_v39  ;;  %7806 = vmatmul.mubr.msk.f32.gmra.mrb[74].mxu1 %vm736_vm0, %v3099_v7  ;;  %v11425_v7 = vld [vmem:[#allocation14_spill] sm:$0xff]  ;;  %v2510_v60 = vmax.f32 %v11430_v1, 0.0 }
 0x356   : > { %v2015_v53 = vmax.f32 %v11425_v7, 0.0 }
 0x357   : > { %v2109_v27 = vadd.f32 %v2093_v63, %v1597_v46  ;;  %v3006_v46 = vmax.f32 %v2984_v35, 0.0  ;;  %v11431_v63 = vld [vmem:[#allocation28_spill] sm:$0xff] }
 0x358   : > { %v2989_v47 = vadd.f32 %v11431_v63, %v9834_v2 }
 0x359   : > { %v2566_v34 = vpop.permute.xlu1 %2565 }
 0x35a   : > { %v2589_v50 = vmul.f32 %v2566_v34, %v2509_v14  ;;  %v3066_v14 = vpop.permute.xlu0 %3065 }
 0x35b   : > { %v3086_v20 = vmul.f32 %v3066_v14, %v3006_v46  ;;  %v6815_v46 = vld [vmem:[%s11335_s12 + $0x28] sm:$0xff] }
 0x35c   : > { %v2605_v17 = vadd.f32 %v2589_v50, %v2109_v27  ;;  %v3007_v50 = vmax.f32 %v2989_v47, 0.0 }
 0x35e   : > { %v3101_v45 = vadd.f32 %v3085_v29, %v2605_v17  ;;  %v2066_v6 = vpop.permute.xlu1 %2065  ;;  %v10009_v17 = vld [vmem:[%s9999_s30 + $0x8] sm:$0xff] }
 0x35f   : > { %v2092_v24 = vmul.f32 %v2066_v6, %v2012_v0  ;;  %v10019_v0 = vld [vmem:[%s9999_s30 + $0x18] sm:$0xff]  ;;  %v10029_v6 = vld [vmem:[%s9999_s30 + $0x28] sm:$0xff] }
 0x361   : > { %v2108_v30 = vadd.f32 %v2092_v24, %v1596_v36  ;;  %v10032_v36 = vld [vmem:[%s9999_s30 + $0x30] sm:$0xff]  ;;  %v10039_v24 = vld [vmem:[%s9999_s30 + $0x38] sm:$0xff] }
 0x363   : > { %v2562_v59 = vpop.permute.xlu1 %2561 }
 0x364   : > { %v2588_v58 = vmul.f32 %v2562_v59, %v2508_v57  ;;  %v10062_v57 = vld [vmem:[%s9999_s30 + $0x60] sm:$0xff]  ;;  %v10069_v59 = vld [vmem:[%s9999_s30 + $0x68] sm:$0xff] }
 0x366   : > { %v2604_v54 = vadd.f32 %v2588_v58, %v2108_v30  ;;  %v10052_v30 = vld [vmem:[%s9999_s30 + $0x50] sm:$0xff] }
 0x367   : > { %v10072_v58 = vld [vmem:[%s9999_s30 + $0x70] sm:$0xff] }
 0x368   : > { %v3058_v38 = vpop.permute.xlu1 %3057 }
 0x369   : > { %v3084_v61 = vmul.f32 %v3058_v38, %v3004_v13  ;;  %v10079_v13 = vld [vmem:[%s9999_s30 + $0x78] sm:$0xff] }
 0x36b   : > { %v3100_v49 = vadd.f32 %v3084_v61, %v2604_v54  ;;  %v10084_v54 = vld [vmem:[%s11332_s9] ss:$0 sm:$0xff] }
 0x36d   : > { %v2078_v51 = vpop.permute.xlu1 %2077  ;;  %7808 = vmatprep.mubr.msk.f32.mxu1 %vm736_vm0, %v3100_v49 }
 0x36e   : > { %v2095_v25 = vmul.f32 %v2078_v51, %v2015_v53  ;;  %7809 = vmatmul.mubr.msk.f32.gmra.mrb[76].mxu1 %vm736_vm0, %v3101_v45  ;;  %v10022_v45 = vld [vmem:[%s9999_s30 + $0x20] sm:$0xff] }
 0x370   : > { %v2111_v26 = vadd.f32 %v2095_v25, %v1599_v22 }
 0x372   : > { %v2574_v56 = vpop.permute.xlu1 %2573 }
 0x373   : > { %v2591_v40 = vmul.f32 %v2574_v56, %v2511_v18  ;;  %v3940_v18 = vld [vmem:[%s11335_s12 + $0x8] sm:$0xff] }
 0x374   : > { %v8346_v56 = vpack.c.bf16 %v3940_v18, %v3939_v48  ;;  %v10139_v48 = vld [vmem:[%s11340_s17] ss:$0 sm:$0xff] }
 0x375   : > { %v2607_v41 = vadd.f32 %v2591_v40, %v2111_v26 }
 0x376   : > { %8347 = vmatprep.subr.bf16.mxu0 %v8346_v56 }
 0x377   : > { %v2074_v9 = vpop.permute.xlu1 %2073 }
 0x378   : > { %v2094_v39 = vmul.f32 %v2074_v9, %v2014_v3 }
 0x37a   : > { %v2110_v55 = vadd.f32 %v2094_v39, %v1598_v33 }
 0x37c   : > { %v2570_v21 = vpop.permute.xlu1 %2569 }
 0x37d   : > { %v2590_v27 = vmul.f32 %v2570_v21, %v2510_v60  ;;  %v6814_v60 = vld [vmem:[%s11335_s12 + $0x20] sm:$0xff] }
 0x37e   : > { %v8370_v47 = vpack.c.bf16 %v6815_v46, %v6814_v60  ;;  %v6863_v60 = vld [vmem:[%s11335_s12 + $0x48] sm:$0xff] }
 0x37f   : > { %v2606_v34 = vadd.f32 %v2590_v27, %v2110_v55 }
 0x381   : > { %v3102_v52 = vadd.f32 %v3086_v20, %v2606_v34  ;;  %v3070_v23 = vpop.permute.xlu1 %3069 }
 0x382   : > { %v3087_v2 = vmul.f32 %v3070_v23, %v3007_v50 }
 0x383   : > { %7811 = vmatprep.mubr.msk.f32.mxu1 %vm736_vm0, %v3102_v52 }
 0x384   : > { %v3103_v29 = vadd.f32 %v3087_v2, %v2607_v41  ;;  %v3942_v41 = vld [vmem:[%s11335_s12 + $0x18] sm:$0xff] }
 0x385   : > { %v8350_v3 = vpack.c.bf16 %v3942_v41, %v3941_v12  ;;  %v6817_v41 = vld [vmem:[%s11335_s12 + $0x38] sm:$0xff] }
 0x386   : > { %7812 = vmatmul.mubr.msk.f32.gmra.mrb[78].mxu1 %vm736_vm0, %v3103_v29 }
 0x387   : > { %7850 = vmatprep.mubr.msk.f32.mxu1 %vm736_vm0, %v10003_v31 }
 0x38a   : > { %7851 = vmatmul.mubr.msk.f32.vlgmr.msra.gmra.mrb[80].mxu1 %vm736_vm0, %v10009_v17 }
 0x38b   : > { %7853 = vmatprep.mubr.msk.f32.mxu1 %vm736_vm0, %v10012_v28 }
 0x38e   : > { %7854 = vmatmul.mubr.msk.f32.gmra.mrb[82].mxu1 %vm736_vm0, %v10019_v0 }
 0x38f   : > { %7856 = vmatprep.mubr.msk.f32.mxu1 %vm736_vm0, %v10022_v45 }
 0x392   : > { %7857 = vmatmul.mubr.msk.f32.gmra.mrb[84].mxu1 %vm736_vm0, %v10029_v6 }
 0x393   : > { %7859 = vmatprep.mubr.msk.f32.mxu1 %vm736_vm0, %v10032_v36 }
 0x396   : > { %7860 = vmatmul.mubr.msk.f32.gmra.mrb[86].mxu1 %vm736_vm0, %v10039_v24 }
 0x397   : > { %7862 = vmatprep.mubr.msk.f32.mxu1 %vm736_vm0, %v10042_v37 }
 0x39a   : > { %7863 = vmatmul.mubr.msk.f32.gmra.mrb[88].mxu1 %vm736_vm0, %v10049_v16 }
 0x39b   : > { %7865 = vmatprep.mubr.msk.f32.mxu1 %vm736_vm0, %v10052_v30 }
 0x39e   : > { %7866 = vmatmul.mubr.msk.f32.gmra.mrb[90].mxu1 %vm736_vm0, %v10059_v32 }
 0x39f   : > { %7868 = vmatprep.mubr.msk.f32.mxu1 %vm736_vm0, %v10062_v57 }
 0x3a2   : > { %7869 = vmatmul.mubr.msk.f32.gmra.mrb[92].mxu1 %vm736_vm0, %v10069_v59 }
 0x3a3   : > { %7871 = vmatprep.mubr.msk.f32.mxu1 %vm736_vm0, %v10072_v58 }
 0x3a6   : > { %v7792_v38 = vpop.f32.mrb[64].mxu1  ;;  %7872 = vmatmul.mubr.msk.f32.gmra.mrb[94].mxu1 %vm736_vm0, %v10079_v13 }
 0x3a7   : > { %v3235_v61 = vadd.f32 %v7792_v38, %v10084_v54  ;;  %v3229_v4 = vpop.f32.mrb[65].mxu1 }
 0x3a8   : > { %v3230_v15 = vadd.f32 %v10084_v54, %v3229_v4 }
 0x3a9   : > { %v3309_v49 = vmax.f32 %v3235_v61, 0.0 }
 0x3aa   : > { %v3308_v42 = vmax.f32 %v3230_v15, 0.0 }
 0x3ac   : > { %7818 = vmatprep.mubr.msk.f32.mxu0 %vm3333_vm3, %v3308_v42 }
 0x3ad   : > { %7819 = vmatmul.mubr.msk.f32.vlgmr.msra.gmra.mrb[80].mxu0 %vm3333_vm3, %v3309_v49 }
 0x3ae   : > { %8349 = vmatpush3.bf16.msra.mxu0 %v8346_v56 }
 0x3af   : > { %8351 = vmatprep.subr.bf16.mxu0 %v8350_v3 }
 0x3b2   : > { %8353 = vmatpush3.bf16.msra.mxu0 %v8350_v3 }
 0x3b3   : > { %8371 = vmatprep.subr.bf16.mxu0 %v8370_v47 }
 0x3c4   : > { %v7795_v7 = vpop.f32.mrb[66].mxu1 }
 0x3c5   : > { %v3245_v53 = vadd.f32 %v7795_v7, %v10084_v54  ;;  %v3239_v51 = vpop.f32.mrb[67].mxu1 }
 0x3c6   : > { %v3240_v22 = vadd.f32 %v10084_v54, %v3239_v51 }
 0x3c7   : > { %v3311_v26 = vmax.f32 %v3245_v53, 0.0 }
 0x3c8   : > { %v3310_v25 = vmax.f32 %v3240_v22, 0.0 }
 0x3ca   : > { %7821 = vmatprep.mubr.msk.f32.mxu0 %vm3333_vm3, %v3310_v25 }
 0x3cb   : > { %7822 = vmatmul.mubr.msk.f32.gmra.mrb[82].mxu0 %vm3333_vm3, %v3311_v26 }
 0x3dd   : > { %v7798_v40 = vpop.f32.mrb[68].mxu1 }
 0x3de   : > { %v3255_v10 = vadd.f32 %v7798_v40, %v10084_v54  ;;  %v3249_v19 = vpop.f32.mrb[69].mxu1 }
 0x3df   : > { %v3250_v44 = vadd.f32 %v10084_v54, %v3249_v19 }
 0x3e0   : > { %v3313_v35 = vmax.f32 %v3255_v10, 0.0 }
 0x3e1   : > { %v3312_v5 = vmax.f32 %v3250_v44, 0.0 }
 0x3e3   : > { %7824 = vmatprep.mubr.msk.f32.mxu0 %vm3333_vm3, %v3312_v5 }
 0x3e4   : > { %7825 = vmatmul.mubr.msk.f32.gmra.mrb[84].mxu0 %vm3333_vm3, %v3313_v35 }
 0x3f6   : > { %v7801_v9 = vpop.f32.mrb[70].mxu1 }
 0x3f7   : > { %v3265_v33 = vadd.f32 %v7801_v9, %v10084_v54  ;;  %v3259_v39 = vpop.f32.mrb[71].mxu1 }
 0x3f8   : > { %v3260_v55 = vadd.f32 %v10084_v54, %v3259_v39 }
 0x3f9   : > { %v3315_v63 = vmax.f32 %v3265_v33, 0.0 }
 0x3fa   : > { %v3314_v1 = vmax.f32 %v3260_v55, 0.0 }
 0x3fc   : > { %7827 = vmatprep.mubr.msk.f32.mxu0 %vm3333_vm3, %v3314_v1  ;;  %v6862_v1 = vld [vmem:[%s11335_s12 + $0x40] sm:$0xff] }
 0x3fd   : > { %7828 = vmatmul.mubr.msk.f32.gmra.mrb[86].mxu0 %vm3333_vm3, %v3315_v63 }
 0x40f   : > { %v7804_v14 = vpop.f32.mrb[72].mxu1 }
 0x410   : > { %v3275_v21 = vadd.f32 %v7804_v14, %v10084_v54  ;;  %v3269_v27 = vpop.f32.mrb[73].mxu1 }
 0x411   : > { %v3270_v20 = vadd.f32 %v10084_v54, %v3269_v27 }
 0x412   : > { %v3317_v50 = vmax.f32 %v3275_v21, 0.0 }
 0x413   : > { %v3316_v34 = vmax.f32 %v3270_v20, 0.0  ;;  %v10187_v20 = vpack.c.bf16 %v6863_v60, %v6862_v1  ;;  %v6865_v60 = vld [vmem:[%s11335_s12 + $0x58] sm:$0xff] }
 0x415   : > { %7830 = vmatprep.mubr.msk.f32.mxu0 %vm3333_vm3, %v3316_v34 }
 0x416   : > { %7831 = vmatmul.mubr.msk.f32.gmra.mrb[88].mxu0 %vm3333_vm3, %v3317_v50 }
 0x428   : > { %v7807_v52 = vpop.f32.mrb[74].mxu1 }
 0x429   : > { %v3285_v23 = vadd.f32 %v7807_v52, %v10084_v54  ;;  %v3279_v2 = vpop.f32.mrb[75].mxu1 }
 0x42a   : > { %v3280_v29 = vadd.f32 %v10084_v54, %v3279_v2 }
 0x42b   : > { %v3319_v61 = vmax.f32 %v3285_v23, 0.0 }
 0x42c   : > { %v3318_v38 = vmax.f32 %v3280_v29, 0.0 }
 0x42e   : > { %7833 = vmatprep.mubr.msk.f32.mxu0 %vm3333_vm3, %v3318_v38 }
 0x42f   : > { %7834 = vmatmul.mubr.msk.f32.gmra.mrb[90].mxu0 %vm3333_vm3, %v3319_v61 }
 0x441   : > { %v7810_v4 = vpop.f32.mrb[76].mxu1 }
 0x442   : > { %v3295_v15 = vadd.f32 %v7810_v4, %v10084_v54  ;;  %v3289_v42 = vpop.f32.mrb[77].mxu1 }
 0x443   : > { %v3290_v49 = vadd.f32 %v10084_v54, %v3289_v42 }
 0x444   : > { %v3321_v53 = vmax.f32 %v3295_v15, 0.0 }
 0x445   : > { %v3320_v7 = vmax.f32 %v3290_v49, 0.0 }
 0x447   : > { %7836 = vmatprep.mubr.msk.f32.mxu0 %vm3333_vm3, %v3320_v7 }
 0x448   : > { %7837 = vmatmul.mubr.msk.f32.gmra.mrb[92].mxu0 %vm3333_vm3, %v3321_v53 }
 0x459   : > { %v7813_v51 = vpop.f32.mrb[78].mxu1 }
 0x45a   : > { %v3305_v22 = vadd.f32 %v7813_v51, %v10084_v54  ;;  %v3299_v25 = vpop.f32.mrb[79].mxu1 }
 0x45b   : > { %v3300_v26 = vadd.f32 %v10084_v54, %v3299_v25  ;;  %v6816_v54 = vld [vmem:[%s11335_s12 + $0x30] sm:$0xff] }
 0x45c   : > { %v3323_v40 = vmax.f32 %v3305_v22, 0.0  ;;  %v8374_v33 = vpack.c.bf16 %v6817_v41, %v6816_v54 }
 0x45d   : > { %v3322_v18 = vmax.f32 %v3300_v26, 0.0  ;;  %v7852_v56 = vpop.f32.mrb[80].mxu1 }
 0x45e   : > { %v10142_v10 = vadd.f32 %v7852_v56, %v10139_v48  ;;  %v3684_v19 = vpop.f32.mrb[81].mxu1 }
 0x45f   : > { %v10145_v12 = vadd.f32 %v10139_v48, %v3684_v19  ;;  %7839 = vmatprep.mubr.msk.f32.mxu0 %vm3333_vm3, %v3322_v18 }
 0x460   : > { %7840 = vmatmul.mubr.msk.f32.gmra.mrb[94].mxu0 %vm3333_vm3, %v3323_v40  ;;  %v3766_v44 = vsel %vm930_vm1, %v10142_v10, -inf }
 0x461   : > { %3767 = vmax.xlane.f32.xlu1 %v3766_v44  ;;  %v7855_v3 = vpop.f32.mrb[82].mxu1  ;;  %v3763_v5 = vsel %vm930_vm1, %v10145_v12, -inf  ;;  %7882 = vmatprep.mubr.msk.f32.mxu0 %vm736_vm0, %v10003_v31 }
 0x462   : > { %v10162_v35 = vadd.f32 %v7855_v3, %v10139_v48  ;;  %3764 = vmax.xlane.f32.xlu0 %v3763_v5  ;;  %v3694_v9 = vpop.f32.mrb[83].mxu1 }
 0x463   : > { %v10165_v39 = vadd.f32 %v10139_v48, %v3694_v9 }
 0x464   : > { %7883 = vmatmul.mubr.msk.f32.vlgmr.msra.gmra.mrb[96].mxu0 %vm736_vm0, %v10009_v17  ;;  %v3772_v55 = vsel %vm930_vm1, %v10162_v35, -inf }
 0x465   : > { %v7858_v46 = vpop.f32.mrb[84].mxu1  ;;  %7885 = vmatprep.mubr.msk.f32.mxu0 %vm736_vm0, %v10012_v28  ;;  %8373 = vmatpush3.bf16.msra.mxu0 %v8370_v47  ;;  %v3769_v27 = vsel %vm930_vm1, %v10165_v39, -inf }
 0x466   : > { %v3704_v63 = vpop.f32.mrb[85].mxu1  ;;  %3773 = vmax.xlane.f32.xlu0 %v3772_v55  ;;  %8375 = vmatprep.subr.bf16.mxu0 %v8374_v33  ;;  %v10180_v14 = vadd.f32 %v7858_v46, %v10139_v48 }
 0x467   : > { %v10183_v21 = vadd.f32 %v10139_v48, %v3704_v63 }
 0x468   : > { %7886 = vmatmul.mubr.msk.f32.gmra.mrb[98].mxu0 %vm736_vm0, %v10019_v0  ;;  %v3778_v2 = vsel %vm930_vm1, %v10180_v14, -inf }
 0x469   : > { %v7861_v34 = vpop.f32.mrb[86].mxu1  ;;  %v3775_v47 = vsel %vm930_vm1, %v10183_v21, -inf  ;;  %7888 = vmatprep.mubr.msk.f32.mxu0 %vm736_vm0, %v10022_v45  ;;  %8377 = vmatpush3.bf16.msra.mxu0 %v8374_v33 }
 0x46a   : > { %v3714_v50 = vpop.f32.mrb[87].mxu1  ;;  %3776 = vmax.xlane.f32.xlu1 %v3775_v47  ;;  %3770 = vmax.xlane.f32.xlu0 %v3769_v27  ;;  %v10196_v52 = vadd.f32 %v7861_v34, %v10139_v48  ;;  %v6910_v34 = vld [vmem:[%s11335_s12 + $0x60] sm:$0xff]  ;;  %v6911_v47 = vld [vmem:[%s11335_s12 + $0x68] sm:$0xff] }
 0x46b   : > { %v10199_v23 = vadd.f32 %v10139_v48, %v3714_v50  ;;  %8395 = vmatprep.subr.bf16.mxu0 %v10187_v20  ;;  %v8418_v50 = vpack.c.bf16 %v6911_v47, %v6910_v34 }
 0x46c   : > { %7889 = vmatmul.mubr.msk.f32.gmra.mrb[100].mxu0 %vm736_vm0, %v10029_v6  ;;  %v3784_v42 = vsel %vm930_vm1, %v10196_v52, -inf }
 0x46d   : > { %v7864_v29 = vpop.f32.mrb[88].mxu1  ;;  %v3781_v38 = vsel %vm930_vm1, %v10199_v23, -inf  ;;  %7891 = vmatprep.mubr.msk.f32.mxu0 %vm736_vm0, %v10032_v36 }
 0x46e   : > { %v3724_v61 = vpop.f32.mrb[89].mxu1  ;;  %3782 = vmax.xlane.f32.xlu1 %v3781_v38  ;;  %3779 = vmax.xlane.f32.xlu0 %v3778_v2  ;;  %v10211_v4 = vadd.f32 %v7864_v29, %v10139_v48  ;;  %v6912_v29 = vld [vmem:[%s11335_s12 + $0x70] sm:$0xff]  ;;  %v6913_v38 = vld [vmem:[%s11335_s12 + $0x78] sm:$0xff] }
 0x46f   : > { %v10214_v15 = vadd.f32 %v10139_v48, %v3724_v61  ;;  %v4111_v61 = vld [vmem:[%s11337_s14] sm:$0xff] }
 0x470   : > { %7892 = vmatmul.mubr.msk.f32.gmra.mrb[102].mxu0 %vm736_vm0, %v10039_v24  ;;  %v3790_v25 = vsel %vm930_vm1, %v10211_v4, -inf }
 0x471   : > { %v7867_v49 = vpop.f32.mrb[90].mxu1  ;;  %v3787_v7 = vsel %vm930_vm1, %v10214_v15, -inf  ;;  %7894 = vmatprep.mubr.msk.f32.mxu0 %vm736_vm0, %v10042_v37 }
 0x472   : > { %v3734_v53 = vpop.f32.mrb[91].mxu1  ;;  %3788 = vmax.xlane.f32.xlu1 %v3787_v7  ;;  %3785 = vmax.xlane.f32.xlu0 %v3784_v42  ;;  %v10225_v51 = vadd.f32 %v7867_v49, %v10139_v48  ;;  %v4112_v42 = vld [vmem:[%s11337_s14 + $0x8] sm:$0xff]  ;;  %v4113_v49 = vld [vmem:[%s11337_s14 + $0x10] sm:$0xff]  ;;  %v8422_v7 = vpack.c.bf16 %v6913_v38, %v6912_v29 }
 0x473   : > { %v10228_v22 = vadd.f32 %v10139_v48, %v3734_v53  ;;  %v8354_v53 = vpack.c.bf16 %v4112_v42, %v4111_v61 }
 0x474   : > { %7895 = vmatmul.mubr.msk.f32.gmra.mrb[104].mxu0 %vm736_vm0, %v10049_v16  ;;  %v3796_v54 = vsel %vm930_vm1, %v10225_v51, -inf }
 0x475   : > { %v7870_v26 = vpop.f32.mrb[92].mxu1  ;;  %v3793_v18 = vsel %vm930_vm1, %v10228_v22, -inf  ;;  %7897 = vmatprep.mubr.msk.f32.mxu0 %vm736_vm0, %v10052_v30  ;;  %8355 = vmatprep.subr.bf16.mxu1 %v8354_v53 }
 0x476   : > { %v3744_v56 = vpop.f32.mrb[93].mxu1  ;;  %3794 = vmax.xlane.f32.xlu1 %v3793_v18  ;;  %3791 = vmax.xlane.f32.xlu0 %v3790_v25  ;;  %v10239_v40 = vadd.f32 %v7870_v26, %v10139_v48  ;;  %v4114_v25 = vld [vmem:[%s11337_s14 + $0x18] sm:$0xff]  ;;  %v4115_v18 = vld [vmem:[%s11337_s14 + $0x20] sm:$0xff] }
 0x477   : > { %v10242_v19 = vadd.f32 %v10139_v48, %v3744_v56  ;;  %v8358_v26 = vpack.c.bf16 %v4114_v25, %v4113_v49  ;;  %8357 = vmatpush3.bf16.msra.mxu1 %v8354_v53  ;;  %v4116_v56 = vld [vmem:[%s11337_s14 + $0x28] sm:$0xff] }
 0x478   : > { %7898 = vmatmul.mubr.msk.f32.gmra.mrb[106].mxu0 %vm736_vm0, %v10059_v32  ;;  %v3802_v33 = vsel %vm930_vm1, %v10239_v40, -inf }
 0x479   : > { %v7873_v41 = vpop.f32.mrb[94].mxu1  ;;  %v3799_v44 = vsel %vm930_vm1, %v10242_v19, -inf  ;;  %7900 = vmatprep.mubr.msk.f32.mxu0 %vm736_vm0, %v10062_v57  ;;  %8359 = vmatprep.subr.bf16.mxu1 %v8358_v26 }
 0x47a   : > { %v3754_v3 = vpop.f32.mrb[95].mxu1  ;;  %3800 = vmax.xlane.f32.xlu1 %v3799_v44  ;;  %3797 = vmax.xlane.f32.xlu0 %v3796_v54  ;;  %v10253_v5 = vadd.f32 %v7873_v41, %v10139_v48  ;;  %v8362_v54 = vpack.c.bf16 %v4116_v56, %v4115_v18 }
 0x47b   : > { %v10256_v9 = vadd.f32 %v10139_v48, %v3754_v3  ;;  %v6864_v48 = vld [vmem:[%s11335_s12 + $0x50] sm:$0xff]  ;;  %8361 = vmatpush3.bf16.msra.mxu1 %v8358_v26 }
 0x47c   : > { %7901 = vmatmul.mubr.msk.f32.gmra.mrb[108].mxu0 %vm736_vm0, %v10069_v59  ;;  %v3808_v1 = vsel %vm930_vm1, %v10253_v5, -inf  ;;  %v8398_v27 = vpack.c.bf16 %v6865_v60, %v6864_v48  ;;  %8363 = vmatprep.subr.bf16.mxu1 %v8362_v54  ;;  %v4117_v3 = vld [vmem:[%s11337_s14 + $0x30] sm:$0xff] }
 0x47d   : > { %v3805_v55 = vsel %vm930_vm1, %v10256_v9, -inf  ;;  %7903 = vmatprep.mubr.msk.f32.mxu0 %vm736_vm0, %v10072_v58 }
 0x47e   : > { %3806 = vmax.xlane.f32.xlu1 %v3805_v55  ;;  %3803 = vmax.xlane.f32.xlu0 %v3802_v33  ;;  %v4118_v33 = vld [vmem:[%s11337_s14 + $0x38] sm:$0xff] }
 0x47f   : > { %8365 = vmatpush3.bf16.msra.mxu1 %v8362_v54  ;;  %v8366_v55 = vpack.c.bf16 %v4118_v33, %v4117_v3 }
 0x480   : > { %v10274_v46 = vpop.f32.mrb[80].mxu0  ;;  %7904 = vmatmul.mubr.msk.f32.gmra.mrb[110].mxu0 %vm736_vm0, %v10079_v13 }
 0x481   : > { %11433 = vst [vmem:[#allocation2_spill] sm:$0xff] %v10274_v46  ;;  %v10278_v63 = vpop.f32.mrb[81].mxu0  ;;  %7954 = vmatprep.mubr.msk.f32.mxu0 %vm736_vm0, %v10003_v31  ;;  %8367 = vmatprep.subr.bf16.mxu1 %v8366_v55 }
 0x482   : > { %11434 = vst [vmem:[#allocation9_spill] sm:$0xff] %v10278_v63  ;;  %3809 = vmax.xlane.f32.xlu0 %v3808_v1  ;;  %v6836_v1 = vld [vmem:[%s11337_s14 + $0x40] sm:$0xff] }
 0x483   : > { %8369 = vmatpush3.bf16.msra.mxu1 %v8366_v55 }
 0x484   : > { %7955 = vmatmul.mubr.msk.f32.vlgmr.msra.gmra.mrb[112].mxu0 %vm736_vm0, %v10009_v17 }
 0x485   : > { %7957 = vmatprep.mubr.msk.f32.mxu0 %vm736_vm0, %v10012_v28  ;;  %8397 = vmatpush3.bf16.msra.mxu0 %v10187_v20 }
 0x486   : > { %8399 = vmatprep.subr.bf16.mxu0 %v8398_v27 }
 0x488   : > { %7958 = vmatmul.mubr.msk.f32.gmra.mrb[114].mxu0 %vm736_vm0, %v10019_v0 }
 0x489   : > { %7960 = vmatprep.mubr.msk.f32.mxu0 %vm736_vm0, %v10022_v45  ;;  %8401 = vmatpush3.bf16.msra.mxu0 %v8398_v27 }
 0x48a   : > { %8419 = vmatprep.subr.bf16.mxu0 %v8418_v50 }
 0x48c   : > { %7961 = vmatmul.mubr.msk.f32.gmra.mrb[116].mxu0 %vm736_vm0, %v10029_v6 }
 0x48d   : > { %7963 = vmatprep.mubr.msk.f32.mxu0 %vm736_vm0, %v10032_v36 }
 0x490   : > { %7964 = vmatmul.mubr.msk.f32.gmra.mrb[118].mxu0 %vm736_vm0, %v10039_v24 }
 0x491   : > { %7966 = vmatprep.mubr.msk.f32.mxu0 %vm736_vm0, %v10042_v37 }
 0x494   : > { %7967 = vmatmul.mubr.msk.f32.gmra.mrb[120].mxu0 %vm736_vm0, %v10049_v16 }
 0x495   : > { %7969 = vmatprep.mubr.msk.f32.mxu0 %vm736_vm0, %v10052_v30 }
 0x498   : > { %7970 = vmatmul.mubr.msk.f32.gmra.mrb[122].mxu0 %vm736_vm0, %v10059_v32 }
 0x499   : > { %7972 = vmatprep.mubr.msk.f32.mxu0 %vm736_vm0, %v10062_v57 }
 0x49c   : > { %7973 = vmatmul.mubr.msk.f32.gmra.mrb[124].mxu0 %vm736_vm0, %v10069_v59 }
 0x49d   : > { %7975 = vmatprep.mubr.msk.f32.mxu0 %vm736_vm0, %v10072_v58 }
 0x49e   : > { %v10317_v20 = vpop.f32.mrb[82].mxu0 }
 0x49f   : > { %11435 = vst [vmem:[#allocation16_spill] sm:$0xff] %v10317_v20  ;;  %v10319_v2 = vpop.f32.mrb[83].mxu0 }
 0x4a0   : > { %11436 = vst [vmem:[#allocation23_spill] sm:$0xff] %v10319_v2  ;;  %7976 = vmatmul.mubr.msk.f32.gmra.mrb[126].mxu0 %vm736_vm0, %v10079_v13 }
 0x4a1   : > { %8026 = vmatprep.mubr.msk.f32.mxu0 %vm736_vm0, %v10003_v31 }
 0x4a4   : > { %8027 = vmatmul.mubr.msk.f32.vlgmr.msra.gmra.mrb[128].mxu0 %vm736_vm0, %v10009_v17 }
 0x4a5   : > { %8029 = vmatprep.mubr.msk.f32.mxu0 %vm736_vm0, %v10012_v28  ;;  %8421 = vmatpush3.bf16.msra.mxu0 %v8418_v50 }
 0x4a6   : > { %8423 = vmatprep.subr.bf16.mxu0 %v8422_v7 }
 0x4a8   : > { %8030 = vmatmul.mubr.msk.f32.gmra.mrb[130].mxu0 %vm736_vm0, %v10019_v0 }
 0x4a9   : > { %8032 = vmatprep.mubr.msk.f32.mxu0 %vm736_vm0, %v10022_v45  ;;  %8425 = vmatpush3.bf16.msra.mxu0 %v8422_v7 }
 0x4ac   : > { %8033 = vmatmul.mubr.msk.f32.gmra.mrb[132].mxu0 %vm736_vm0, %v10029_v6 }
 0x4ad   : > { %8035 = vmatprep.mubr.msk.f32.mxu0 %vm736_vm0, %v10032_v36 }
 0x4b0   : > { %8036 = vmatmul.mubr.msk.f32.gmra.mrb[134].mxu0 %vm736_vm0, %v10039_v24 }
 0x4b1   : > { %8038 = vmatprep.mubr.msk.f32.mxu0 %vm736_vm0, %v10042_v37 }
 0x4b4   : > { %8039 = vmatmul.mubr.msk.f32.gmra.mrb[136].mxu0 %vm736_vm0, %v10049_v16 }
 0x4b5   : > { %8041 = vmatprep.mubr.msk.f32.mxu0 %vm736_vm0, %v10052_v30 }
 0x4b7   : > { %v10369_v41 = vpop.f32.mrb[84].mxu0 }
 0x4b8   : > { %11437 = vst [vmem:[#allocation3_spill] sm:$0xff] %v10369_v41  ;;  %v10371_v44 = vpop.f32.mrb[85].mxu0  ;;  %8042 = vmatmul.mubr.msk.f32.gmra.mrb[138].mxu0 %vm736_vm0, %v10059_v32 }
 0x4b9   : > { %11438 = vst [vmem:[#allocation10_spill] sm:$0xff] %v10371_v44  ;;  %8044 = vmatprep.mubr.msk.f32.mxu0 %vm736_vm0, %v10062_v57 }
 0x4bc   : > { %8045 = vmatmul.mubr.msk.f32.gmra.mrb[140].mxu0 %vm736_vm0, %v10069_v59 }
 0x4bd   : > { %8047 = vmatprep.mubr.msk.f32.mxu0 %vm736_vm0, %v10072_v58 }
 0x4c0   : > { %8048 = vmatmul.mubr.msk.f32.gmra.mrb[142].mxu0 %vm736_vm0, %v10079_v13 }
 0x4c1   : > { %8098 = vmatprep.mubr.msk.f32.mxu0 %vm736_vm0, %v10003_v31  ;;  %v6837_v31 = vld [vmem:[%s11337_s14 + $0x48] sm:$0xff] }
 0x4c4   : > { %8099 = vmatmul.mubr.msk.f32.vlgmr.msra.gmra.mrb[144].mxu0 %vm736_vm0, %v10009_v17  ;;  %v10409_v17 = vpack.c.bf16 %v6837_v31, %v6836_v1 }
 0x4c5   : > { %8101 = vmatprep.mubr.msk.f32.mxu0 %vm736_vm0, %v10012_v28 }
 0x4c6   : > { %8379 = vmatprep.subr.bf16.mxu1 %v10409_v17 }
 0x4c8   : > { %8102 = vmatmul.mubr.msk.f32.gmra.mrb[146].mxu0 %vm736_vm0, %v10019_v0 }
 0x4c9   : > { %8104 = vmatprep.mubr.msk.f32.mxu0 %vm736_vm0, %v10022_v45 }
 0x4cc   : > { %8105 = vmatmul.mubr.msk.f32.gmra.mrb[148].mxu0 %vm736_vm0, %v10029_v6 }
 0x4cd   : > { %8107 = vmatprep.mubr.msk.f32.mxu0 %vm736_vm0, %v10032_v36 }
 0x4d0   : > { %v10412_v28 = vpop.f32.mrb[86].mxu0  ;;  %8108 = vmatmul.mubr.msk.f32.gmra.mrb[150].mxu0 %vm736_vm0, %v10039_v24 }
 0x4d1   : > { %11439 = vst [vmem:[#allocation24_spill] sm:$0xff] %v10412_v28  ;;  %v10416_v0 = vpop.f32.mrb[87].mxu0  ;;  %8110 = vmatprep.mubr.msk.f32.mxu0 %vm736_vm0, %v10042_v37 }
 0x4d2   : > { %11440 = vst [vmem:[#allocation17_spill] sm:$0xff] %v10416_v0 }
 0x4d4   : > { %8111 = vmatmul.mubr.msk.f32.gmra.mrb[152].mxu0 %vm736_vm0, %v10049_v16 }
 0x4d5   : > { %8113 = vmatprep.mubr.msk.f32.mxu0 %vm736_vm0, %v10052_v30 }
 0x4d8   : > { %8114 = vmatmul.mubr.msk.f32.gmra.mrb[154].mxu0 %vm736_vm0, %v10059_v32 }
 0x4d9   : > { %8116 = vmatprep.mubr.msk.f32.mxu0 %vm736_vm0, %v10062_v57 }
 0x4dc   : > { %8117 = vmatmul.mubr.msk.f32.gmra.mrb[156].mxu0 %vm736_vm0, %v10069_v59 }
 0x4dd   : > { %8119 = vmatprep.mubr.msk.f32.mxu0 %vm736_vm0, %v10072_v58 }
 0x4e0   : > { %8120 = vmatmul.mubr.msk.f32.gmra.mrb[158].mxu0 %vm736_vm0, %v10079_v13 }
 0x4e9   : > { %v10434_v45 = vpop.f32.mrb[88].mxu0 }
 0x4ea   : > { %11441 = vst [vmem:[#allocation4_spill] sm:$0xff] %v10434_v45  ;;  %v10436_v6 = vpop.f32.mrb[89].mxu0 }
 0x4eb   : > { %11442 = vst [vmem:[#allocation11_spill] sm:$0xff] %v10436_v6 }
 0x4ee   : > { %v3768_v36 = vpop.xlane.xlu1 %3767 }
 0x4ef   : > { %v3812_v24 = vsub.f32 %v10142_v10, %v3768_v36  ;;  %v3765_v37 = vpop.xlane.xlu0 %3764 }
 0x4f0   : > { %v3811_v16 = vsub.f32 %v10145_v12, %v3765_v37 }
 0x4f1   : > { %v3829_v30 = vmul.f32 1.442695, %v3812_v24 }
 0x4f2   : > { %v3827_v32 = vmul.f32 1.442695, %v3811_v16 }
 0x4f3   : > { %8644 = vpow2.f32 %v3829_v30  ;;  %v3774_v57 = vpop.xlane.xlu0 %3773 }
 0x4f4   : > { %8646 = vpow2.f32 %v3827_v32  ;;  %v3814_v59 = vsub.f32 %v10162_v35, %v3774_v57 }
 0x4f6   : > { %v3833_v58 = vmul.f32 1.442695, %v3814_v59 }
 0x4f7   : > { %v3777_v48 = vpop.xlane.xlu1 %3776  ;;  %v3771_v13 = vpop.xlane.xlu0 %3770 }
 0x4f8   : > { %8648 = vpow2.f32 %v3833_v58  ;;  %v3815_v60 = vsub.f32 %v10183_v21, %v3777_v48  ;;  %v3813_v27 = vsub.f32 %v10165_v39, %v3771_v13 }
 0x4fa   : > { %v3831_v34 = vmul.f32 1.442695, %v3813_v27  ;;  %v3835_v10 = vmul.f32 1.442695, %v3815_v60 }
 0x4fb   : > { %v3783_v47 = vpop.xlane.xlu1 %3782  ;;  %v3780_v50 = vpop.xlane.xlu0 %3779 }
 0x4fc   : > { %v3817_v12 = vsub.f32 %v10199_v23, %v3783_v47  ;;  %v3816_v29 = vsub.f32 %v10180_v14, %v3780_v50  ;;  %8650 = vpow2.f32 %v3831_v34 }
 0x4fd   : > { %v10445_v38 = vpop.eup %8644  ;;  %8652 = vpow2.f32 %v3835_v10 }
 0x4fe   : > { %v10447_v35 = vpop.eup %8646  ;;  %v3837_v61 = vmul.f32 1.442695, %v3816_v29  ;;  %v3862_v42 = vsel %vm930_vm1, %v10445_v38, 0.0  ;;  %v3839_v21 = vmul.f32 1.442695, %v3817_v12 }
 0x4ff   : > { %v3789_v39 = vpop.xlane.xlu1 %3788  ;;  %3863 = vadd.xlane.f32.xlu0 %v3862_v42  ;;  %v3786_v49 = vpop.xlane.xlu0 %3785  ;;  %v3859_v7 = vsel %vm930_vm1, %v10447_v35, 0.0 }
 0x500   : > { %v3819_v23 = vsub.f32 %v10214_v15, %v3789_v39  ;;  %v3818_v14 = vsub.f32 %v10196_v52, %v3786_v49  ;;  %3860 = vadd.xlane.f32.xlu1 %v3859_v7  ;;  %8654 = vpow2.f32 %v3837_v61 }
 0x501   : > { %8656 = vpow2.f32 %v3839_v21 }
 0x502   : > { %v10455_v53 = vpop.eup %8648  ;;  %v3841_v25 = vmul.f32 1.442695, %v3818_v14  ;;  %v10457_v26 = vpop.f32.mrb[90].mxu0  ;;  %v3843_v18 = vmul.f32 1.442695, %v3819_v23 }
 0x503   : > { %11443 = vst [vmem:[#allocation18_spill] sm:$0xff] %v10457_v26  ;;  %v10459_v56 = vpop.f32.mrb[91].mxu0  ;;  %v3795_v54 = vpop.xlane.xlu1 %3794  ;;  %v3868_v3 = vsel %vm930_vm1, %v10455_v53, 0.0 }
 0x504   : > { %11444 = vst [vmem:[#allocation25_spill] sm:$0xff] %v10459_v56  ;;  %v3821_v33 = vsub.f32 %v10228_v22, %v3795_v54  ;;  %v3792_v15 = vpop.xlane.xlu0 %3791  ;;  %3869 = vadd.xlane.f32.xlu0 %v3868_v3  ;;  %8658 = vpow2.f32 %v3841_v25 }
 0x505   : > { %v3820_v52 = vsub.f32 %v10211_v4, %v3792_v15  ;;  %8660 = vpow2.f32 %v3843_v18 }
 0x506   : > { %v10465_v55 = vpop.eup %8650  ;;  %v3847_v1 = vmul.f32 1.442695, %v3821_v33 }
 0x507   : > { %v3845_v31 = vmul.f32 1.442695, %v3820_v52  ;;  %v3801_v36 = vpop.xlane.xlu1 %3800  ;;  %v3865_v16 = vsel %vm930_vm1, %v10465_v55, 0.0  ;;  %v10470_v30 = vpop.eup %8652 }
 0x508   : > { %v3823_v24 = vsub.f32 %v10242_v19, %v3801_v36  ;;  %v3798_v37 = vpop.xlane.xlu0 %3797  ;;  %3866 = vadd.xlane.f32.xlu1 %v3865_v16  ;;  %v3871_v19 = vsel %vm930_vm1, %v10470_v30, 0.0 }
 0x509   : > { %8662 = vpow2.f32 %v3845_v31  ;;  %v3822_v22 = vsub.f32 %v10225_v51, %v3798_v37 }
 0x50a   : > { %v10473_v32 = vpop.eup %8654  ;;  %8664 = vpow2.f32 %v3847_v1  ;;  %v3851_v4 = vmul.f32 1.442695, %v3823_v24  ;;  %v10533_v24 = vld [vmem:[%s11336_s13] ss:$0 sm:$0xff] }
 0x50b   : > { %v3849_v57 = vmul.f32 1.442695, %v3822_v22  ;;  %v3807_v59 = vpop.xlane.xlu1 %3806  ;;  %v3874_v13 = vsel %vm930_vm1, %v10473_v32, 0.0  ;;  %v10480_v60 = vpop.eup %8656 }
 0x50c   : > { %v3825_v58 = vsub.f32 %v10256_v9, %v3807_v59  ;;  %v3804_v48 = vpop.xlane.xlu0 %3803  ;;  %3872 = vadd.xlane.f32.xlu1 %v3871_v19  ;;  %3875 = vadd.xlane.f32.xlu0 %v3874_v13  ;;  %v3877_v47 = vsel %vm930_vm1, %v10480_v60, 0.0  ;;  %v6839_v59 = vld [vmem:[%s11337_s14 + $0x58] sm:$0xff] }
 0x50d   : > { %8666 = vpow2.f32 %v3849_v57  ;;  %v3824_v51 = vsub.f32 %v10239_v40, %v3804_v48  ;;  %v6838_v57 = vld [vmem:[%s11337_s14 + $0x50] sm:$0xff] }
 0x50e   : > { %v10483_v27 = vpop.eup %8658  ;;  %8668 = vpow2.f32 %v3851_v4  ;;  %v3855_v34 = vmul.f32 1.442695, %v3825_v58 }
 0x50f   : > { %v3853_v10 = vmul.f32 1.442695, %v3824_v51  ;;  %v3880_v50 = vsel %vm930_vm1, %v10483_v27, 0.0  ;;  %v10489_v12 = vpop.eup %8660 }
 0x510   : > { %v3810_v9 = vpop.xlane.xlu0 %3809  ;;  %3878 = vadd.xlane.f32.xlu1 %v3877_v47  ;;  %3881 = vadd.xlane.f32.xlu0 %v3880_v50  ;;  %v3883_v42 = vsel %vm930_vm1, %v10489_v12, 0.0  ;;  %v6841_v47 = vld [vmem:[%s11337_s14 + $0x68] sm:$0xff] }
 0x511   : > { %8670 = vpow2.f32 %v3853_v10  ;;  %v3826_v29 = vsub.f32 %v10253_v5, %v3810_v9  ;;  %v6840_v9 = vld [vmem:[%s11337_s14 + $0x60] sm:$0xff] }
 0x512   : > { %8672 = vpow2.f32 %v3855_v34  ;;  %v8382_v34 = vpack.c.bf16 %v6839_v59, %v6838_v57  ;;  %v6884_v57 = vld [vmem:[%s11337_s14 + $0x80] sm:$0xff]  ;;  %v6885_v59 = vld [vmem:[%s11337_s14 + $0x88] sm:$0xff] }
 0x513   : > { %v10492_v40 = vpop.eup %8662  ;;  %v3857_v61 = vmul.f32 1.442695, %v3826_v29 }
 0x514   : > { %v3886_v21 = vsel %vm930_vm1, %v10492_v40, 0.0  ;;  %v10498_v39 = vpop.eup %8664  ;;  %3884 = vadd.xlane.f32.xlu1 %v3883_v42 }
 0x515   : > { %8674 = vpow2.f32 %v3857_v61  ;;  %3887 = vadd.xlane.f32.xlu0 %v3886_v21  ;;  %v3889_v5 = vsel %vm930_vm1, %v10498_v39, 0.0 }
 0x517   : > { %v10500_v49 = vpop.eup %8666 }
 0x518   : > { %v3892_v7 = vsel %vm930_vm1, %v10500_v49, 0.0  ;;  %v10506_v23 = vpop.eup %8668  ;;  %3890 = vadd.xlane.f32.xlu1 %v3889_v5  ;;  %v8386_v5 = vpack.c.bf16 %v6841_v47, %v6840_v9 }
 0x519   : > { %3893 = vadd.xlane.f32.xlu0 %v3892_v7  ;;  %v3895_v54 = vsel %vm930_vm1, %v10506_v23, 0.0 }
 0x51b   : > { %v10508_v14 = vpop.eup %8670  ;;  %v10510_v25 = vpop.f32.mrb[92].mxu0 }
 0x51c   : > { %11445 = vst [vmem:[#allocation5_spill] sm:$0xff] %v10510_v25  ;;  %v10512_v18 = vpop.f32.mrb[93].mxu0  ;;  %v3898_v3 = vsel %vm930_vm1, %v10508_v14, 0.0  ;;  %v10518_v33 = vpop.eup %8672  ;;  %3896 = vadd.xlane.f32.xlu1 %v3895_v54  ;;  %v6842_v54 = vld [vmem:[%s11337_s14 + $0x70] sm:$0xff] }
 0x51d   : > { %11446 = vst [vmem:[#allocation12_spill] sm:$0xff] %v10512_v18  ;;  %3899 = vadd.xlane.f32.xlu0 %v3898_v3  ;;  %v3901_v52 = vsel %vm930_vm1, %v10518_v33, 0.0  ;;  %v6843_v3 = vld [vmem:[%s11337_s14 + $0x78] sm:$0xff] }
 0x51f   : > { %v10520_v15 = vpop.eup %8674 }
 0x520   : > { %v3904_v1 = vsel %vm930_vm1, %v10520_v15, 0.0  ;;  %3902 = vadd.xlane.f32.xlu1 %v3901_v52 }
 0x521   : > { %3905 = vadd.xlane.f32.xlu0 %v3904_v1 }
 0x533   : > { %v10526_v31 = vpop.f32.mrb[94].mxu0 }
 0x534   : > { %11447 = vst [vmem:[#allocation26_spill] sm:$0xff] %v10526_v31  ;;  %v10528_v36 = vpop.f32.mrb[95].mxu0 }
 0x535   : > { %11448 = vst [vmem:[#allocation19_spill] sm:$0xff] %v10528_v36 }
 0x537   : > { %v7884_v37 = vpop.f32.mrb[96].mxu0 }
 0x538   : > { %v4022_v16 = vadd.f32 %v7884_v37, %v10533_v24  ;;  %v4016_v22 = vpop.f32.mrb[97].mxu0 }
 0x539   : > { %v4017_v4 = vadd.f32 %v10533_v24, %v4016_v22  ;;  %v8390_v22 = vpack.c.bf16 %v6843_v3, %v6842_v54 }
 0x53a   : > { %v4096_v58 = vmax.f32 %v4022_v16, 0.0 }
 0x53b   : > { %v4095_v48 = vmax.f32 %v4017_v4, 0.0  ;;  %v7887_v19 = vpop.f32.mrb[98].mxu0 }
 0x53c   : > { %v4032_v13 = vadd.f32 %v7887_v19, %v10533_v24  ;;  %v4026_v51 = vpop.f32.mrb[99].mxu0 }
 0x53d   : > { %v4027_v10 = vadd.f32 %v10533_v24, %v4026_v51  ;;  %7922 = vmatprep.mubr.msk.f32.mxu1 %vm1294_vm2, %v4095_v48 }
 0x53e   : > { %v4098_v50 = vmax.f32 %v4032_v13, 0.0  ;;  %7923 = vmatmul.mubr.msk.f32.vlgmr.msra.gmra.mrb[96].mxu1 %vm1294_vm2, %v4096_v58 }
 0x53f   : > { %v4097_v29 = vmax.f32 %v4027_v10, 0.0  ;;  %v7890_v61 = vpop.f32.mrb[100].mxu0  ;;  %8381 = vmatpush3.bf16.msra.mxu1 %v10409_v17 }
 0x540   : > { %v4042_v42 = vadd.f32 %v7890_v61, %v10533_v24  ;;  %v4036_v21 = vpop.f32.mrb[101].mxu0  ;;  %8383 = vmatprep.subr.bf16.mxu1 %v8382_v34 }
 0x541   : > { %v4037_v7 = vadd.f32 %v10533_v24, %v4036_v21  ;;  %7925 = vmatprep.mubr.msk.f32.mxu1 %vm1294_vm2, %v4097_v29 }
 0x542   : > { %v4100_v52 = vmax.f32 %v4042_v42, 0.0  ;;  %7926 = vmatmul.mubr.msk.f32.gmra.mrb[98].mxu1 %vm1294_vm2, %v4098_v50 }
 0x543   : > { %v4099_v17 = vmax.f32 %v4037_v7, 0.0  ;;  %v7893_v1 = vpop.f32.mrb[102].mxu0  ;;  %8385 = vmatpush3.bf16.msra.mxu1 %v8382_v34  ;;  %v8402_v34 = vpack.c.bf16 %v6885_v59, %v6884_v57  ;;  %v10592_v57 = vld [vmem:[%s11336_s13 + $0x1] ss:$0 sm:$0xff] }
 0x544   : > { %v4052_v37 = vadd.f32 %v7893_v1, %v10533_v24  ;;  %v4046_v16 = vpop.f32.mrb[103].mxu0  ;;  %8387 = vmatprep.subr.bf16.mxu1 %v8386_v5 }
 0x545   : > { %v4047_v4 = vadd.f32 %v10533_v24, %v4046_v16  ;;  %7928 = vmatprep.mubr.msk.f32.mxu1 %vm1294_vm2, %v4099_v17 }
 0x546   : > { %v4102_v58 = vmax.f32 %v4052_v37, 0.0  ;;  %7929 = vmatmul.mubr.msk.f32.gmra.mrb[100].mxu1 %vm1294_vm2, %v4100_v52 }
 0x547   : > { %v4101_v48 = vmax.f32 %v4047_v4, 0.0  ;;  %v7896_v19 = vpop.f32.mrb[104].mxu0  ;;  %8389 = vmatpush3.bf16.msra.mxu1 %v8386_v5 }
 0x548   : > { %v4062_v13 = vadd.f32 %v7896_v19, %v10533_v24  ;;  %v4056_v51 = vpop.f32.mrb[105].mxu0  ;;  %8391 = vmatprep.subr.bf16.mxu1 %v8390_v22 }
 0x549   : > { %v4057_v10 = vadd.f32 %v10533_v24, %v4056_v51  ;;  %7931 = vmatprep.mubr.msk.f32.mxu1 %vm1294_vm2, %v4101_v48 }
 0x54a   : > { %v4104_v9 = vmax.f32 %v4062_v13, 0.0  ;;  %7932 = vmatmul.mubr.msk.f32.gmra.mrb[102].mxu1 %vm1294_vm2, %v4102_v58 }
 0x54b   : > { %v4103_v47 = vmax.f32 %v4057_v10, 0.0  ;;  %v7899_v50 = vpop.f32.mrb[106].mxu0  ;;  %8393 = vmatpush3.bf16.msra.mxu1 %v8390_v22  ;;  %v6887_v10 = vld [vmem:[%s11337_s14 + $0x98] sm:$0xff] }
 0x54c   : > { %v4072_v29 = vadd.f32 %v7899_v50, %v10533_v24  ;;  %v4066_v61 = vpop.f32.mrb[107].mxu0  ;;  %8403 = vmatprep.subr.bf16.mxu1 %v8402_v34 }
 0x54d   : > { %v4067_v42 = vadd.f32 %v10533_v24, %v4066_v61  ;;  %7934 = vmatprep.mubr.msk.f32.mxu1 %vm1294_vm2, %v4103_v47 }
 0x54e   : > { %v4106_v21 = vmax.f32 %v4072_v29, 0.0  ;;  %7935 = vmatmul.mubr.msk.f32.gmra.mrb[104].mxu1 %vm1294_vm2, %v4104_v9 }
 0x54f   : > { %v4105_v5 = vmax.f32 %v4067_v42, 0.0  ;;  %v7902_v7 = vpop.f32.mrb[108].mxu0 }
 0x550   : > { %v4082_v54 = vadd.f32 %v7902_v7, %v10533_v24  ;;  %v4076_v3 = vpop.f32.mrb[109].mxu0  ;;  %v6889_v7 = vld [vmem:[%s11337_s14 + $0xa8] sm:$0xff] }
 0x551   : > { %v4077_v52 = vadd.f32 %v10533_v24, %v4076_v3  ;;  %7937 = vmatprep.mubr.msk.f32.mxu1 %vm1294_vm2, %v4105_v5  ;;  %v6888_v5 = vld [vmem:[%s11337_s14 + $0xa0] sm:$0xff] }
 0x552   : > { %v4108_v17 = vmax.f32 %v4082_v54, 0.0  ;;  %7938 = vmatmul.mubr.msk.f32.gmra.mrb[106].mxu1 %vm1294_vm2, %v4106_v21 }
 0x553   : > { %v4107_v1 = vmax.f32 %v4077_v52, 0.0  ;;  %v7905_v37 = vpop.f32.mrb[110].mxu0 }
 0x554   : > { %v4092_v16 = vadd.f32 %v7905_v37, %v10533_v24  ;;  %v4086_v22 = vpop.f32.mrb[111].mxu0  ;;  %v8410_v37 = vpack.c.bf16 %v6889_v7, %v6888_v5 }
 0x555   : > { %v4087_v4 = vadd.f32 %v10533_v24, %v4086_v22  ;;  %7940 = vmatprep.mubr.msk.f32.mxu1 %vm1294_vm2, %v4107_v1  ;;  %v6886_v24 = vld [vmem:[%s11337_s14 + $0x90] sm:$0xff] }
 0x556   : > { %v4110_v59 = vmax.f32 %v4092_v16, 0.0  ;;  %7941 = vmatmul.mubr.msk.f32.gmra.mrb[108].mxu1 %vm1294_vm2, %v4108_v17  ;;  %v8406_v42 = vpack.c.bf16 %v6887_v10, %v6886_v24  ;;  %v6890_v22 = vld [vmem:[%s11337_s14 + $0xb0] sm:$0xff]  ;;  %v6932_v24 = vld [vmem:[%s11337_s14 + $0xc0] sm:$0xff]  ;;  %v6933_v10 = vld [vmem:[%s11337_s14 + $0xc8] sm:$0xff] }
 0x557   : > { %v4109_v58 = vmax.f32 %v4087_v4, 0.0  ;;  %v7956_v48 = vpop.f32.mrb[112].mxu0  ;;  %v6891_v4 = vld [vmem:[%s11337_s14 + $0xb8] sm:$0xff] }
 0x558   : > { %v4532_v19 = vadd.f32 %v7956_v48, %v10592_v57  ;;  %v4526_v13 = vpop.f32.mrb[113].mxu0 }
 0x559   : > { %v4527_v51 = vadd.f32 %v10592_v57, %v4526_v13  ;;  %7943 = vmatprep.mubr.msk.f32.mxu1 %vm1294_vm2, %v4109_v58  ;;  %v8414_v13 = vpack.c.bf16 %v6891_v4, %v6890_v22 }
 0x55a   : > { %v4606_v9 = vmax.f32 %v4532_v19, 0.0  ;;  %7944 = vmatmul.mubr.msk.f32.gmra.mrb[110].mxu1 %vm1294_vm2, %v4110_v59 }
 0x55b   : > { %v4605_v47 = vmax.f32 %v4527_v51, 0.0  ;;  %v7959_v50 = vpop.f32.mrb[114].mxu0 }
 0x55c   : > { %v4542_v29 = vadd.f32 %v7959_v50, %v10592_v57  ;;  %v4536_v61 = vpop.f32.mrb[115].mxu0 }
 0x55d   : > { %v4537_v21 = vadd.f32 %v10592_v57, %v4536_v61  ;;  %7994 = vmatprep.mubr.msk.f32.mxu1 %vm1294_vm2, %v4605_v47 }
 0x55e   : > { %v4608_v54 = vmax.f32 %v4542_v29, 0.0  ;;  %7995 = vmatmul.mubr.msk.f32.vlgmr.msra.gmra.mrb[112].mxu1 %vm1294_vm2, %v4606_v9 }
 0x55f   : > { %v4607_v3 = vmax.f32 %v4537_v21, 0.0  ;;  %v7962_v52 = vpop.f32.mrb[116].mxu0  ;;  %8405 = vmatpush3.bf16.msra.mxu1 %v8402_v34 }
 0x560   : > { %v4552_v17 = vadd.f32 %v7962_v52, %v10592_v57  ;;  %v4546_v1 = vpop.f32.mrb[117].mxu0  ;;  %8407 = vmatprep.subr.bf16.mxu1 %v8406_v42 }
 0x561   : > { %v4547_v16 = vadd.f32 %v10592_v57, %v4546_v1  ;;  %7997 = vmatprep.mubr.msk.f32.mxu1 %vm1294_vm2, %v4607_v3 }
 0x562   : > { %v4610_v59 = vmax.f32 %v4552_v17, 0.0  ;;  %7998 = vmatmul.mubr.msk.f32.gmra.mrb[114].mxu1 %vm1294_vm2, %v4608_v54 }
 0x563   : > { %v4609_v34 = vmax.f32 %v4547_v16, 0.0  ;;  %v7965_v58 = vpop.f32.mrb[118].mxu0  ;;  %8409 = vmatpush3.bf16.msra.mxu1 %v8406_v42  ;;  %v8426_v42 = vpack.c.bf16 %v6933_v10, %v6932_v24  ;;  %v10653_v24 = vld [vmem:[%s11336_s13 + $0x2] ss:$0 sm:$0xff] }
 0x564   : > { %v4562_v48 = vadd.f32 %v7965_v58, %v10592_v57  ;;  %v4556_v19 = vpop.f32.mrb[119].mxu0  ;;  %8411 = vmatprep.subr.bf16.mxu1 %v8410_v37 }
 0x565   : > { %v4557_v51 = vadd.f32 %v10592_v57, %v4556_v19  ;;  %8000 = vmatprep.mubr.msk.f32.mxu1 %vm1294_vm2, %v4609_v34 }
 0x566   : > { %v4612_v9 = vmax.f32 %v4562_v48, 0.0  ;;  %8001 = vmatmul.mubr.msk.f32.gmra.mrb[116].mxu1 %vm1294_vm2, %v4610_v59 }
 0x567   : > { %v4611_v47 = vmax.f32 %v4557_v51, 0.0  ;;  %v7968_v50 = vpop.f32.mrb[120].mxu0  ;;  %8413 = vmatpush3.bf16.msra.mxu1 %v8410_v37 }
 0x568   : > { %v4572_v29 = vadd.f32 %v7968_v50, %v10592_v57  ;;  %v4566_v61 = vpop.f32.mrb[121].mxu0  ;;  %8415 = vmatprep.subr.bf16.mxu1 %v8414_v13 }
 0x569   : > { %v4567_v21 = vadd.f32 %v10592_v57, %v4566_v61  ;;  %8003 = vmatprep.mubr.msk.f32.mxu1 %vm1294_vm2, %v4611_v47 }
 0x56a   : > { %v4614_v5 = vmax.f32 %v4572_v29, 0.0  ;;  %8004 = vmatmul.mubr.msk.f32.gmra.mrb[118].mxu1 %vm1294_vm2, %v4612_v9 }
 0x56b   : > { %v4613_v7 = vmax.f32 %v4567_v21, 0.0  ;;  %v7971_v54 = vpop.f32.mrb[122].mxu0  ;;  %8417 = vmatpush3.bf16.msra.mxu1 %v8414_v13  ;;  %v6935_v21 = vld [vmem:[%s11337_s14 + $0xd8] sm:$0xff] }
 0x56c   : > { %v4582_v3 = vadd.f32 %v7971_v54, %v10592_v57  ;;  %v4576_v52 = vpop.f32.mrb[123].mxu0  ;;  %8427 = vmatprep.subr.bf16.mxu1 %v8426_v42 }
 0x56d   : > { %v4577_v17 = vadd.f32 %v10592_v57, %v4576_v52  ;;  %8006 = vmatprep.mubr.msk.f32.mxu1 %vm1294_vm2, %v4613_v7 }
 0x56e   : > { %v4616_v1 = vmax.f32 %v4582_v3, 0.0  ;;  %8007 = vmatmul.mubr.msk.f32.gmra.mrb[120].mxu1 %vm1294_vm2, %v4614_v5 }
 0x56f   : > { %v4615_v37 = vmax.f32 %v4577_v17, 0.0  ;;  %v7974_v16 = vpop.f32.mrb[124].mxu0 }
 0x570   : > { %v4592_v22 = vadd.f32 %v7974_v16, %v10592_v57  ;;  %v4586_v4 = vpop.f32.mrb[125].mxu0  ;;  %v6937_v16 = vld [vmem:[%s11337_s14 + $0xe8] sm:$0xff] }
 0x571   : > { %v4587_v59 = vadd.f32 %v10592_v57, %v4586_v4  ;;  %8009 = vmatprep.mubr.msk.f32.mxu1 %vm1294_vm2, %v4615_v37  ;;  %v6936_v37 = vld [vmem:[%s11337_s14 + $0xe0] sm:$0xff] }
 0x572   : > { %v4618_v34 = vmax.f32 %v4592_v22, 0.0  ;;  %8010 = vmatmul.mubr.msk.f32.gmra.mrb[122].mxu1 %vm1294_vm2, %v4616_v1 }
 0x573   : > { %v4617_v58 = vmax.f32 %v4587_v59, 0.0  ;;  %v7977_v48 = vpop.f32.mrb[126].mxu0 }
 0x574   : > { %v4602_v19 = vadd.f32 %v7977_v48, %v10592_v57  ;;  %v4596_v13 = vpop.f32.mrb[127].mxu0  ;;  %v8434_v48 = vpack.c.bf16 %v6937_v16, %v6936_v37 }
 0x575   : > { %v4597_v51 = vadd.f32 %v10592_v57, %v4596_v13  ;;  %8012 = vmatprep.mubr.msk.f32.mxu1 %vm1294_vm2, %v4617_v58  ;;  %v6934_v57 = vld [vmem:[%s11337_s14 + $0xd0] sm:$0xff] }
 0x576   : > { %v4620_v10 = vmax.f32 %v4602_v19, 0.0  ;;  %8013 = vmatmul.mubr.msk.f32.gmra.mrb[124].mxu1 %vm1294_vm2, %v4618_v34  ;;  %v8430_v17 = vpack.c.bf16 %v6935_v21, %v6934_v57  ;;  %v6938_v13 = vld [vmem:[%s11337_s14 + $0xf0] sm:$0xff] }
 0x577   : > { %v4619_v9 = vmax.f32 %v4597_v51, 0.0  ;;  %v8028_v47 = vpop.f32.mrb[128].mxu0  ;;  %v6939_v51 = vld [vmem:[%s11337_s14 + $0xf8] sm:$0xff] }
 0x578   : > { %v5028_v50 = vadd.f32 %v8028_v47, %v10653_v24  ;;  %v5022_v29 = vpop.f32.mrb[129].mxu0 }
 0x579   : > { %v5023_v61 = vadd.f32 %v10653_v24, %v5022_v29  ;;  %8015 = vmatprep.mubr.msk.f32.mxu1 %vm1294_vm2, %v4619_v9  ;;  %v8438_v29 = vpack.c.bf16 %v6939_v51, %v6938_v13 }
 0x57a   : > { %v5102_v5 = vmax.f32 %v5028_v50, 0.0  ;;  %8016 = vmatmul.mubr.msk.f32.gmra.mrb[126].mxu1 %vm1294_vm2, %v4620_v10 }
 0x57b   : > { %v5101_v7 = vmax.f32 %v5023_v61, 0.0  ;;  %v8031_v54 = vpop.f32.mrb[130].mxu0 }
 0x57c   : > { %v5038_v3 = vadd.f32 %v8031_v54, %v10653_v24  ;;  %v5032_v52 = vpop.f32.mrb[131].mxu0 }
 0x57d   : > { %v5033_v1 = vadd.f32 %v10653_v24, %v5032_v52  ;;  %8066 = vmatprep.mubr.msk.f32.mxu1 %vm1294_vm2, %v5101_v7 }
 0x57e   : > { %v5104_v22 = vmax.f32 %v5038_v3, 0.0  ;;  %8067 = vmatmul.mubr.msk.f32.vlgmr.msra.gmra.mrb[128].mxu1 %vm1294_vm2, %v5102_v5 }
 0x57f   : > { %v5103_v4 = vmax.f32 %v5033_v1, 0.0  ;;  %v8034_v59 = vpop.f32.mrb[132].mxu0  ;;  %8429 = vmatpush3.bf16.msra.mxu1 %v8426_v42 }
 0x580   : > { %v5048_v34 = vadd.f32 %v8034_v59, %v10653_v24  ;;  %v5042_v58 = vpop.f32.mrb[133].mxu0  ;;  %8431 = vmatprep.subr.bf16.mxu1 %v8430_v17 }
 0x581   : > { %v5043_v19 = vadd.f32 %v10653_v24, %v5042_v58  ;;  %8069 = vmatprep.mubr.msk.f32.mxu1 %vm1294_vm2, %v5103_v4 }
 0x582   : > { %v5106_v10 = vmax.f32 %v5048_v34, 0.0  ;;  %8070 = vmatmul.mubr.msk.f32.gmra.mrb[130].mxu1 %vm1294_vm2, %v5104_v22 }
 0x583   : > { %v5105_v42 = vmax.f32 %v5043_v19, 0.0  ;;  %v8037_v9 = vpop.f32.mrb[134].mxu0  ;;  %8433 = vmatpush3.bf16.msra.mxu1 %v8430_v17 }
 0x584   : > { %v5058_v47 = vadd.f32 %v8037_v9, %v10653_v24  ;;  %v5052_v50 = vpop.f32.mrb[135].mxu0  ;;  %8435 = vmatprep.subr.bf16.mxu1 %v8434_v48 }
 0x585   : > { %v5053_v61 = vadd.f32 %v10653_v24, %v5052_v50  ;;  %8072 = vmatprep.mubr.msk.f32.mxu1 %vm1294_vm2, %v5105_v42 }
 0x586   : > { %v5108_v57 = vmax.f32 %v5058_v47, 0.0  ;;  %8073 = vmatmul.mubr.msk.f32.gmra.mrb[132].mxu1 %vm1294_vm2, %v5106_v10 }
 0x587   : > { %v5107_v21 = vmax.f32 %v5053_v61, 0.0  ;;  %v8040_v5 = vpop.f32.mrb[136].mxu0  ;;  %8437 = vmatpush3.bf16.msra.mxu1 %v8434_v48 }
 0x588   : > { %v5068_v7 = vadd.f32 %v8040_v5, %v10653_v24  ;;  %v5062_v54 = vpop.f32.mrb[137].mxu0  ;;  %8439 = vmatprep.subr.bf16.mxu1 %v8438_v29 }
 0x589   : > { %v5063_v3 = vadd.f32 %v10653_v24, %v5062_v54  ;;  %8075 = vmatprep.mubr.msk.f32.mxu1 %vm1294_vm2, %v5107_v21 }
 0x58a   : > { %v5110_v52 = vmax.f32 %v5068_v7, 0.0  ;;  %8076 = vmatmul.mubr.msk.f32.gmra.mrb[134].mxu1 %vm1294_vm2, %v5108_v57  ;;  %v10708_v57 = vld [vmem:[%s11336_s13 + $0x3] ss:$0 sm:$0xff] }
 0x58b   : > { %v5109_v17 = vmax.f32 %v5063_v3, 0.0  ;;  %v8043_v1 = vpop.f32.mrb[138].mxu0  ;;  %8441 = vmatpush3.bf16.msra.mxu1 %v8438_v29 }
 0x58c   : > { %v5078_v37 = vadd.f32 %v8043_v1, %v10653_v24  ;;  %v3864_v16 = vpop.xlane.xlu0 %3863  ;;  %v5072_v22 = vpop.f32.mrb[139].mxu0 }
 0x58d   : > { %8676 = vrcp.f32 %v3864_v16  ;;  %v5073_v4 = vadd.f32 %v10653_v24, %v5072_v22  ;;  %v3861_v59 = vpop.xlane.xlu1 %3860  ;;  %8078 = vmatprep.mubr.msk.f32.mxu1 %vm1294_vm2, %v5109_v17 }
 0x58e   : > { %v5112_v34 = vmax.f32 %v5078_v37, 0.0  ;;  %8678 = vrcp.f32 %v3861_v59  ;;  %8079 = vmatmul.mubr.msk.f32.gmra.mrb[136].mxu1 %vm1294_vm2, %v5110_v52 }
 0x58f   : > { %v5111_v58 = vmax.f32 %v5073_v4, 0.0  ;;  %v8046_v48 = vpop.f32.mrb[140].mxu0 }
 0x590   : > { %v5088_v19 = vadd.f32 %v8046_v48, %v10653_v24  ;;  %v5082_v13 = vpop.f32.mrb[141].mxu0 }
 0x591   : > { %v5083_v51 = vadd.f32 %v10653_v24, %v5082_v13  ;;  %v3870_v10 = vpop.xlane.xlu0 %3869  ;;  %8081 = vmatprep.mubr.msk.f32.mxu1 %vm1294_vm2, %v5111_v58 }
 0x592   : > { %v5114_v42 = vmax.f32 %v5088_v19, 0.0  ;;  %8680 = vrcp.f32 %v3870_v10  ;;  %8082 = vmatmul.mubr.msk.f32.gmra.mrb[138].mxu1 %vm1294_vm2, %v5112_v34 }
 0x593   : > { %v5113_v9 = vmax.f32 %v5083_v51, 0.0  ;;  %v8049_v47 = vpop.f32.mrb[142].mxu0 }
 0x594   : > { %v5098_v50 = vadd.f32 %v8049_v47, %v10653_v24  ;;  %v5092_v29 = vpop.f32.mrb[143].mxu0 }
 0x595   : > { %v5093_v61 = vadd.f32 %v10653_v24, %v5092_v29  ;;  %8084 = vmatprep.mubr.msk.f32.mxu1 %vm1294_vm2, %v5113_v9  ;;  %v3867_v5 = vpop.xlane.xlu1 %3866 }
 0x596   : > { %v5116_v21 = vmax.f32 %v5098_v50, 0.0  ;;  %8085 = vmatmul.mubr.msk.f32.gmra.mrb[140].mxu1 %vm1294_vm2, %v5114_v42  ;;  %8682 = vrcp.f32 %v3867_v5 }
 0x597   : > { %v8677_v7 = vpop.eup %8676  ;;  %v5115_v54 = vmax.f32 %v5093_v61, 0.0  ;;  %v8100_v3 = vpop.f32.mrb[144].mxu0 }
 0x598   : > { %v8679_v52 = vpop.eup %8678  ;;  %v5524_v17 = vadd.f32 %v8100_v3, %v10708_v57  ;;  %v5518_v1 = vpop.f32.mrb[145].mxu0  ;;  %v3910_v24 = vmul.f32 %v8677_v7, %v10445_v38 }
 0x599   : > { %v5519_v37 = vadd.f32 %v10708_v57, %v5518_v1  ;;  %8087 = vmatprep.mubr.msk.f32.mxu1 %vm1294_vm2, %v5115_v54  ;;  %v10716_v16 = vmul.f32 %v8679_v52, %v10447_v35  ;;  %v3876_v4 = vpop.xlane.xlu0 %3875  ;;  %v3873_v34 = vpop.xlane.xlu1 %3872 }
 0x59a   : > { %v5598_v22 = vmax.f32 %v5524_v17, 0.0  ;;  %4342 = vperm.xlu1 %8523, %v3910_v24   ;;  %8088 = vmatmul.mubr.msk.f32.gmra.mrb[142].mxu1 %vm1294_vm2, %v5116_v21  ;;  %8684 = vrcp.f32 %v3876_v4 }
 0x59b   : > { %v5597_v59 = vmax.f32 %v5519_v37, 0.0  ;;  %4848 = vperm.xlu0 %8528, %v10716_v16   ;;  %v8103_v58 = vpop.f32.mrb[146].mxu0  ;;  %8686 = vrcp.f32 %v3873_v34 }
 0x59c   : > { %v8681_v48 = vpop.eup %8680  ;;  %v5534_v38 = vadd.f32 %v8103_v58, %v10708_v57  ;;  %v5528_v19 = vpop.f32.mrb[147].mxu0 }
 0x59d   : > { %v5529_v13 = vadd.f32 %v10708_v57, %v5528_v19  ;;  %8138 = vmatprep.mubr.msk.f32.mxu1 %vm1294_vm2, %v5597_v59  ;;  %v10724_v35 = vmul.f32 %v8681_v48, %v10455_v53  ;;  %v3882_v17 = vpop.xlane.xlu0 %3881  ;;  %v3879_v48 = vpop.xlane.xlu1 %3878 }
 0x59e   : > { %v5600_v51 = vmax.f32 %v5534_v38, 0.0  ;;  %8524 = vset.pattern.permute.xlu1 %v11395_v43  ;;  %8139 = vmatmul.mubr.msk.f32.vlgmr.msra.gmra.mrb[144].mxu1 %vm1294_vm2, %v5598_v22  ;;  %8688 = vrcp.f32 %v3882_v17 }
 0x59f   : > { %v5599_v10 = vmax.f32 %v5529_v13, 0.0  ;;  %4852 = vperm.xlu1 %8524, %v3910_v24   ;;  %4860 = vperm.xlu0 %8528, %v10724_v35   ;;  %v8106_v42 = vpop.f32.mrb[148].mxu0  ;;  %8690 = vrcp.f32 %v3879_v48 }
 0x5a0   : > { %v5544_v9 = vadd.f32 %v8106_v42, %v10708_v57  ;;  %v5538_v47 = vpop.f32.mrb[149].mxu0  ;;  %v8683_v50 = vpop.eup %8682 }
 0x5a1   : > { %v5539_v29 = vadd.f32 %v10708_v57, %v5538_v47  ;;  %8141 = vmatprep.mubr.msk.f32.mxu1 %vm1294_vm2, %v5599_v10  ;;  %v10734_v61 = vmul.f32 %v8683_v50, %v10465_v55 }
 0x5a2   : > { %v5602_v53 = vmax.f32 %v5544_v9, 0.0  ;;  %8142 = vmatmul.mubr.msk.f32.gmra.mrb[146].mxu1 %vm1294_vm2, %v5600_v51 }
 0x5a3   : > { %v5601_v21 = vmax.f32 %v5539_v29, 0.0  ;;  %8525 = vset.pattern.permute.xlu1 %v11396_v11  ;;  %8536 = vset.pattern.permute.xlu0 %v11396_v11  ;;  %v8109_v5 = vpop.f32.mrb[150].mxu0 }
 0x5a4   : > { %v5554_v7 = vadd.f32 %v8109_v5, %v10708_v57  ;;  %5348 = vperm.xlu1 %8525, %v3910_v24   ;;  %5352 = vperm.xlu0 %8536, %v10734_v61   ;;  %v5548_v54 = vpop.f32.mrb[151].mxu0  ;;  %v8685_v52 = vpop.eup %8684 }
 0x5a5   : > { %v5549_v3 = vadd.f32 %v10708_v57, %v5548_v54  ;;  %8144 = vmatprep.mubr.msk.f32.mxu1 %vm1294_vm2, %v5601_v21  ;;  %v10744_v22 = vmul.f32 %v8685_v52, %v10473_v32  ;;  %v8687_v4 = vpop.eup %8686  ;;  %v3888_v54 = vpop.xlane.xlu0 %3887 }
 0x5a6   : > { %8145 = vmatmul.mubr.msk.f32.gmra.mrb[148].mxu1 %vm1294_vm2, %v5602_v53  ;;  %v5604_v55 = vmax.f32 %v5554_v7, 0.0  ;;  %v10754_v13 = vmul.f32 %v8687_v4, %v10470_v30  ;;  %8692 = vrcp.f32 %v3888_v54 }
 0x5a7   : > { %v5603_v1 = vmax.f32 %v5549_v3, 0.0  ;;  %v8112_v37 = vpop.f32.mrb[152].mxu0 }
 0x5a8   : > { %v5564_v59 = vadd.f32 %v8112_v37, %v10708_v57  ;;  %8526 = vset.pattern.permute.xlu1 %v11394_v62  ;;  %8539 = vset.pattern.permute.xlu0 %v11395_v43  ;;  %v5558_v34 = vpop.f32.mrb[153].mxu0  ;;  %v8689_v53 = vpop.eup %8688 }
 0x5a9   : > { %v5559_v58 = vadd.f32 %v10708_v57, %v5558_v34  ;;  %5844 = vperm.xlu1 %8526, %v3910_v24   ;;  %4868 = vperm.xlu0 %8539, %v10744_v22  }
 0x5aa   : > { %8147 = vmatprep.mubr.msk.f32.mxu1 %vm1294_vm2, %v5603_v1  ;;  %v5606_v38 = vmax.f32 %v5564_v59, 0.0  ;;  %v8691_v1 = vpop.eup %8690  ;;  %v3885_v59 = vpop.xlane.xlu1 %3884 }
 0x5ab   : > { %v5605_v32 = vmax.f32 %v5559_v58, 0.0  ;;  %8148 = vmatmul.mubr.msk.f32.gmra.mrb[150].mxu1 %vm1294_vm2, %v5604_v55  ;;  %v8115_v19 = vpop.f32.mrb[154].mxu0  ;;  %v10776_v55 = vmul.f32 %v8689_v53, %v10483_v27  ;;  %8694 = vrcp.f32 %v3885_v59 }
 0x5ac   : > { %v5574_v51 = vadd.f32 %v8115_v19, %v10708_v57  ;;  %v5568_v10 = vpop.f32.mrb[155].mxu0 }
 0x5ad   : > { %v5569_v42 = vadd.f32 %v10708_v57, %v5568_v10  ;;  %8527 = vset.pattern.permute.xlu1 %v11393_v8  ;;  %4864 = vperm.xlu0 %8539, %v10754_v13  }
 0x5ae   : > { %8150 = vmatprep.mubr.msk.f32.mxu1 %vm1294_vm2, %v5605_v32  ;;  %4337 = vperm.xlu1 %8527, %v10716_v16   ;;  %v5608_v24 = vmax.f32 %v5574_v51, 0.0  ;;  %v3891_v58 = vpop.xlane.xlu1 %3890 }
 0x5af   : > { %v5607_v9 = vmax.f32 %v5569_v42, 0.0  ;;  %8151 = vmatmul.mubr.msk.f32.gmra.mrb[152].mxu1 %vm1294_vm2, %v5606_v38  ;;  %v8118_v30 = vpop.f32.mrb[156].mxu0 }
 0x5b0   : > { %v5584_v47 = vadd.f32 %v8118_v30, %v10708_v57  ;;  %v5578_v50 = vpop.f32.mrb[157].mxu0  ;;  %v8693_v27 = vpop.eup %8692 }
 0x5b1   : > { %v5579_v29 = vadd.f32 %v10708_v57, %v5578_v50  ;;  %8543 = vset.pattern.permute.xlu0 %v11396_v11  ;;  %8153 = vmatprep.mubr.msk.f32.mxu1 %vm1294_vm2, %v5607_v9  ;;  %v5935_v9 = vld [vmem:[%s11341_s18] sm:$0xff] }
 0x5b2   : > { %8529 = vset.pattern.permute.xlu1 %v11396_v11  ;;  %5360 = vperm.xlu0 %8543, %v10754_v13   ;;  %v5610_v21 = vmax.f32 %v5584_v47, 0.0  ;;  %v3897_v32 = vpop.xlane.xlu1 %3896 }
 0x5b3   : > { %v5609_v5 = vmax.f32 %v5579_v29, 0.0  ;;  %8154 = vmatmul.mubr.msk.f32.gmra.mrb[154].mxu1 %vm1294_vm2, %v5608_v24  ;;  %5344 = vperm.xlu1 %8529, %v10716_v16   ;;  %v8121_v7 = vpop.f32.mrb[158].mxu0 }
 0x5b4   : > { %v5594_v3 = vadd.f32 %v8121_v7, %v10708_v57  ;;  %v5588_v52 = vpop.f32.mrb[159].mxu0 }
 0x5b5   : > { %v5589_v17 = vadd.f32 %v10708_v57, %v5588_v52  ;;  %8156 = vmatprep.mubr.msk.f32.mxu1 %vm1294_vm2, %v5609_v5  ;;  %v10784_v57 = vmul.f32 %v8691_v1, %v10480_v60  ;;  %v10795_v60 = vmul.f32 %v8693_v27, %v10492_v40  ;;  %v8695_v34 = vpop.eup %8694 }
 0x5b6   : > { %8546 = vset.pattern.permute.xlu0 %v11395_v43  ;;  %v5612_v37 = vmax.f32 %v5594_v3, 0.0  ;;  %v10802_v48 = vmul.f32 %v8695_v34, %v10489_v12  ;;  %v3903_v10 = vpop.xlane.xlu1 %3902 }
 0x5b7   : > { %v5611_v4 = vmax.f32 %v5589_v17, 0.0  ;;  %8157 = vmatmul.mubr.msk.f32.gmra.mrb[156].mxu1 %vm1294_vm2, %v5610_v21  ;;  %8530 = vset.pattern.permute.xlu1 %v11394_v62 }
 0x5b8   : > { %4876 = vperm.xlu0 %8546, %v10776_v55   ;;  %5840 = vperm.xlu1 %8530, %v10716_v16   ;;  %v3894_v16 = vpop.xlane.xlu0 %3893 }
 0x5b9   : > { %8159 = vmatprep.mubr.msk.f32.mxu1 %vm1294_vm2, %v5611_v4  ;;  %8696 = vrcp.f32 %v3894_v16 }
 0x5ba   : > { %8698 = vrcp.f32 %v3891_v58 }
 0x5bb   : > { %8160 = vmatmul.mubr.msk.f32.gmra.mrb[158].mxu1 %vm1294_vm2, %v5612_v37  ;;  %v10909_v37 = vld [vmem:[%s11338_s15] ss:$0 sm:$0xff] }
 0x5bc   : > { %4872 = vperm.xlu0 %8546, %v10784_v57   ;;  %8531 = vset.pattern.permute.xlu1 %v11393_v8  ;;  %v3900_v38 = vpop.xlane.xlu0 %3899 }
 0x5bd   : > { %4352 = vperm.xlu1 %8531, %v10724_v35   ;;  %8700 = vrcp.f32 %v3900_v38 }
 0x5be   : > { %8702 = vrcp.f32 %v3897_v32 }
 0x5c0   : > { %8550 = vset.pattern.permute.xlu0 %v11396_v11  ;;  %v3906_v51 = vpop.xlane.xlu0 %3905 }
 0x5c1   : > { %5368 = vperm.xlu0 %8550, %v10784_v57   ;;  %8532 = vset.pattern.permute.xlu1 %v11396_v11  ;;  %8704 = vrcp.f32 %v3906_v51 }
 0x5c2   : > { %5356 = vperm.xlu1 %8532, %v10724_v35   ;;  %8706 = vrcp.f32 %v3903_v10  ;;  %v10941_v10 = vld [vmem:[%s11338_s15 + $0x1] ss:$0 sm:$0xff] }
 0x5c3   : > { %v8697_v40 = vpop.eup %8696 }
 0x5c4   : > { %v10812_v12 = vmul.f32 %v8697_v40, %v10500_v49 }
 0x5c5   : > { %8553 = vset.pattern.permute.xlu0 %v11395_v43 }
 0x5c6   : > { %4884 = vperm.xlu0 %8553, %v10795_v60   ;;  %8533 = vset.pattern.permute.xlu1 %v11394_v62 }
 0x5c7   : > { %5852 = vperm.xlu1 %8533, %v10724_v35   ;;  %v8699_v35 = vpop.eup %8698 }
 0x5c8   : > { %v10819_v19 = vmul.f32 %v8699_v35, %v10498_v39  ;;  %v8701_v49 = vpop.eup %8700 }
 0x5c9   : > { %v10829_v39 = vmul.f32 %v8701_v49, %v10508_v14 }
 0x5ca   : > { %4880 = vperm.xlu0 %8553, %v10802_v48  }
 0x5cb   : > { %8534 = vset.pattern.permute.xlu1 %v11393_v8 }
 0x5cc   : > { %4347 = vperm.xlu1 %8534, %v10734_v61  }
 0x5ce   : > { %8557 = vset.pattern.permute.xlu0 %v11396_v11 }
 0x5cf   : > { %5376 = vperm.xlu0 %8557, %v10802_v48  }
 0x5d0   : > { %8535 = vset.pattern.permute.xlu1 %v11395_v43 }
 0x5d1   : > { %4856 = vperm.xlu1 %8535, %v10734_v61  }
 0x5d3   : > { %8560 = vset.pattern.permute.xlu0 %v11395_v43 }
 0x5d4   : > { %4892 = vperm.xlu0 %8560, %v10812_v12  }
 0x5d5   : > { %8537 = vset.pattern.permute.xlu1 %v11394_v62 }
 0x5d6   : > { %5848 = vperm.xlu1 %8537, %v10734_v61   ;;  %v8703_v61 = vpop.eup %8702 }
 0x5d7   : > { %v10835_v42 = vmul.f32 %v8703_v61, %v10506_v23  ;;  %v8705_v14 = vpop.eup %8704 }
 0x5d8   : > { %4888 = vperm.xlu0 %8560, %v10819_v19   ;;  %v10845_v24 = vmul.f32 %v8705_v14, %v10520_v15  ;;  %v8707_v23 = vpop.eup %8706  ;;  %v5936_v15 = vld [vmem:[%s11341_s18 + $0x8] sm:$0xff] }
 0x5da   : > { %8538 = vset.pattern.permute.xlu1 %v11393_v8 }
 0x5db   : > { %4362 = vperm.xlu1 %8538, %v10744_v22  }
 0x5dc   : > { %8564 = vset.pattern.permute.xlu0 %v11396_v11 }
 0x5dd   : > { %5384 = vperm.xlu0 %8564, %v10819_v19  }
 0x5df   : > { %8540 = vset.pattern.permute.xlu1 %v11396_v11 }
 0x5e0   : > { %5364 = vperm.xlu1 %8540, %v10744_v22  }
 0x5e1   : > { %8567 = vset.pattern.permute.xlu0 %v11395_v43 }
 0x5e2   : > { %4900 = vperm.xlu0 %8567, %v10829_v39  }
 0x5e4   : > { %8541 = vset.pattern.permute.xlu1 %v11394_v62 }
 0x5e5   : > { %5860 = vperm.xlu1 %8541, %v10744_v22   ;;  %v10851_v22 = vmul.f32 %v8707_v23, %v10518_v33  ;;  %v5937_v33 = vld [vmem:[%s11341_s18 + $0x10] sm:$0xff] }
 0x5e6   : > { %4896 = vperm.xlu0 %8567, %v10835_v42  }
 0x5e9   : > { %8542 = vset.pattern.permute.xlu1 %v11393_v8 }
 0x5ea   : > { %8571 = vset.pattern.permute.xlu0 %v11396_v11  ;;  %4357 = vperm.xlu1 %8542, %v10754_v13  }
 0x5eb   : > { %5392 = vperm.xlu0 %8571, %v10835_v42  }
 0x5ee   : > { %8544 = vset.pattern.permute.xlu1 %v11394_v62 }
 0x5ef   : > { %8574 = vset.pattern.permute.xlu0 %v11395_v43  ;;  %5856 = vperm.xlu1 %8544, %v10754_v13   ;;  %v8442_v43 = vpack.c.bf16 %v5936_v15, %v5935_v9  ;;  %v5938_v13 = vld [vmem:[%s11341_s18 + $0x18] sm:$0xff] }
 0x5f0   : > { %4908 = vperm.xlu0 %8574, %v10845_v24   ;;  %v8446_v30 = vpack.c.bf16 %v5938_v13, %v5937_v33 }
 0x5f1   : > { %8443 = vmatprep.subr.bf16.mxu0 %v8442_v43 }
 0x5f2   : > { %8445 = vmatpush3.bf16.msra.mxu0 %v8442_v43 }
 0x5f3   : > { %8545 = vset.pattern.permute.xlu1 %v11393_v8  ;;  %8447 = vmatprep.subr.bf16.mxu0 %v8446_v30 }
 0x5f4   : > { %4904 = vperm.xlu0 %8574, %v10851_v22   ;;  %4372 = vperm.xlu1 %8545, %v10776_v55  }
 0x5f6   : > { %8449 = vmatpush3.bf16.msra.mxu0 %v8446_v30 }
 0x5f8   : > { %8577 = vset.pattern.permute.xlu0 %v11396_v11  ;;  %8547 = vset.pattern.permute.xlu1 %v11396_v11 }
 0x5f9   : > { %5400 = vperm.xlu0 %8577, %v10851_v22   ;;  %5372 = vperm.xlu1 %8547, %v10776_v55  }
 0x5fd   : > { %8579 = vset.pattern.permute.xlu0 %v11394_v62  ;;  %8548 = vset.pattern.permute.xlu1 %v11394_v62 }
 0x5fe   : > { %5900 = vperm.xlu0 %8579, %v10845_v24   ;;  %5868 = vperm.xlu1 %8548, %v10776_v55  }
 0x602   : > { %8549 = vset.pattern.permute.xlu1 %v11393_v8 }
 0x603   : > { %4367 = vperm.xlu1 %8549, %v10784_v57  }
 0x607   : > { %8551 = vset.pattern.permute.xlu1 %v11394_v62 }
 0x608   : > { %5864 = vperm.xlu1 %8551, %v10784_v57  }
 0x60c   : > { %8552 = vset.pattern.permute.xlu1 %v11393_v8 }
 0x60d   : > { %4382 = vperm.xlu1 %8552, %v10795_v60  }
 0x611   : > { %8554 = vset.pattern.permute.xlu1 %v11396_v11  ;;  %v7924_v47 = vpop.f32.mrb[96].mxu1 }
 0x612   : > { %5380 = vperm.xlu1 %8554, %v10795_v60   ;;  %v4240_v50 = vpop.f32.mrb[97].mxu1  ;;  %v4246_v35 = vadd.f32 %v7924_v47, %v10909_v37 }
 0x613   : > { %v4241_v51 = vadd.f32 %v10909_v37, %v4240_v50 }
 0x614   : > { %v4320_v23 = vmax.f32 %v4246_v35, 0.0 }
 0x615   : > { %v7927_v29 = vpop.f32.mrb[98].mxu1  ;;  %v4319_v33 = vmax.f32 %v4241_v51, 0.0 }
 0x616   : > { %8555 = vset.pattern.permute.xlu1 %v11394_v62  ;;  %v10885_v53 = vpop.f32.mrb[99].mxu1  ;;  %v4256_v47 = vadd.f32 %v7927_v29, %v10909_v37 }
 0x617   : > { %5876 = vperm.xlu1 %8555, %v10795_v60  }
 0x619   : > { %v4343_v21 = vpop.permute.xlu1 %4342  ;;  %v10888_v5 = vpop.f32.mrb[100].mxu1 }
 0x61a   : > { %v10890_v7 = vpop.f32.mrb[101].mxu1  ;;  %v4266_v26 = vadd.f32 %v10888_v5, %v10909_v37 }
 0x61b   : > { %8556 = vset.pattern.permute.xlu1 %v11393_v8 }
 0x61c   : > { %4377 = vperm.xlu1 %8556, %v10802_v48   ;;  %v4324_v44 = vmax.f32 %v4266_v26, 0.0 }
 0x61d   : > { %v10894_v54 = vpop.f32.mrb[102].mxu1 }
 0x61e   : > { %v4853_v3 = vpop.permute.xlu1 %4852  ;;  %v10896_v52 = vpop.f32.mrb[103].mxu1 }
 0x620   : > { %8558 = vset.pattern.permute.xlu1 %v11394_v62 }
 0x621   : > { %5872 = vperm.xlu1 %8558, %v10802_v48   ;;  %v10900_v17 = vpop.f32.mrb[104].mxu1 }
 0x622   : > { %v10902_v55 = vpop.f32.mrb[105].mxu1 }
 0x623   : > { %v10904_v1 = vpop.permute.xlu1 %5348 }
 0x625   : > { %8559 = vset.pattern.permute.xlu1 %v11393_v8  ;;  %v7939_v4 = vpop.f32.mrb[106].mxu1 }
 0x626   : > { %4392 = vperm.xlu1 %8559, %v10812_v12   ;;  %v10914_v59 = vadd.f32 %v7939_v4, %v10909_v37  ;;  %v4290_v57 = vpop.f32.mrb[107].mxu1 }
 0x627   : > { %v10917_v27 = vadd.f32 %v10909_v37, %v4290_v57  ;;  %v4849_v57 = vpop.permute.xlu0 %4848 }
 0x628   : > { %v10919_v16 = vpop.permute.xlu1 %5844 }
 0x629   : > { %v7942_v60 = vpop.f32.mrb[108].mxu1 }
 0x62a   : > { %8561 = vset.pattern.permute.xlu1 %v11396_v11  ;;  %v10923_v34 = vadd.f32 %v7942_v60, %v10909_v37  ;;  %v4300_v58 = vpop.f32.mrb[109].mxu1 }
 0x62b   : > { %5388 = vperm.xlu1 %8561, %v10812_v12   ;;  %v10927_v48 = vadd.f32 %v10909_v37, %v4300_v58 }
 0x62d   : > { %v4338_v40 = vpop.permute.xlu1 %4337  ;;  %v7945_v38 = vpop.f32.mrb[110].mxu1 }
 0x62e   : > { %v10931_v32 = vadd.f32 %v7945_v38, %v10909_v37  ;;  %v4310_v49 = vpop.f32.mrb[111].mxu1  ;;  %v4415_v35 = vmul.f32 %v4338_v40, %v4319_v33 }
 0x62f   : > { %8562 = vset.pattern.permute.xlu1 %v11394_v62  ;;  %v10936_v61 = vadd.f32 %v10909_v37, %v4310_v49 }
 0x630   : > { %5884 = vperm.xlu1 %8562, %v10812_v12   ;;  %v4416_v12 = vmul.f32 %v4343_v21, %v4320_v23 }
 0x631   : > { %v7996_v14 = vpop.f32.mrb[112].mxu1 }
 0x632   : > { %v4758_v9 = vadd.f32 %v7996_v14, %v10941_v10  ;;  %v10945_v15 = vpop.permute.xlu1 %5344  ;;  %v4752_v43 = vpop.f32.mrb[113].mxu1 }
 0x633   : > { %v4753_v13 = vadd.f32 %v10941_v10, %v4752_v43 }
 0x634   : > { %v4832_v30 = vmax.f32 %v4758_v9, 0.0  ;;  %8563 = vset.pattern.permute.xlu1 %v11393_v8  ;;  %v4322_v9 = vmax.f32 %v4256_v47, 0.0 }
 0x635   : > { %v4831_v50 = vmax.f32 %v4753_v13, 0.0  ;;  %4387 = vperm.xlu1 %8563, %v10819_v19   ;;  %v7999_v4 = vpop.f32.mrb[114].mxu1 }
 0x636   : > { %v4912_v60 = vmul.f32 %v4853_v3, %v4832_v30  ;;  %v4768_v58 = vadd.f32 %v7999_v4, %v10941_v10  ;;  %v4762_v38 = vpop.f32.mrb[115].mxu1  ;;  %v4861_v3 = vpop.permute.xlu0 %4860 }
 0x637   : > { %v4911_v49 = vmul.f32 %v4849_v57, %v4831_v50  ;;  %v10952_v51 = vpop.permute.xlu1 %5840 }
 0x638   : > { %v10954_v14 = vadd.f32 %v4912_v60, %v4416_v12  ;;  %v4834_v29 = vmax.f32 %v4768_v58, 0.0 }
 0x639   : > { %v10956_v43 = vadd.f32 %v4911_v49, %v4415_v35  ;;  %8565 = vset.pattern.permute.xlu1 %v11394_v62  ;;  %v8002_v13 = vpop.f32.mrb[116].mxu1 }
 0x63a   : > { %5880 = vperm.xlu1 %8565, %v10819_v19   ;;  %v10960_v21 = vpop.f32.mrb[117].mxu1  ;;  %v4914_v30 = vmul.f32 %v4861_v3, %v4834_v29  ;;  %v4763_v29 = vadd.f32 %v10941_v10, %v4762_v38 }
 0x63c   : > { %v4353_v23 = vpop.permute.xlu1 %4352  ;;  %v4833_v36 = vmax.f32 %v4763_v29, 0.0 }
 0x63d   : > { %v4418_v40 = vmul.f32 %v4353_v23, %v4322_v9  ;;  %v10962_v33 = vpop.f32.mrb[118].mxu1  ;;  %v4251_v9 = vadd.f32 %v10909_v37, %v10885_v53 }
 0x63e   : > { %8566 = vset.pattern.permute.xlu1 %v11393_v8  ;;  %v10965_v50 = vpop.f32.mrb[119].mxu1 }
 0x63f   : > { %v10967_v47 = vadd.f32 %v4914_v30, %v4418_v40  ;;  %4402 = vperm.xlu1 %8566, %v10829_v39  }
 0x641   : > { %v5357_v4 = vpop.permute.xlu1 %5356  ;;  %v10970_v12 = vpop.f32.mrb[120].mxu1 }
 0x642   : > { %v10972_v19 = vpop.f32.mrb[121].mxu1 }
 0x643   : > { %8568 = vset.pattern.permute.xlu1 %v11396_v11 }
 0x644   : > { %5396 = vperm.xlu1 %8568, %v10829_v39  }
 0x645   : > { %v8011_v57 = vpop.f32.mrb[122].mxu1 }
 0x646   : > { %v10976_v60 = vpop.permute.xlu1 %5852  ;;  %v10979_v58 = vadd.f32 %v8011_v57, %v10941_v10  ;;  %v4802_v35 = vpop.f32.mrb[123].mxu1 }
 0x647   : > { %v10982_v49 = vadd.f32 %v10941_v10, %v4802_v35  ;;  %v4321_v35 = vmax.f32 %v4251_v9, 0.0 }
 0x648   : > { %8569 = vset.pattern.permute.xlu1 %v11394_v62 }
 0x649   : > { %5892 = vperm.xlu1 %8569, %v10829_v39   ;;  %v8014_v3 = vpop.f32.mrb[124].mxu1 }
 0x64a   : > { %v10990_v23 = vadd.f32 %v8014_v3, %v10941_v10  ;;  %v4812_v30 = vpop.f32.mrb[125].mxu1  ;;  %v11006_v3 = vld [vmem:[%s11338_s15 + $0x2] ss:$0 sm:$0xff] }
 0x64b   : > { %v4348_v40 = vpop.permute.xlu1 %4347  ;;  %v10993_v57 = vadd.f32 %v10941_v10, %v4812_v30 }
 0x64c   : > { %v4417_v9 = vmul.f32 %v4348_v40, %v4321_v35 }
 0x64d   : > { %8570 = vset.pattern.permute.xlu1 %v11393_v8  ;;  %v8017_v31 = vpop.f32.mrb[126].mxu1 }
 0x64e   : > { %4397 = vperm.xlu1 %8570, %v10835_v42   ;;  %v10998_v53 = vadd.f32 %v8017_v31, %v10941_v10  ;;  %v4822_v39 = vpop.f32.mrb[127].mxu1  ;;  %v5353_v31 = vpop.permute.xlu0 %5352 }
 0x64f   : > { %v11001_v38 = vadd.f32 %v10941_v10, %v4822_v39  ;;  %v4778_v39 = vadd.f32 %v8002_v13, %v10941_v10 }
 0x650   : > { %v4857_v30 = vpop.permute.xlu1 %4856 }
 0x651   : > { %v4913_v29 = vmul.f32 %v4857_v30, %v4833_v36  ;;  %v8068_v18 = vpop.f32.mrb[128].mxu1  ;;  %v4836_v41 = vmax.f32 %v4778_v39, 0.0 }
 0x652   : > { %v5254_v25 = vadd.f32 %v8068_v18, %v11006_v3  ;;  %8572 = vset.pattern.permute.xlu1 %v11394_v62  ;;  %v5248_v56 = vpop.f32.mrb[129].mxu1 }
 0x653   : > { %v4929_v6 = vadd.f32 %v4913_v29, %v4417_v9  ;;  %v5249_v45 = vadd.f32 %v11006_v3, %v5248_v56  ;;  %5888 = vperm.xlu1 %8572, %v10835_v42  }
 0x654   : > { %v5328_v0 = vmax.f32 %v5254_v25, 0.0  ;;  %v4869_v25 = vpop.permute.xlu0 %4868 }
 0x655   : > { %v5327_v40 = vmax.f32 %v5249_v45, 0.0  ;;  %v11015_v36 = vpop.permute.xlu1 %5848  ;;  %v8071_v35 = vpop.f32.mrb[130].mxu1 }
 0x656   : > { %v5408_v18 = vmul.f32 %v10904_v1, %v5328_v0  ;;  %v5264_v30 = vadd.f32 %v8071_v35, %v11006_v3  ;;  %v5258_v28 = vpop.f32.mrb[131].mxu1 }
 0x657   : > { %v5407_v5 = vmul.f32 %v10945_v15, %v5327_v40  ;;  %v5259_v13 = vadd.f32 %v11006_v3, %v5258_v28  ;;  %8573 = vset.pattern.permute.xlu1 %v11393_v8  ;;  %v4916_v28 = vmul.f32 %v4869_v25, %v4836_v41 }
 0x658   : > { %v11023_v56 = vadd.f32 %v5408_v18, %v10954_v14  ;;  %v5330_v45 = vmax.f32 %v5264_v30, 0.0  ;;  %4412 = vperm.xlu1 %8573, %v10845_v24  }
 0x659   : > { %v11027_v0 = vadd.f32 %v5407_v5, %v10956_v43  ;;  %v5329_v42 = vmax.f32 %v5259_v13, 0.0  ;;  %v8074_v1 = vpop.f32.mrb[132].mxu1 }
 0x65a   : > { %v5410_v26 = vmul.f32 %v5357_v4, %v5330_v45  ;;  %v5274_v9 = vadd.f32 %v8074_v1, %v11006_v3  ;;  %v4363_v15 = vpop.permute.xlu1 %4362  ;;  %v5268_v29 = vpop.f32.mrb[133].mxu1 }
 0x65b   : > { %v5409_v39 = vmul.f32 %v5353_v31, %v5329_v42  ;;  %v4420_v40 = vmul.f32 %v4363_v15, %v4324_v44  ;;  %v4261_v44 = vadd.f32 %v10909_v37, %v10890_v7  ;;  %v4865_v45 = vpop.permute.xlu0 %4864 }
 0x65c   : > { %v11031_v14 = vadd.f32 %v5410_v26, %v10967_v47  ;;  %v5332_v35 = vmax.f32 %v5274_v9, 0.0  ;;  %8575 = vset.pattern.permute.xlu1 %v11396_v11  ;;  %v4773_v11 = vadd.f32 %v10941_v10, %v10960_v21  ;;  %v5269_v47 = vadd.f32 %v11006_v3, %v5268_v29 }
 0x65d   : > { %v11034_v18 = vadd.f32 %v5409_v39, %v4929_v6  ;;  %v4932_v43 = vadd.f32 %v4916_v28, %v4420_v40  ;;  %5404 = vperm.xlu1 %8575, %v10845_v24   ;;  %v8077_v30 = vpop.f32.mrb[134].mxu1  ;;  %v4323_v25 = vmax.f32 %v4261_v44, 0.0 }
 0x65e   : > { %v11037_v4 = vpop.f32.mrb[135].mxu1  ;;  %v4835_v42 = vmax.f32 %v4773_v11, 0.0  ;;  %v5331_v26 = vmax.f32 %v5269_v47, 0.0 }
 0x65f   : > { %v5365_v5 = vpop.permute.xlu1 %5364 }
 0x660   : > { %v5412_v13 = vmul.f32 %v5365_v5, %v5332_v35  ;;  %v4915_v29 = vmul.f32 %v4865_v45, %v4835_v42  ;;  %v5361_v35 = vpop.permute.xlu0 %5360  ;;  %v4788_v5 = vadd.f32 %v10962_v33, %v10941_v10 }
 0x661   : > { %8576 = vset.pattern.permute.xlu1 %v11393_v8  ;;  %v11040_v41 = vpop.f32.mrb[136].mxu1 }
 0x662   : > { %v11046_v6 = vadd.f32 %v5412_v13, %v4932_v43  ;;  %4407 = vperm.xlu1 %8576, %v10851_v22   ;;  %v11049_v24 = vpop.f32.mrb[137].mxu1  ;;  %v4838_v33 = vmax.f32 %v4788_v5, 0.0 }
 0x664   : > { %v11052_v31 = vpop.permute.xlu1 %5860 }
 0x665   : > { %v8083_v8 = vpop.f32.mrb[138].mxu1 }
 0x666   : > { %v11055_v1 = vadd.f32 %v8083_v8, %v11006_v3  ;;  %8578 = vset.pattern.permute.xlu1 %v11394_v62  ;;  %v5298_v7 = vpop.f32.mrb[139].mxu1  ;;  %v4276_v62 = vadd.f32 %v10894_v54, %v10909_v37  ;;  %v11083_v54 = vld [vmem:[%s11338_s15 + $0x3] ss:$0 sm:$0xff] }
 0x667   : > { %v11059_v21 = vadd.f32 %v11006_v3, %v5298_v7  ;;  %5896 = vperm.xlu1 %8578, %v10851_v22   ;;  %v5411_v22 = vmul.f32 %v5361_v35, %v5331_v26  ;;  %v5284_v7 = vadd.f32 %v8077_v30, %v11006_v3 }
 0x668   : > { %v4326_v42 = vmax.f32 %v4276_v62, 0.0 }
 0x669   : > { %v4358_v9 = vpop.permute.xlu1 %4357  ;;  %v8086_v15 = vpop.f32.mrb[140].mxu1 }
 0x66a   : > { %v4419_v28 = vmul.f32 %v4358_v9, %v4323_v25  ;;  %v11063_v39 = vadd.f32 %v8086_v15, %v11006_v3  ;;  %v5308_v40 = vpop.f32.mrb[141].mxu1 }
 0x66b   : > { %v11066_v43 = vadd.f32 %v11006_v3, %v5308_v40 }
 0x66c   : > { %v4931_v13 = vadd.f32 %v4915_v29, %v4419_v28  ;;  %v4877_v29 = vpop.permute.xlu0 %4876 }
 0x66d   : > { %v8089_v44 = vpop.f32.mrb[142].mxu1  ;;  %v4918_v35 = vmul.f32 %v4877_v29, %v4838_v33 }
 0x66e   : > { %v11072_v11 = vadd.f32 %v5411_v22, %v4931_v13  ;;  %v5857_v47 = vpop.permute.xlu1 %5856  ;;  %v11075_v45 = vadd.f32 %v8089_v44, %v11006_v3  ;;  %v5318_v8 = vpop.f32.mrb[143].mxu1  ;;  %v5334_v44 = vmax.f32 %v5284_v7, 0.0 }
 0x66f   : > { %v11078_v25 = vadd.f32 %v11006_v3, %v5318_v8 }
 0x671   : > { %11449 = vst [vmem:[#allocation6_spill] sm:$0xff] %v11078_v25  ;;  %v8140_v26 = vpop.f32.mrb[144].mxu1 }
 0x672   : > { %v5750_v9 = vadd.f32 %v8140_v26, %v11083_v54  ;;  %v5744_v15 = vpop.f32.mrb[145].mxu1 }
 0x673   : > { %v5745_v28 = vadd.f32 %v11083_v54, %v5744_v15  ;;  %v4373_v40 = vpop.permute.xlu1 %4372 }
 0x674   : > { %v5824_v22 = vmax.f32 %v5750_v9, 0.0  ;;  %v4422_v13 = vmul.f32 %v4373_v40, %v4326_v42 }
 0x675   : > { %v5823_v8 = vmax.f32 %v5745_v28, 0.0  ;;  %v8143_v2 = vpop.f32.mrb[146].mxu1 }
 0x676   : > { %v5904_v20 = vmul.f32 %v10919_v16, %v5824_v22  ;;  %v4934_v62 = vadd.f32 %v4918_v35, %v4422_v13  ;;  %v5760_v5 = vadd.f32 %v8143_v2, %v11083_v54  ;;  %v5754_v30 = vpop.f32.mrb[147].mxu1  ;;  %v4783_v2 = vadd.f32 %v10941_v10, %v10965_v50  ;;  %v4873_v35 = vpop.permute.xlu0 %4872 }
 0x677   : > { %v5903_v63 = vmul.f32 %v10952_v51, %v5823_v8  ;;  %v5755_v26 = vadd.f32 %v11083_v54, %v5754_v30 }
 0x678   : > { %v5920_v46 = vadd.f32 %v5904_v20, %v11023_v56  ;;  %v5826_v15 = vmax.f32 %v5760_v5, 0.0  ;;  %v5373_v25 = vpop.permute.xlu1 %5372 }
 0x679   : > { %v5919_v33 = vadd.f32 %v5903_v63, %v11027_v0  ;;  %v5825_v42 = vmax.f32 %v5755_v26, 0.0  ;;  %v5414_v7 = vmul.f32 %v5373_v25, %v5334_v44  ;;  %v8146_v9 = vpop.f32.mrb[148].mxu1  ;;  %v5279_v0 = vadd.f32 %v11006_v3, %v11037_v4 }
 0x67a   : > { %v5906_v29 = vmul.f32 %v10976_v60, %v5826_v15  ;;  %v5770_v16 = vadd.f32 %v8146_v9, %v11083_v54  ;;  %v5764_v28 = vpop.f32.mrb[149].mxu1  ;;  %v4271_v60 = vadd.f32 %v10909_v37, %v10896_v52  ;;  %v4837_v44 = vmax.f32 %v4783_v2, 0.0 }
 0x67b   : > { %v5905_v51 = vmul.f32 %v11015_v36, %v5825_v42  ;;  %v5430_v40 = vadd.f32 %v5414_v7, %v4934_v62  ;;  %v5765_v20 = vadd.f32 %v11083_v54, %v5764_v28  ;;  %8170 = vmatprep.mubr.msk.f32.mxu0 %vm736_vm0, %v5919_v33  ;;  %v5333_v62 = vmax.f32 %v5279_v0, 0.0  ;;  %v5369_v7 = vpop.permute.xlu0 %5368 }
 0x67c   : > { %v5922_v63 = vadd.f32 %v5906_v29, %v11031_v14  ;;  %v5828_v56 = vmax.f32 %v5770_v16, 0.0  ;;  %8171 = vmatmul.mubr.msk.f32.vlgmr.msra.gmra.mrb[160].mxu0 %vm736_vm0, %v5920_v46  ;;  %v4917_v15 = vmul.f32 %v4873_v35, %v4837_v44  ;;  %v4286_v2 = vadd.f32 %v10900_v17, %v10909_v37 }
 0x67d   : > { %v5921_v50 = vadd.f32 %v5905_v51, %v11034_v18  ;;  %v5827_v25 = vmax.f32 %v5765_v20, 0.0  ;;  %v5869_v36 = vpop.permute.xlu1 %5868  ;;  %v4325_v18 = vmax.f32 %v4271_v60, 0.0  ;;  %v5413_v29 = vmul.f32 %v5369_v7, %v5333_v62 }
 0x67e   : > { %v5908_v22 = vmul.f32 %v11052_v31, %v5828_v56  ;;  %v8149_v13 = vpop.f32.mrb[150].mxu1  ;;  %v4328_v35 = vmax.f32 %v4286_v2, 0.0  ;;  %v4281_v7 = vadd.f32 %v10909_v37, %v10902_v55 }
 0x67f   : > { %v5907_v8 = vmul.f32 %v5857_v47, %v5827_v25  ;;  %v5780_v14 = vadd.f32 %v8149_v13, %v11083_v54  ;;  %8173 = vmatprep.mubr.msk.f32.mxu0 %vm736_vm0, %v5921_v50  ;;  %v5774_v46 = vpop.f32.mrb[151].mxu1  ;;  %v4885_v25 = vpop.permute.xlu0 %4884 }
 0x680   : > { %v5924_v52 = vadd.f32 %v5908_v22, %v11046_v6  ;;  %8174 = vmatmul.mubr.msk.f32.gmra.mrb[162].mxu0 %vm736_vm0, %v5922_v63  ;;  %v5775_v4 = vadd.f32 %v11083_v54, %v5774_v46  ;;  %v4798_v6 = vadd.f32 %v10970_v12, %v10941_v10  ;;  %v5294_v12 = vadd.f32 %v11040_v41, %v11006_v3 }
 0x681   : > { %v5923_v5 = vadd.f32 %v5907_v8, %v11072_v11  ;;  %v5830_v30 = vmax.f32 %v5780_v14, 0.0  ;;  %v4327_v2 = vmax.f32 %v4281_v7, 0.0 }
 0x682   : > { %v4368_v31 = vpop.permute.xlu1 %4367  ;;  %v8152_v26 = vpop.f32.mrb[152].mxu1  ;;  %v5829_v9 = vmax.f32 %v5775_v4, 0.0  ;;  %v4840_v50 = vmax.f32 %v4798_v6, 0.0  ;;  %v5336_v46 = vmax.f32 %v5294_v12, 0.0 }
 0x683   : > { %v5910_v47 = vmul.f32 %v5869_v36, %v5830_v30  ;;  %v4421_v33 = vmul.f32 %v4368_v31, %v4325_v18  ;;  %8176 = vmatprep.mubr.msk.f32.mxu0 %vm736_vm0, %v5923_v5  ;;  %v5784_v42 = vpop.f32.mrb[153].mxu1  ;;  %v5790_v41 = vadd.f32 %v8152_v26, %v11083_v54  ;;  %v5289_v26 = vadd.f32 %v11006_v3, %v11049_v24  ;;  %v4881_v6 = vpop.permute.xlu0 %4880 }
 0x684   : > { %8177 = vmatmul.mubr.msk.f32.gmra.mrb[164].mxu0 %vm736_vm0, %v5924_v52  ;;  %v4920_v8 = vmul.f32 %v4885_v25, %v4840_v50  ;;  %v4842_v3 = vmax.f32 %v10979_v58, 0.0 }
 0x685   : > { %v5926_v16 = vadd.f32 %v5910_v47, %v5430_v40  ;;  %v4933_v28 = vadd.f32 %v4917_v15, %v4421_v33  ;;  %v5832_v15 = vmax.f32 %v5790_v41, 0.0  ;;  %v4793_v47 = vadd.f32 %v10941_v10, %v10972_v19 }
 0x686   : > { %v8155_v11 = vpop.f32.mrb[154].mxu1 }
 0x687   : > { %v5865_v51 = vpop.permute.xlu1 %5864  ;;  %v5429_v20 = vadd.f32 %v5413_v29, %v4933_v28  ;;  %v11122_v63 = vadd.f32 %v8155_v11, %v11083_v54  ;;  %v5794_v56 = vpop.f32.mrb[155].mxu1  ;;  %v5785_v28 = vadd.f32 %v11083_v54, %v5784_v42 }
 0x688   : > { %v5909_v60 = vmul.f32 %v5865_v51, %v5829_v9  ;;  %v11125_v0 = vadd.f32 %v11083_v54, %v5794_v56  ;;  %v5335_v51 = vmax.f32 %v5289_v26, 0.0  ;;  %v5377_v10 = vpop.permute.xlu0 %5376 }
 0x689   : > { %v5831_v19 = vmax.f32 %v5785_v28, 0.0  ;;  %v4844_v28 = vmax.f32 %v10990_v23, 0.0 }
 0x68a   : > { %v5925_v40 = vadd.f32 %v5909_v60, %v5429_v20  ;;  %v8158_v36 = vpop.f32.mrb[156].mxu1  ;;  %v5415_v50 = vmul.f32 %v5377_v10, %v5335_v51  ;;  %v5833_v7 = vmax.f32 %v11125_v0, 0.0 }
 0x68b   : > { %v11130_v17 = vadd.f32 %v8158_v36, %v11083_v54  ;;  %v5804_v22 = vpop.f32.mrb[157].mxu1  ;;  %v4330_v36 = vmax.f32 %v10914_v59, 0.0  ;;  %v4841_v59 = vmax.f32 %v10982_v49, 0.0 }
 0x68c   : > { %v4383_v13 = vpop.permute.xlu1 %4382  ;;  %v11133_v44 = vadd.f32 %v11083_v54, %v5804_v22  ;;  %8179 = vmatprep.mubr.msk.f32.mxu0 %vm736_vm0, %v5925_v40  ;;  %v4893_v24 = vpop.permute.xlu0 %4892  ;;  %v5338_v22 = vmax.f32 %v11055_v1, 0.0 }
 0x68d   : > { %v4424_v14 = vmul.f32 %v4383_v13, %v4328_v35  ;;  %8180 = vmatmul.mubr.msk.f32.gmra.mrb[166].mxu0 %vm736_vm0, %v5926_v16  ;;  %v4839_v16 = vmax.f32 %v4793_v47, 0.0  ;;  %v4922_v42 = vmul.f32 %v4893_v24, %v4842_v3  ;;  %v5836_v10 = vmax.f32 %v11130_v17, 0.0  ;;  %v6155_v17 = vld [vmem:[%s11343_s20] sm:$0xff] }
 0x68e   : > { %v8161_v52 = vpop.f32.mrb[158].mxu1 }
 0x68f   : > { %v4936_v4 = vadd.f32 %v4920_v8, %v4424_v14  ;;  %v11139_v18 = vadd.f32 %v8161_v52, %v11083_v54  ;;  %v5814_v62 = vpop.f32.mrb[159].mxu1  ;;  %v4919_v56 = vmul.f32 %v4881_v6, %v4839_v16 }
 0x690   : > { %v11142_v5 = vadd.f32 %v11083_v54, %v5814_v62  ;;  %v4889_v58 = vpop.permute.xlu0 %4888 }
 0x691   : > { %v5381_v30 = vpop.permute.xlu1 %5380 }
 0x692   : > { %v5416_v31 = vmul.f32 %v5381_v30, %v5336_v46  ;;  %v5834_v46 = vmax.f32 %v11122_v63, 0.0  ;;  %v4329_v30 = vmax.f32 %v10917_v27, 0.0 }
 0x694   : > { %v5432_v33 = vadd.f32 %v5416_v31, %v4936_v4  ;;  %v5337_v31 = vmax.f32 %v11059_v21, 0.0 }
 0x696   : > { %v5877_v9 = vpop.permute.xlu1 %5876 }
 0x697   : > { %v5912_v29 = vmul.f32 %v5877_v9, %v5832_v15  ;;  %v5385_v15 = vpop.permute.xlu0 %5384 }
 0x698   : > { %v5417_v26 = vmul.f32 %v5385_v15, %v5337_v31  ;;  %v4845_v31 = vmax.f32 %v11001_v38, 0.0 }
 0x699   : > { %v5928_v11 = vadd.f32 %v5912_v29, %v5432_v33  ;;  %v4921_v33 = vmul.f32 %v4889_v58, %v4841_v59  ;;  %v5342_v59 = vmax.f32 %v11075_v45, 0.0  ;;  %v5837_v45 = vmax.f32 %v11142_v5, 0.0 }
 0x69b   : > { %v4378_v20 = vpop.permute.xlu1 %4377  ;;  %v4901_v29 = vpop.permute.xlu0 %4900 }
 0x69c   : > { %v4423_v60 = vmul.f32 %v4378_v20, %v4327_v2  ;;  %v4924_v21 = vmul.f32 %v4901_v29, %v4844_v28  ;;  %v5340_v20 = vmax.f32 %v11063_v39, 0.0  ;;  %v5835_v39 = vmax.f32 %v11133_v44, 0.0 }
 0x69d   : > { %v4334_v44 = vmax.f32 %v10931_v32, 0.0 }
 0x69e   : > { %v4935_v25 = vadd.f32 %v4919_v56, %v4423_v60 }
 0x69f   : > { %v4897_v51 = vpop.permute.xlu0 %4896 }
 0x6a0   : > { %v5873_v55 = vpop.permute.xlu1 %5872  ;;  %v5431_v37 = vadd.f32 %v5415_v50, %v4935_v25 }
 0x6a1   : > { %v5911_v12 = vmul.f32 %v5873_v55, %v5831_v19 }
 0x6a3   : > { %v5927_v40 = vadd.f32 %v5911_v12, %v5431_v37  ;;  %v5393_v19 = vpop.permute.xlu0 %5392  ;;  %v4331_v37 = vmax.f32 %v10927_v48, 0.0  ;;  %v5339_v12 = vmax.f32 %v11066_v43, 0.0 }
 0x6a5   : > { %v4393_v54 = vpop.permute.xlu1 %4392  ;;  %8182 = vmatprep.mubr.msk.f32.mxu0 %vm736_vm0, %v5927_v40 }
 0x6a6   : > { %v4426_v35 = vmul.f32 %v4393_v54, %v4330_v36  ;;  %8183 = vmatmul.mubr.msk.f32.gmra.mrb[168].mxu0 %vm736_vm0, %v5928_v11  ;;  %v4332_v11 = vmax.f32 %v10923_v34, 0.0  ;;  %v4843_v34 = vmax.f32 %v10993_v57, 0.0  ;;  %v5419_v54 = vmul.f32 %v5393_v19, %v5339_v12  ;;  %v6156_v57 = vld [vmem:[%s11343_s20 + $0x8] sm:$0xff] }
 0x6a7   : > { %v4909_v3 = vpop.permute.xlu0 %4908  ;;  %v8450_v43 = vpack.c.bf16 %v6156_v57, %v6155_v17 }
 0x6a8   : > { %v4938_v13 = vadd.f32 %v4922_v42, %v4426_v35  ;;  %v4923_v40 = vmul.f32 %v4897_v51, %v4843_v34 }
 0x6a9   : > { %8451 = vmatprep.subr.bf16.mxu1 %v8450_v43 }
 0x6aa   : > { %v5389_v8 = vpop.permute.xlu1 %5388  ;;  %8453 = vmatpush3.bf16.msra.mxu1 %v8450_v43 }
 0x6ab   : > { %v5418_v14 = vmul.f32 %v5389_v8, %v5338_v22  ;;  %v4905_v35 = vpop.permute.xlu0 %4904  ;;  %v4846_v8 = vmax.f32 %v10998_v53, 0.0 }
 0x6ad   : > { %v5434_v52 = vadd.f32 %v5418_v14, %v4938_v13 }
 0x6af   : > { %v5885_v41 = vpop.permute.xlu1 %5884  ;;  %v5401_v58 = vpop.permute.xlu0 %5400 }
 0x6b0   : > { %v5914_v4 = vmul.f32 %v5885_v41, %v5834_v46 }
 0x6b2   : > { %v5930_v62 = vadd.f32 %v5914_v4, %v5434_v52  ;;  %v4926_v52 = vmul.f32 %v4909_v3, %v4846_v8 }
 0x6b3   : > { %v5901_v15 = vpop.permute.xlu0 %5900 }
 0x6b4   : > { %v4388_v47 = vpop.permute.xlu1 %4387 }
 0x6b5   : > { %v4425_v1 = vmul.f32 %v4388_v47, %v4329_v30 }
 0x6b7   : > { %v4937_v9 = vadd.f32 %v4921_v33, %v4425_v1  ;;  %v4333_v33 = vmax.f32 %v10936_v61, 0.0  ;;  %v11450_v1 = vld [vmem:[#allocation6_spill] sm:$0xff] }
 0x6b8   : > { %v6958_v61 = vld [vmem:[%s11342_s19] ss:$0 sm:$0xff] }
 0x6b9   : > { %v5881_v63 = vpop.permute.xlu1 %5880  ;;  %v5433_v6 = vadd.f32 %v5417_v26, %v4937_v9 }
 0x6ba   : > { %v5913_v16 = vmul.f32 %v5881_v63, %v5833_v7  ;;  %v5341_v7 = vmax.f32 %v11450_v1, 0.0  ;;  %v4925_v63 = vmul.f32 %v4905_v35, %v4845_v31  ;;  %v11451_v1 = vld [vmem:[#allocation2_spill] sm:$0xff] }
 0x6bc   : > { %v5929_v49 = vadd.f32 %v5913_v16, %v5433_v6  ;;  %v5421_v29 = vmul.f32 %v5401_v58, %v5341_v7 }
 0x6be   : > { %v4403_v27 = vpop.permute.xlu1 %4402  ;;  %8185 = vmatprep.mubr.msk.f32.mxu0 %vm736_vm0, %v5929_v49 }
 0x6bf   : > { %v4428_v2 = vmul.f32 %v4403_v27, %v4332_v11  ;;  %8186 = vmatmul.mubr.msk.f32.gmra.mrb[170].mxu0 %vm736_vm0, %v5930_v62  ;;  %v5838_v62 = vmax.f32 %v11139_v18, 0.0 }
 0x6c1   : > { %v4940_v0 = vadd.f32 %v4924_v21, %v4428_v2  ;;  %v5918_v47 = vmul.f32 %v5901_v15, %v5838_v62 }
 0x6c3   : > { %v5397_v56 = vpop.permute.xlu1 %5396 }
 0x6c4   : > { %v5420_v60 = vmul.f32 %v5397_v56, %v5340_v20 }
 0x6c6   : > { %v5436_v23 = vadd.f32 %v5420_v60, %v4940_v0 }
 0x6c8   : > { %v5893_v50 = vpop.permute.xlu1 %5892 }
 0x6c9   : > { %v5916_v25 = vmul.f32 %v5893_v50, %v5836_v10 }
 0x6cb   : > { %v5932_v55 = vadd.f32 %v5916_v25, %v5436_v23 }
 0x6cd   : > { %v4398_v24 = vpop.permute.xlu1 %4397 }
 0x6ce   : > { %v4427_v36 = vmul.f32 %v4398_v24, %v4331_v37 }
 0x6d0   : > { %v4939_v42 = vadd.f32 %v4923_v40, %v4427_v36 }
 0x6d2   : > { %v5889_v48 = vpop.permute.xlu1 %5888  ;;  %v5435_v22 = vadd.f32 %v5419_v54, %v4939_v42 }
 0x6d3   : > { %v5915_v13 = vmul.f32 %v5889_v48, %v5835_v39 }
 0x6d5   : > { %v5931_v14 = vadd.f32 %v5915_v13, %v5435_v22 }
 0x6d7   : > { %v4413_v46 = vpop.permute.xlu1 %4412  ;;  %8188 = vmatprep.mubr.msk.f32.mxu0 %vm736_vm0, %v5931_v14 }
 0x6d8   : > { %v4430_v41 = vmul.f32 %v4413_v46, %v4334_v44  ;;  %8189 = vmatmul.mubr.msk.f32.gmra.mrb[172].mxu0 %vm736_vm0, %v5932_v55 }
 0x6da   : > { %v4942_v4 = vadd.f32 %v4926_v52, %v4430_v41 }
 0x6dc   : > { %v5405_v30 = vpop.permute.xlu1 %5404 }
 0x6dd   : > { %v5422_v53 = vmul.f32 %v5405_v30, %v5342_v59 }
 0x6df   : > { %v5438_v32 = vadd.f32 %v5422_v53, %v4942_v4 }
 0x6e1   : > { %v5934_v26 = vadd.f32 %v5918_v47, %v5438_v32  ;;  %v4408_v9 = vpop.permute.xlu1 %4407  ;;  %v11211_v32 = vld [vmem:[%s11334_s11] ss:$0 sm:$0xff] }
 0x6e2   : > { %v4429_v6 = vmul.f32 %v4408_v9, %v4333_v33  ;;  %v11216_v33 = vld [vmem:[%s11344_s21] ss:$0 sm:$0xff]  ;;  %v3454_v7 = vadd.f32 %v11451_v1, %v11211_v32 }
 0x6e4   : > { %v4941_v16 = vadd.f32 %v4925_v63, %v4429_v6 }
 0x6e6   : > { %v5897_v18 = vpop.permute.xlu1 %5896  ;;  %v5437_v28 = vadd.f32 %v5421_v29, %v4941_v16 }
 0x6e7   : > { %v5917_v49 = vmul.f32 %v5897_v18, %v5837_v45  ;;  %v3528_v45 = vmax.f32 %v3454_v7, 0.0  ;;  %v11453_v18 = vld [vmem:[#allocation16_spill] sm:$0xff] }
 0x6e9   : > { %v5933_v11 = vadd.f32 %v5917_v49, %v5437_v28  ;;  %v3464_v28 = vadd.f32 %v11453_v18, %v11211_v32 }
 0x6eb   : > { %8191 = vmatprep.mubr.msk.f32.mxu0 %vm736_vm0, %v5933_v11 }
 0x6ec   : > { %8192 = vmatmul.mubr.msk.f32.gmra.mrb[174].mxu0 %vm736_vm0, %v5934_v26  ;;  %v11452_v26 = vld [vmem:[#allocation9_spill] sm:$0xff] }
 0x6ed   : > { %v3449_v9 = vadd.f32 %v11211_v32, %v11452_v26  ;;  %v11459_v26 = vld [vmem:[#allocation4_spill] sm:$0xff] }
 0x6ef   : > { %v3527_v11 = vmax.f32 %v3449_v9, 0.0  ;;  %v3494_v9 = vadd.f32 %v11459_v26, %v11211_v32 }
 0x74f   : > { %v8172_v38 = vpop.f32.mrb[160].mxu0 }
 0x750   : > { %v6066_v27 = vadd.f32 %v8172_v38, %v6958_v61  ;;  %v6060_v21 = vpop.f32.mrb[161].mxu0 }
 0x751   : > { %v6061_v2 = vadd.f32 %v6958_v61, %v6060_v21 }
 0x752   : > { %v6140_v20 = vmax.f32 %v6066_v27, 0.0 }
 0x753   : > { %v6139_v51 = vmax.f32 %v6061_v2, 0.0  ;;  %v8175_v0 = vpop.f32.mrb[162].mxu0 }
 0x754   : > { %v6076_v5 = vadd.f32 %v8175_v0, %v6958_v61  ;;  %v6070_v56 = vpop.f32.mrb[163].mxu0 }
 0x755   : > { %v6071_v60 = vadd.f32 %v6958_v61, %v6070_v56  ;;  %8198 = vmatprep.mubr.msk.f32.mxu1 %vm3333_vm3, %v6139_v51  ;;  %v3530_v56 = vmax.f32 %v3464_v28, 0.0  ;;  %v3536_v28 = vmax.f32 %v3494_v9, 0.0 }
 0x756   : > { %8199 = vmatmul.mubr.msk.f32.vlgmr.msra.gmra.mrb[160].mxu1 %vm3333_vm3, %v6140_v20  ;;  %v6142_v23 = vmax.f32 %v6076_v5, 0.0 }
 0x757   : > { %v6141_v10 = vmax.f32 %v6071_v60, 0.0  ;;  %v8178_v19 = vpop.f32.mrb[164].mxu0  ;;  %v11455_v60 = vld [vmem:[#allocation3_spill] sm:$0xff] }
 0x758   : > { %v6086_v50 = vadd.f32 %v8178_v19, %v6958_v61  ;;  %v6080_v25 = vpop.f32.mrb[165].mxu0 }
 0x759   : > { %v6081_v34 = vadd.f32 %v6958_v61, %v6080_v25  ;;  %8201 = vmatprep.mubr.msk.f32.mxu1 %vm3333_vm3, %v6141_v10  ;;  %v3474_v10 = vadd.f32 %v11455_v60, %v11211_v32  ;;  %v11456_v25 = vld [vmem:[#allocation10_spill] sm:$0xff] }
 0x75a   : > { %8202 = vmatmul.mubr.msk.f32.gmra.mrb[162].mxu1 %vm3333_vm3, %v6142_v23  ;;  %v6144_v37 = vmax.f32 %v6086_v50, 0.0 }
 0x75b   : > { %v6143_v55 = vmax.f32 %v6081_v34, 0.0  ;;  %v3469_v34 = vadd.f32 %v11211_v32, %v11456_v25 }
 0x75d   : > { %8204 = vmatprep.mubr.msk.f32.mxu1 %vm3333_vm3, %v6143_v55 }
 0x75e   : > { %8205 = vmatmul.mubr.msk.f32.gmra.mrb[164].mxu1 %vm3333_vm3, %v6144_v37 }
 0x760   : > { %v8181_v12 = vpop.f32.mrb[166].mxu0 }
 0x761   : > { %v6096_v3 = vadd.f32 %v8181_v12, %v6958_v61  ;;  %v6090_v24 = vpop.f32.mrb[167].mxu0 }
 0x762   : > { %v6091_v40 = vadd.f32 %v6958_v61, %v6090_v24 }
 0x763   : > { %v6146_v39 = vmax.f32 %v6096_v3, 0.0 }
 0x764   : > { %v6145_v36 = vmax.f32 %v6091_v40, 0.0 }
 0x766   : > { %8207 = vmatprep.mubr.msk.f32.mxu1 %vm3333_vm3, %v6145_v36 }
 0x767   : > { %8208 = vmatmul.mubr.msk.f32.gmra.mrb[166].mxu1 %vm3333_vm3, %v6146_v39 }
 0x779   : > { %v8184_v54 = vpop.f32.mrb[168].mxu0 }
 0x77a   : > { %v6106_v42 = vadd.f32 %v8184_v54, %v6958_v61  ;;  %v6100_v17 = vpop.f32.mrb[169].mxu0  ;;  %v3532_v54 = vmax.f32 %v3474_v10, 0.0 }
 0x77b   : > { %v6101_v57 = vadd.f32 %v6958_v61, %v6100_v17 }
 0x77c   : > { %v6148_v48 = vmax.f32 %v6106_v42, 0.0 }
 0x77d   : > { %v6147_v35 = vmax.f32 %v6101_v57, 0.0  ;;  %v3531_v57 = vmax.f32 %v3469_v34, 0.0 }
 0x77f   : > { %8210 = vmatprep.mubr.msk.f32.mxu1 %vm3333_vm3, %v6147_v35 }
 0x780   : > { %8211 = vmatmul.mubr.msk.f32.gmra.mrb[168].mxu1 %vm3333_vm3, %v6148_v48 }
 0x792   : > { %v8187_v22 = vpop.f32.mrb[170].mxu0 }
 0x793   : > { %v6116_v43 = vadd.f32 %v8187_v22, %v6958_v61  ;;  %v6110_v13 = vpop.f32.mrb[171].mxu0 }
 0x794   : > { %v6111_v8 = vadd.f32 %v6958_v61, %v6110_v13 }
 0x795   : > { %v6150_v44 = vmax.f32 %v6116_v43, 0.0 }
 0x796   : > { %v6149_v14 = vmax.f32 %v6111_v8, 0.0  ;;  %v11457_v8 = vld [vmem:[#allocation24_spill] sm:$0xff] }
 0x798   : > { %8213 = vmatprep.mubr.msk.f32.mxu1 %vm3333_vm3, %v6149_v14  ;;  %v3484_v14 = vadd.f32 %v11457_v8, %v11211_v32 }
 0x799   : > { %8214 = vmatmul.mubr.msk.f32.gmra.mrb[170].mxu1 %vm3333_vm3, %v6150_v44 }
 0x7ab   : > { %v8190_v46 = vpop.f32.mrb[172].mxu0 }
 0x7ac   : > { %v6126_v52 = vadd.f32 %v8190_v46, %v6958_v61  ;;  %v6120_v58 = vpop.f32.mrb[173].mxu0  ;;  %v11458_v46 = vld [vmem:[#allocation17_spill] sm:$0xff] }
 0x7ad   : > { %v6121_v41 = vadd.f32 %v6958_v61, %v6120_v58 }
 0x7ae   : > { %v6152_v59 = vmax.f32 %v6126_v52, 0.0  ;;  %v3479_v52 = vadd.f32 %v11211_v32, %v11458_v46  ;;  %v11465_v46 = vld [vmem:[#allocation26_spill] sm:$0xff] }
 0x7af   : > { %v6151_v4 = vmax.f32 %v6121_v41, 0.0 }
 0x7b1   : > { %8216 = vmatprep.mubr.msk.f32.mxu1 %vm3333_vm3, %v6151_v4 }
 0x7b2   : > { %8217 = vmatmul.mubr.msk.f32.gmra.mrb[172].mxu1 %vm3333_vm3, %v6152_v59 }
 0x7bf   : > { %v8193_v62 = vpop.f32.mrb[174].mxu0 }
 0x7c0   : > { %v6136_v30 = vadd.f32 %v8193_v62, %v6958_v61  ;;  %v6130_v53 = vpop.f32.mrb[175].mxu0  ;;  %v3534_v62 = vmax.f32 %v3484_v14, 0.0 }
 0x7c1   : > { %v6131_v31 = vadd.f32 %v6958_v61, %v6130_v53  ;;  %v11454_v61 = vld [vmem:[#allocation23_spill] sm:$0xff]  ;;  %v3533_v53 = vmax.f32 %v3479_v52, 0.0  ;;  %v3524_v52 = vadd.f32 %v11465_v46, %v11211_v32 }
 0x7c2   : > { %v6154_v47 = vmax.f32 %v6136_v30, 0.0  ;;  %v3459_v38 = vadd.f32 %v11211_v32, %v11454_v61 }
 0x7c3   : > { %v6153_v15 = vmax.f32 %v6131_v31, 0.0 }
 0x7c4   : > { %v3529_v50 = vmax.f32 %v3459_v38, 0.0 }
 0x7c5   : > { %8219 = vmatprep.mubr.msk.f32.mxu1 %vm3333_vm3, %v6153_v15 }
 0x7c6   : > { %8220 = vmatmul.mubr.msk.f32.gmra.mrb[174].mxu1 %vm3333_vm3, %v6154_v47 }
 0x829   : > { %v8200_v63 = vpop.f32.mrb[160].mxu1 }
 0x82a   : > { %v6284_v6 = vadd.f32 %v8200_v63, %v11216_v33  ;;  %v6278_v29 = vpop.f32.mrb[161].mxu1  ;;  %v11460_v63 = vld [vmem:[#allocation11_spill] sm:$0xff] }
 0x82b   : > { %v6279_v16 = vadd.f32 %v11216_v33, %v6278_v29 }
 0x82c   : > { %v6358_v49 = vmax.f32 %v6284_v6, 0.0  ;;  %v3489_v6 = vadd.f32 %v11211_v32, %v11460_v63 }
 0x82d   : > { %v6357_v27 = vmax.f32 %v6279_v16, 0.0  ;;  %v8203_v21 = vpop.f32.mrb[162].mxu1 }
 0x82e   : > { %v6374_v2 = vmul.f32 %v6358_v49, %v3528_v45  ;;  %v6294_v51 = vadd.f32 %v8203_v21, %v11216_v33  ;;  %v6288_v0 = vpop.f32.mrb[163].mxu1 }
 0x82f   : > { %v6373_v20 = vmul.f32 %v6357_v27, %v3527_v11  ;;  %v6289_v5 = vadd.f32 %v11216_v33, %v6288_v0  ;;  %v3535_v11 = vmax.f32 %v3489_v6, 0.0 }
 0x830   : > { %v6360_v19 = vmax.f32 %v6294_v51, 0.0  ;;  %v6393_v23 = vsel %vm6389_vm4, %v6374_v2, 0.0  ;;  %v11461_v51 = vld [vmem:[#allocation18_spill] sm:$0xff] }
 0x831   : > { %v6359_v55 = vmax.f32 %v6289_v5, 0.0  ;;  %6394 = vadd.xlane.f32.xlu0 %v6393_v23  ;;  %v8206_v37 = vpop.f32.mrb[164].mxu1  ;;  %v6390_v12 = vsel %vm6389_vm4, %v6373_v20, 0.0  ;;  %v3504_v0 = vadd.f32 %v11461_v51, %v11211_v32  ;;  %v11462_v20 = vld [vmem:[#allocation25_spill] sm:$0xff] }
 0x832   : > { %v6376_v3 = vmul.f32 %v6360_v19, %v3530_v56  ;;  %v6304_v24 = vadd.f32 %v8206_v37, %v11216_v33  ;;  %v6298_v40 = vpop.f32.mrb[165].mxu1  ;;  %6391 = vadd.xlane.f32.xlu1 %v6390_v12  ;;  %v3499_v5 = vadd.f32 %v11211_v32, %v11462_v20 }
 0x833   : > { %v6375_v36 = vmul.f32 %v6359_v55, %v3529_v50  ;;  %v6299_v39 = vadd.f32 %v11216_v33, %v6298_v40  ;;  %v3538_v23 = vmax.f32 %v3504_v0, 0.0 }
 0x834   : > { %v6362_v42 = vmax.f32 %v6304_v24, 0.0  ;;  %v6399_v17 = vsel %vm6389_vm4, %v6376_v3, 0.0  ;;  %v3537_v25 = vmax.f32 %v3499_v5, 0.0  ;;  %v11463_v24 = vld [vmem:[#allocation5_spill] sm:$0xff] }
 0x835   : > { %v6361_v35 = vmax.f32 %v6299_v39, 0.0  ;;  %v6396_v48 = vsel %vm6389_vm4, %v6375_v36, 0.0  ;;  %v3514_v40 = vadd.f32 %v11463_v24, %v11211_v32  ;;  %v11464_v36 = vld [vmem:[#allocation12_spill] sm:$0xff] }
 0x836   : > { %v6378_v22 = vmul.f32 %v6362_v42, %v3532_v54  ;;  %6397 = vadd.xlane.f32.xlu0 %v6396_v48  ;;  %6400 = vadd.xlane.f32.xlu1 %v6399_v17  ;;  %v3509_v39 = vadd.f32 %v11211_v32, %v11464_v36 }
 0x837   : > { %v6377_v43 = vmul.f32 %v6361_v35, %v3531_v57  ;;  %v3540_v35 = vmax.f32 %v3514_v40, 0.0 }
 0x838   : > { %v6405_v13 = vsel %vm6389_vm4, %v6378_v22, 0.0  ;;  %v3539_v22 = vmax.f32 %v3509_v39, 0.0 }
 0x839   : > { %v6402_v44 = vsel %vm6389_vm4, %v6377_v43, 0.0 }
 0x83a   : > { %v8209_v58 = vpop.f32.mrb[166].mxu1  ;;  %6403 = vadd.xlane.f32.xlu0 %v6402_v44  ;;  %6406 = vadd.xlane.f32.xlu1 %v6405_v13 }
 0x83b   : > { %v6314_v41 = vadd.f32 %v8209_v58, %v11216_v33  ;;  %v6308_v4 = vpop.f32.mrb[167].mxu1  ;;  %v11466_v58 = vld [vmem:[#allocation19_spill] sm:$0xff] }
 0x83c   : > { %v6309_v59 = vadd.f32 %v11216_v33, %v6308_v4 }
 0x83d   : > { %v6364_v30 = vmax.f32 %v6314_v41, 0.0  ;;  %v3519_v41 = vadd.f32 %v11211_v32, %v11466_v58 }
 0x83e   : > { %v6363_v31 = vmax.f32 %v6309_v59, 0.0 }
 0x83f   : > { %v6380_v15 = vmul.f32 %v6364_v30, %v3534_v62 }
 0x840   : > { %v6379_v47 = vmul.f32 %v6363_v31, %v3533_v53  ;;  %v3542_v53 = vmax.f32 %v3524_v52, 0.0 }
 0x841   : > { %v6411_v1 = vsel %vm6389_vm4, %v6380_v15, 0.0  ;;  %v3541_v15 = vmax.f32 %v3519_v41, 0.0 }
 0x842   : > { %6412 = vadd.xlane.f32.xlu1 %v6411_v1  ;;  %v6408_v7 = vsel %vm6389_vm4, %v6379_v47, 0.0 }
 0x843   : > { %6409 = vadd.xlane.f32.xlu0 %v6408_v7 }
 0x853   : > { %v8212_v29 = vpop.f32.mrb[168].mxu1 }
 0x854   : > { %v6324_v16 = vadd.f32 %v8212_v29, %v11216_v33  ;;  %v6318_v45 = vpop.f32.mrb[169].mxu1 }
 0x855   : > { %v6319_v18 = vadd.f32 %v11216_v33, %v6318_v45 }
 0x856   : > { %v6366_v49 = vmax.f32 %v6324_v16, 0.0 }
 0x857   : > { %v6365_v61 = vmax.f32 %v6319_v18, 0.0 }
 0x858   : > { %v6382_v38 = vmul.f32 %v6366_v49, %v3536_v28 }
 0x859   : > { %v6381_v27 = vmul.f32 %v6365_v61, %v3535_v11 }
 0x85a   : > { %v6417_v21 = vsel %vm6389_vm4, %v6382_v38, 0.0 }
 0x85b   : > { %6418 = vadd.xlane.f32.xlu1 %v6417_v21  ;;  %v6414_v2 = vsel %vm6389_vm4, %v6381_v27, 0.0 }
 0x85c   : > { %6415 = vadd.xlane.f32.xlu0 %v6414_v2 }
 0x86c   : > { %v8215_v56 = vpop.f32.mrb[170].mxu1 }
 0x86d   : > { %v6334_v60 = vadd.f32 %v8215_v56, %v11216_v33  ;;  %v6328_v10 = vpop.f32.mrb[171].mxu1 }
 0x86e   : > { %v6329_v19 = vadd.f32 %v11216_v33, %v6328_v10 }
 0x86f   : > { %v6368_v50 = vmax.f32 %v6334_v60, 0.0 }
 0x870   : > { %v6367_v34 = vmax.f32 %v6329_v19, 0.0 }
 0x871   : > { %v6384_v55 = vmul.f32 %v6368_v50, %v3538_v23 }
 0x872   : > { %v6383_v37 = vmul.f32 %v6367_v34, %v3537_v25 }
 0x873   : > { %v6423_v12 = vsel %vm6389_vm4, %v6384_v55, 0.0 }
 0x874   : > { %6424 = vadd.xlane.f32.xlu1 %v6423_v12  ;;  %v6420_v3 = vsel %vm6389_vm4, %v6383_v37, 0.0 }
 0x875   : > { %6421 = vadd.xlane.f32.xlu0 %v6420_v3 }
 0x885   : > { %v8218_v54 = vpop.f32.mrb[172].mxu1 }
 0x886   : > { %v6344_v42 = vadd.f32 %v8218_v54, %v11216_v33  ;;  %v6338_v17 = vpop.f32.mrb[173].mxu1 }
 0x887   : > { %v6339_v57 = vadd.f32 %v11216_v33, %v6338_v17 }
 0x888   : > { %v6370_v48 = vmax.f32 %v6344_v42, 0.0 }
 0x889   : > { %v6369_v43 = vmax.f32 %v6339_v57, 0.0 }
 0x88a   : > { %v6386_v13 = vmul.f32 %v6370_v48, %v3540_v35 }
 0x88b   : > { %v6385_v8 = vmul.f32 %v6369_v43, %v3539_v22 }
 0x88c   : > { %v6429_v14 = vsel %vm6389_vm4, %v6386_v13, 0.0 }
 0x88d   : > { %6430 = vadd.xlane.f32.xlu1 %v6429_v14  ;;  %v6426_v44 = vsel %vm6389_vm4, %v6385_v8, 0.0 }
 0x88e   : > { %6427 = vadd.xlane.f32.xlu0 %v6426_v44 }
 0x899   : > { %v8221_v4 = vpop.f32.mrb[174].mxu1 }
 0x89a   : > { %v6354_v59 = vadd.f32 %v8221_v4, %v11216_v33  ;;  %v6348_v62 = vpop.f32.mrb[175].mxu1 }
 0x89b   : > { %v6349_v30 = vadd.f32 %v11216_v33, %v6348_v62 }
 0x89c   : > { %v6372_v31 = vmax.f32 %v6354_v59, 0.0 }
 0x89d   : > { %v6371_v47 = vmax.f32 %v6349_v30, 0.0 }
 0x89e   : > { %v6388_v1 = vmul.f32 %v6372_v31, %v3542_v53 }
 0x89f   : > { %v6387_v7 = vmul.f32 %v6371_v47, %v3541_v15 }
 0x8a0   : > { %v6435_v26 = vsel %vm6389_vm4, %v6388_v1, 0.0 }
 0x8a1   : > { %6436 = vadd.xlane.f32.xlu1 %v6435_v26  ;;  %v6432_v9 = vsel %vm6389_vm4, %v6387_v7, 0.0 }
 0x8a2   : > { %6433 = vadd.xlane.f32.xlu0 %v6432_v9 }
 0x8be   : > { %v6395_v32 = vpop.xlane.xlu0 %6394 }
 0x8bf   : > { %6440 = vst.msk [vmem:[%s11286_s28 + $0x8] sm:$0xff] %vm6438_vm5, %v6395_v32  ;;  %v6392_v33 = vpop.xlane.xlu1 %6391 }
 0x8c0   : > { %6439 = vst.msk [vmem:[%s11286_s28] sm:$0xff] %vm6438_vm5, %v6392_v33 }
 0x8c3   : > { %v6398_v63 = vpop.xlane.xlu0 %6397  ;;  %v6401_v6 = vpop.xlane.xlu1 %6400 }
 0x8c4   : > { %6441 = vst.msk [vmem:[%s11286_s28 + $0x10] sm:$0xff] %vm6438_vm5, %v6398_v63  ;;  %6442 = vst.msk [vmem:[%s11286_s28 + $0x18] sm:$0xff] %vm6438_vm5, %v6401_v6 }
 0x8c7   : > { %v6404_v29 = vpop.xlane.xlu0 %6403  ;;  %v6407_v16 = vpop.xlane.xlu1 %6406 }
 0x8c8   : > { %6443 = vst.msk [vmem:[%s11286_s28 + $0x20] sm:$0xff] %vm6438_vm5, %v6404_v29  ;;  %6444 = vst.msk [vmem:[%s11286_s28 + $0x28] sm:$0xff] %vm6438_vm5, %v6407_v16 }
 0x8cf   : > { %v6413_v45 = vpop.xlane.xlu1 %6412 }
 0x8d0   : > { %6446 = vst.msk [vmem:[%s11286_s28 + $0x38] sm:$0xff] %vm6438_vm5, %v6413_v45  ;;  %v6410_v18 = vpop.xlane.xlu0 %6409 }
 0x8d1   : > { %6445 = vst.msk [vmem:[%s11286_s28 + $0x30] sm:$0xff] %vm6438_vm5, %v6410_v18 }
 0x8e8   : > { %v6419_v28 = vpop.xlane.xlu1 %6418 }
 0x8e9   : > { %6448 = vst.msk [vmem:[%s11286_s28 + $0x48] sm:$0xff] %vm6438_vm5, %v6419_v28  ;;  %v6416_v49 = vpop.xlane.xlu0 %6415 }
 0x8ea   : > { %6447 = vst.msk [vmem:[%s11286_s28 + $0x40] sm:$0xff] %vm6438_vm5, %v6416_v49 }
 0x901   : > { %v6425_v11 = vpop.xlane.xlu1 %6424 }
 0x902   : > { %6450 = vst.msk [vmem:[%s11286_s28 + $0x58] sm:$0xff] %vm6438_vm5, %v6425_v11  ;;  %v6422_v61 = vpop.xlane.xlu0 %6421 }
 0x903   : > { %6449 = vst.msk [vmem:[%s11286_s28 + $0x50] sm:$0xff] %vm6438_vm5, %v6422_v61 }
 0x91a   : > { %v6431_v38 = vpop.xlane.xlu1 %6430 }
 0x91b   : > { %6452 = vst.msk [vmem:[%s11286_s28 + $0x68] sm:$0xff] %vm6438_vm5, %v6431_v38  ;;  %v6428_v27 = vpop.xlane.xlu0 %6427 }
 0x91c   : > { %6451 = vst.msk [vmem:[%s11286_s28 + $0x60] sm:$0xff] %vm6438_vm5, %v6428_v27 }
 0x92e   : > { %v6437_v21 = vpop.xlane.xlu1 %6436 }
 0x92f   : > { %6454 = vst.msk [vmem:[%s11286_s28 + $0x78] sm:$0xff] %vm6438_vm5, %v6437_v21  ;;  %v6434_v2 = vpop.xlane.xlu0 %6433 }
 0x930   : > { %6453 = vst.msk [vmem:[%s11286_s28 + $0x70] sm:$0xff] %vm6438_vm5, %v6434_v2 }
 0x931 PF: > { %s32_s3 = sadd.s32 1, %s8714_s3  }
 0x932   : > { %p29_p4 = scmp.ge.s32.totalorder %s32_s3, 4  }
 0x934   :  { %31 = sbr.rel (!%p29_p4) target bundleno = 8 (0x8), region = 165 }

</bundles_post_ra>
